<compile_context>
chip_gen: v7x
topology: tpu7x:2x2x1
jax: 0.10.0
libtpu: 0.0.40
codegen_flags: <defaults>
</compile_context>

<pallas_src>
import math
import jax
import jax.numpy as jnp
from jax.experimental import pallas as pl
from jax.experimental.pallas import tpu as pltpu

E = 1024                                   # ProtBert/ProtT5 embedding size (fixed by module)
MLP_DIMS = (1024, 512, 256, 128, 64, 16, 1)  # fussion_module4protbert widths
EPS = 1e-5                                 # BatchNorm1d default eps


# ---------------------------------------------------------------------------
# Fused kernel: FeedAttention -> BN(eval) -> Dropout(eval) -> 6-layer MLP
# grid over blocks of the stacked [wild; mutant] batch.
# ---------------------------------------------------------------------------
def _fused_kernel(x_ref, watt_ref, bns_ref, bnt_ref,
                  w1_ref, b1_ref, w2_ref, b2_ref, w3_ref, b3_ref,
                  w4_ref, b4_ref, w5_ref, b5_ref, w6_ref, b6_ref,
                  out_ref):
    # x: (Bt, L, E) bf16 block (bf16 halves the dominant HBM stream).
    x = x_ref[...].astype(jnp.float32)

    # --- FeedAttention (mask=None: nn.Sequential never passes a mask) ------
    scores = jnp.sum(x * watt_ref[...], axis=2)          # (Bt, L)  == bmm(x, W)
    scores = jnp.tanh(scores)
    m = jnp.max(scores, axis=1, keepdims=True)           # softmax over L
    e = jnp.exp(scores - m)
    a = e / jnp.sum(e, axis=1, keepdims=True)            # (Bt, L)
    pooled = jnp.sum(x * a[:, :, None], axis=1)          # (Bt, E)

    # --- BatchNorm1d(1024) eval mode (folded); Dropout(0.4) is identity ----
    h = pooled * bns_ref[...] + bnt_ref[...]

    # --- fussion_module4protbert: Linear/ReLU chain, all weights in VMEM ---
    for w_ref, b_ref in ((w1_ref, b1_ref), (w2_ref, b2_ref), (w3_ref, b3_ref),
                         (w4_ref, b4_ref), (w5_ref, b5_ref)):
        h = jnp.maximum(
            jnp.dot(h, w_ref[...], preferred_element_type=jnp.float32)
            + b_ref[...], 0.0)
    out_ref[...] = (jnp.dot(h, w6_ref[...], preferred_element_type=jnp.float32)
                    + b6_ref[...])                       # (Bt, 1)


def _fused_forward(x_bf16, watt, bns, bnt, mlp, bt):
    npad, llen, _ = x_bf16.shape
    small = [watt, bns, bnt] + [t for pair in mlp for t in pair]

    def const_spec(arr):
        nd = arr.ndim
        return pl.BlockSpec(arr.shape, lambda i, _nd=nd: (0,) * _nd)

    in_specs = ([pl.BlockSpec((bt, llen, E), lambda i: (i, 0, 0))]
                + [const_spec(a) for a in small])

    return pl.pallas_call(
        _fused_kernel,
        out_shape=jax.ShapeDtypeStruct((npad, 1), jnp.float32),
        grid_spec=pltpu.PrefetchScalarGridSpec(
            num_scalar_prefetch=0,
            grid=(npad // bt,),
            in_specs=in_specs,
            out_specs=pl.BlockSpec((bt, 1), lambda i: (i, 0)),
        ),
        compiler_params=pltpu.CompilerParams(
            dimension_semantics=("parallel",)),
    )(x_bf16, *small)


# ---------------------------------------------------------------------------
# Full forward (glue: batch stacking/padding, BN folding, weight transposes)
# ---------------------------------------------------------------------------
def ponst5_feed_attention_forward(wild_embedding, mutant_embedding, bioinfo, p):
    # bioinfo is accepted but unused — exactly like the PyTorch forward.
    del bioinfo
    B, llen, e = wild_embedding.shape
    assert e == E
    x = jnp.concatenate([wild_embedding, mutant_embedding], axis=0)   # (2B, L, E)
    x = x.astype(jnp.float32)

    n = 2 * B
    bt = n if n <= 8 else 8                       # batch rows per grid step
    npad = ((n + bt - 1) // bt) * bt
    if npad != n:
        x = jnp.concatenate(
            [x, jnp.zeros((npad - n, llen, E), jnp.float32)], axis=0)
    x_bf16 = x.astype(jnp.bfloat16)               # dominant HBM stream in bf16

    inv = 1.0 / jnp.sqrt(p['bn_var'] + EPS)
    bns = (p['bn_gamma'] * inv).reshape(1, E)
    bnt = (p['bn_beta'] - p['bn_mean'] * p['bn_gamma'] * inv).reshape(1, E)
    watt = p['att_w'].reshape(1, 1, E).astype(jnp.float32)
    # NOTE: FeedAttention.bias (max_len, 1) is a dead parameter in the PyTorch
    # forward (never used), so it is deliberately not consumed here.

    mlp = [(p[f'fc{i}_w'].T, p[f'fc{i}_b'].reshape(1, -1)) for i in range(1, 7)]

    y = _fused_forward(x_bf16, watt, bns, bnt, mlp, bt)[:n]   # (2B, 1)
    return y[B:] - y[:B]                          # torch.sub(mutant, wild)


# ---------------------------------------------------------------------------
# Pure-JAX f32 reference for verification
# ---------------------------------------------------------------------------
def reference_forward(wild_embedding, mutant_embedding, bioinfo, p):
    del bioinfo

    def branch(xb):
        scores = jnp.tanh(jnp.einsum('ble,eo->blo', xb, p['att_w']))[..., 0]
        a = jax.nn.softmax(scores, axis=-1)
        pooled = jnp.sum(xb * a[..., None], axis=1)
        pooled = ((pooled - p['bn_mean']) / jnp.sqrt(p['bn_var'] + EPS)
                  * p['bn_gamma'] + p['bn_beta'])
        h = pooled
        for i in range(1, 6):
            h = jnp.maximum(h @ p[f'fc{i}_w'].T + p[f'fc{i}_b'], 0.0)
        return h @ p['fc6_w'].T + p['fc6_b']

    return branch(mutant_embedding.astype(jnp.float32)) \
        - branch(wild_embedding.astype(jnp.float32))


# ---------------------------------------------------------------------------
# Deterministic parameter init (shapes from the PyTorch __init__)
# ---------------------------------------------------------------------------
def init_params(key, max_len):
    ks = jax.random.split(key, 20)

    def u(k, shape, fan_in):
        bound = 1.0 / math.sqrt(fan_in)
        return jax.random.uniform(k, shape, jnp.float32, -bound, bound)

    params = dict(
        att_w=u(ks[0], (E, 1), E),             # FeedAttention.weight
        att_b=u(ks[1], (max_len, 1), E),       # FeedAttention.bias (unused in forward)
        bn_gamma=jax.random.uniform(ks[2], (E,), jnp.float32, 0.5, 1.5),
        bn_beta=0.1 * jax.random.normal(ks[3], (E,), jnp.float32),
        bn_mean=0.1 * jax.random.normal(ks[4], (E,), jnp.float32),
        bn_var=jax.random.uniform(ks[5], (E,), jnp.float32, 0.5, 1.5),
    )
    for i in range(1, 7):
        fan_in, fan_out = MLP_DIMS[i - 1], MLP_DIMS[i]
        params[f'fc{i}_w'] = u(ks[4 + 2 * i], (fan_out, fan_in), fan_in)
        params[f'fc{i}_b'] = u(ks[5 + 2 * i], (fan_out,), fan_in)
    return params


if __name__ == "__main__":
    key = jax.random.PRNGKey(0)
    kp, kw, km, kb = jax.random.split(key, 4)

    B, LMAX = 2, 8           # small length; emb=1024 is fixed by the module
    params = init_params(kp, LMAX)

    # TODO(synk): the frozen embedding_model (ProtT5/ProtBert) is not
    # implemented; its last_hidden_state outputs are taken as inputs here.
    wild_embedding = jax.random.normal(kw, (B, LMAX, E), jnp.float32)
    mutant_embedding = jax.random.normal(km, (B, LMAX, E), jnp.float32)
    bioinfo = jax.random.normal(kb, (B, 8), jnp.float32)   # unused, as in torch

    out = jax.block_until_ready(
        ponst5_feed_attention_forward(wild_embedding, mutant_embedding,
                                      bioinfo, params))
    ref = jax.block_until_ready(
        reference_forward(wild_embedding, mutant_embedding, bioinfo, params))

    assert out.shape == (B, 1), out.shape
    assert bool(jnp.all(jnp.isfinite(out)))
    assert bool(jnp.allclose(out, ref, rtol=2e-2, atol=2e-2)), (out, ref)
    print("KERNEL_OK")
</pallas_src>

<mosaic_0001>
module attributes {stable_mosaic.version = 11 : i64} {
  func.func @_fused_kernel(%arg0: i32, %arg1: memref<4x8x1024xbf16, #tpu.memory_space<vmem>>, %arg2: memref<1x1x1024xf32, #tpu.memory_space<vmem>>, %arg3: memref<1x1024xf32, #tpu.memory_space<vmem>>, %arg4: memref<1x1024xf32, #tpu.memory_space<vmem>>, %arg5: memref<1024x512xf32, #tpu.memory_space<vmem>>, %arg6: memref<1x512xf32, #tpu.memory_space<vmem>>, %arg7: memref<512x256xf32, #tpu.memory_space<vmem>>, %arg8: memref<1x256xf32, #tpu.memory_space<vmem>>, %arg9: memref<256x128xf32, #tpu.memory_space<vmem>>, %arg10: memref<1x128xf32, #tpu.memory_space<vmem>>, %arg11: memref<128x64xf32, #tpu.memory_space<vmem>>, %arg12: memref<1x64xf32, #tpu.memory_space<vmem>>, %arg13: memref<64x16xf32, #tpu.memory_space<vmem>>, %arg14: memref<1x16xf32, #tpu.memory_space<vmem>>, %arg15: memref<16x1xf32, #tpu.memory_space<vmem>>, %arg16: memref<1x1xf32, #tpu.memory_space<vmem>>, %arg17: memref<4x1xf32, #tpu.memory_space<vmem>>) attributes {dimension_semantics = [#tpu.dimension_semantics<parallel>], iteration_bounds = array<i64: 1>, scalar_prefetch = 0 : i64, scratch_operands = 0 : i64, tpu.core_type = #tpu.core_type<tc>, window_params = [{transform_indices = @transform_0, window_bounds = array<i64: 4, 8, 1024>}, {pipeline_mode = #tpu.pipeline_mode<synchronous>, transform_indices = @transform_1, window_bounds = array<i64: 1, 1, 1024>}, {pipeline_mode = #tpu.pipeline_mode<synchronous>, transform_indices = @transform_2, window_bounds = array<i64: 1, 1024>}, {pipeline_mode = #tpu.pipeline_mode<synchronous>, transform_indices = @transform_3, window_bounds = array<i64: 1, 1024>}, {pipeline_mode = #tpu.pipeline_mode<synchronous>, transform_indices = @transform_4, window_bounds = array<i64: 1024, 512>}, {pipeline_mode = #tpu.pipeline_mode<synchronous>, transform_indices = @transform_5, window_bounds = array<i64: 1, 512>}, {pipeline_mode = #tpu.pipeline_mode<synchronous>, transform_indices = @transform_6, window_bounds = array<i64: 512, 256>}, {pipeline_mode = #tpu.pipeline_mode<synchronous>, transform_indices = @transform_7, window_bounds = array<i64: 1, 256>}, {pipeline_mode = #tpu.pipeline_mode<synchronous>, transform_indices = @transform_8, window_bounds = array<i64: 256, 128>}, {pipeline_mode = #tpu.pipeline_mode<synchronous>, transform_indices = @transform_9, window_bounds = array<i64: 1, 128>}, {pipeline_mode = #tpu.pipeline_mode<synchronous>, transform_indices = @transform_10, window_bounds = array<i64: 128, 64>}, {pipeline_mode = #tpu.pipeline_mode<synchronous>, transform_indices = @transform_11, window_bounds = array<i64: 1, 64>}, {pipeline_mode = #tpu.pipeline_mode<synchronous>, transform_indices = @transform_12, window_bounds = array<i64: 64, 16>}, {pipeline_mode = #tpu.pipeline_mode<synchronous>, transform_indices = @transform_13, window_bounds = array<i64: 1, 16>}, {pipeline_mode = #tpu.pipeline_mode<synchronous>, transform_indices = @transform_14, window_bounds = array<i64: 16, 1>}, {pipeline_mode = #tpu.pipeline_mode<synchronous>, transform_indices = @transform_15, window_bounds = array<i64: 1, 1>}, {transform_indices = @transform_16, window_bounds = array<i64: 4, 1>}]} {
    %c0 = arith.constant 0 : index
    %c0_0 = arith.constant 0 : index
    %c0_1 = arith.constant 0 : index
    %0 = vector.load %arg1[%c0, %c0_0, %c0_1] : memref<4x8x1024xbf16, #tpu.memory_space<vmem>>, vector<4x8x1024xbf16>
    %1 = arith.extf %0 : vector<4x8x1024xbf16> to vector<4x8x1024xf32>
    %c0_2 = arith.constant 0 : index
    %c0_3 = arith.constant 0 : index
    %c0_4 = arith.constant 0 : index
    %2 = vector.load %arg2[%c0_2, %c0_3, %c0_4] : memref<1x1x1024xf32, #tpu.memory_space<vmem>>, vector<1x1x1024xf32>
    %3 = vector.broadcast %2 : vector<1x1x1024xf32> to vector<4x8x1024xf32>
    %4 = arith.mulf %1, %3 : vector<4x8x1024xf32>
    %cst = arith.constant dense<0.000000e+00> : vector<4x8xf32>
    %5 = vector.multi_reduction <add>, %4, %cst [2] : vector<4x8x1024xf32> to vector<4x8xf32>
    %6 = math.tanh %5 : vector<4x8xf32>
    %cst_5 = arith.constant dense<0xFF800000> : vector<4xf32>
    %7 = vector.multi_reduction <maximumf>, %6, %cst_5 [1] : vector<4x8xf32> to vector<4xf32>
    %8 = vector.shape_cast %7 : vector<4xf32> to vector<4x1xf32>
    %9 = vector.broadcast %8 : vector<4x1xf32> to vector<4x8xf32>
    %10 = arith.subf %6, %9 : vector<4x8xf32>
    %11 = math.exp %10 : vector<4x8xf32>
    %cst_6 = arith.constant dense<0.000000e+00> : vector<4xf32>
    %12 = vector.multi_reduction <add>, %11, %cst_6 [1] : vector<4x8xf32> to vector<4xf32>
    %13 = vector.shape_cast %12 : vector<4xf32> to vector<4x1xf32>
    %14 = vector.broadcast %13 : vector<4x1xf32> to vector<4x8xf32>
    %15 = arith.divf %11, %14 : vector<4x8xf32>
    %16 = vector.shape_cast %15 : vector<4x8xf32> to vector<4x8x1xf32>
    %17 = vector.broadcast %16 : vector<4x8x1xf32> to vector<4x8x1024xf32>
    %18 = arith.mulf %1, %17 : vector<4x8x1024xf32>
    %cst_7 = arith.constant dense<0.000000e+00> : vector<4x1024xf32>
    %19 = vector.multi_reduction <add>, %18, %cst_7 [1] : vector<4x8x1024xf32> to vector<4x1024xf32>
    %c0_8 = arith.constant 0 : index
    %c0_9 = arith.constant 0 : index
    %20 = vector.load %arg3[%c0_8, %c0_9] : memref<1x1024xf32, #tpu.memory_space<vmem>>, vector<1x1024xf32>
    %21 = vector.broadcast %20 : vector<1x1024xf32> to vector<4x1024xf32>
    %22 = arith.mulf %19, %21 : vector<4x1024xf32>
    %c0_10 = arith.constant 0 : index
    %c0_11 = arith.constant 0 : index
    %23 = vector.load %arg4[%c0_10, %c0_11] : memref<1x1024xf32, #tpu.memory_space<vmem>>, vector<1x1024xf32>
    %24 = vector.broadcast %23 : vector<1x1024xf32> to vector<4x1024xf32>
    %25 = arith.addf %22, %24 : vector<4x1024xf32>
    %c0_12 = arith.constant 0 : index
    %c0_13 = arith.constant 0 : index
    %26 = vector.load %arg5[%c0_12, %c0_13] : memref<1024x512xf32, #tpu.memory_space<vmem>>, vector<1024x512xf32>
    %cst_14 = arith.constant dense<0.000000e+00> : vector<4x512xf32>
    %27 = tpu.matmul %25, %26, %cst_14 {dimension_numbers = #tpu.dot_dimension_numbers<[1], [0], [0], [1], [0, 0, 1, 1], [], []>} : vector<4x1024xf32>, vector<1024x512xf32>, vector<4x512xf32> -> vector<4x512xf32>
    %c0_15 = arith.constant 0 : index
    %c0_16 = arith.constant 0 : index
    %28 = vector.load %arg6[%c0_15, %c0_16] : memref<1x512xf32, #tpu.memory_space<vmem>>, vector<1x512xf32>
    %29 = vector.broadcast %28 : vector<1x512xf32> to vector<4x512xf32>
    %30 = arith.addf %27, %29 : vector<4x512xf32>
    %cst_17 = arith.constant 0.000000e+00 : f32
    %31 = vector.broadcast %cst_17 : f32 to vector<4x512xf32>
    %32 = arith.maximumf %30, %31 : vector<4x512xf32>
    %c0_18 = arith.constant 0 : index
    %c0_19 = arith.constant 0 : index
    %33 = vector.load %arg7[%c0_18, %c0_19] : memref<512x256xf32, #tpu.memory_space<vmem>>, vector<512x256xf32>
    %cst_20 = arith.constant dense<0.000000e+00> : vector<4x256xf32>
    %34 = tpu.matmul %32, %33, %cst_20 {dimension_numbers = #tpu.dot_dimension_numbers<[1], [0], [0], [1], [0, 0, 1, 1], [], []>} : vector<4x512xf32>, vector<512x256xf32>, vector<4x256xf32> -> vector<4x256xf32>
    %c0_21 = arith.constant 0 : index
    %c0_22 = arith.constant 0 : index
    %35 = vector.load %arg8[%c0_21, %c0_22] : memref<1x256xf32, #tpu.memory_space<vmem>>, vector<1x256xf32>
    %36 = vector.broadcast %35 : vector<1x256xf32> to vector<4x256xf32>
    %37 = arith.addf %34, %36 : vector<4x256xf32>
    %cst_23 = arith.constant 0.000000e+00 : f32
    %38 = vector.broadcast %cst_23 : f32 to vector<4x256xf32>
    %39 = arith.maximumf %37, %38 : vector<4x256xf32>
    %c0_24 = arith.constant 0 : index
    %c0_25 = arith.constant 0 : index
    %40 = vector.load %arg9[%c0_24, %c0_25] : memref<256x128xf32, #tpu.memory_space<vmem>>, vector<256x128xf32>
    %cst_26 = arith.constant dense<0.000000e+00> : vector<4x128xf32>
    %41 = tpu.matmul %39, %40, %cst_26 {dimension_numbers = #tpu.dot_dimension_numbers<[1], [0], [0], [1], [0, 0, 1, 1], [], []>} : vector<4x256xf32>, vector<256x128xf32>, vector<4x128xf32> -> vector<4x128xf32>
    %c0_27 = arith.constant 0 : index
    %c0_28 = arith.constant 0 : index
    %42 = vector.load %arg10[%c0_27, %c0_28] : memref<1x128xf32, #tpu.memory_space<vmem>>, vector<1x128xf32>
    %43 = vector.broadcast %42 : vector<1x128xf32> to vector<4x128xf32>
    %44 = arith.addf %41, %43 : vector<4x128xf32>
    %cst_29 = arith.constant 0.000000e+00 : f32
    %45 = vector.broadcast %cst_29 : f32 to vector<4x128xf32>
    %46 = arith.maximumf %44, %45 : vector<4x128xf32>
    %c0_30 = arith.constant 0 : index
    %c0_31 = arith.constant 0 : index
    %47 = vector.load %arg11[%c0_30, %c0_31] : memref<128x64xf32, #tpu.memory_space<vmem>>, vector<128x64xf32>
    %cst_32 = arith.constant dense<0.000000e+00> : vector<4x64xf32>
    %48 = tpu.matmul %46, %47, %cst_32 {dimension_numbers = #tpu.dot_dimension_numbers<[1], [0], [0], [1], [0, 0, 1, 1], [], []>} : vector<4x128xf32>, vector<128x64xf32>, vector<4x64xf32> -> vector<4x64xf32>
    %c0_33 = arith.constant 0 : index
    %c0_34 = arith.constant 0 : index
    %49 = vector.load %arg12[%c0_33, %c0_34] : memref<1x64xf32, #tpu.memory_space<vmem>>, vector<1x64xf32>
    %50 = vector.broadcast %49 : vector<1x64xf32> to vector<4x64xf32>
    %51 = arith.addf %48, %50 : vector<4x64xf32>
    %cst_35 = arith.constant 0.000000e+00 : f32
    %52 = vector.broadcast %cst_35 : f32 to vector<4x64xf32>
    %53 = arith.maximumf %51, %52 : vector<4x64xf32>
    %c0_36 = arith.constant 0 : index
    %c0_37 = arith.constant 0 : index
    %54 = vector.load %arg13[%c0_36, %c0_37] : memref<64x16xf32, #tpu.memory_space<vmem>>, vector<64x16xf32>
    %cst_38 = arith.constant dense<0.000000e+00> : vector<4x16xf32>
    %55 = tpu.matmul %53, %54, %cst_38 {dimension_numbers = #tpu.dot_dimension_numbers<[1], [0], [0], [1], [0, 0, 1, 1], [], []>} : vector<4x64xf32>, vector<64x16xf32>, vector<4x16xf32> -> vector<4x16xf32>
    %c0_39 = arith.constant 0 : index
    %c0_40 = arith.constant 0 : index
    %56 = vector.load %arg14[%c0_39, %c0_40] : memref<1x16xf32, #tpu.memory_space<vmem>>, vector<1x16xf32>
    %57 = vector.broadcast %56 : vector<1x16xf32> to vector<4x16xf32>
    %58 = arith.addf %55, %57 : vector<4x16xf32>
    %cst_41 = arith.constant 0.000000e+00 : f32
    %59 = vector.broadcast %cst_41 : f32 to vector<4x16xf32>
    %60 = arith.maximumf %58, %59 : vector<4x16xf32>
    %c0_42 = arith.constant 0 : index
    %c0_43 = arith.constant 0 : index
    %61 = vector.load %arg15[%c0_42, %c0_43] : memref<16x1xf32, #tpu.memory_space<vmem>>, vector<16x1xf32>
    %cst_44 = arith.constant dense<0.000000e+00> : vector<4x1xf32>
    %62 = tpu.matmul %60, %61, %cst_44 {dimension_numbers = #tpu.dot_dimension_numbers<[1], [0], [0], [1], [0, 0, 1, 1], [], []>} : vector<4x16xf32>, vector<16x1xf32>, vector<4x1xf32> -> vector<4x1xf32>
    %c0_45 = arith.constant 0 : index
    %c0_46 = arith.constant 0 : index
    %63 = vector.load %arg16[%c0_45, %c0_46] : memref<1x1xf32, #tpu.memory_space<vmem>>, vector<1x1xf32>
    %64 = vector.broadcast %63 : vector<1x1xf32> to vector<4x1xf32>
    %65 = arith.addf %62, %64 : vector<4x1xf32>
    %c0_47 = arith.constant 0 : index
    %c0_48 = arith.constant 0 : index
    %66 = vector.load %arg17[%c0_47, %c0_48] : memref<4x1xf32, #tpu.memory_space<vmem>>, vector<4x1xf32>
    tpu.vector_store %arg17[%c0_47, %c0_48], %65 {strides = array<i32>} : memref<4x1xf32, #tpu.memory_space<vmem>>, vector<4x1xf32>,
    return
  }
  func.func @transform_0(%arg0: i32) -> (i32, i32, i32) {
    %c0_i32 = arith.constant 0 : i32
    %c0_i32_0 = arith.constant 0 : i32
    %c0_i32_1 = arith.constant 0 : i32
    return %arg0, %c0_i32, %c0_i32_0 : i32, i32, i32
  }
  func.func @transform_1(%arg0: i32) -> (i32, i32, i32) {
    %c0_i32 = arith.constant 0 : i32
    %c0_i32_0 = arith.constant 0 : i32
    %c0_i32_1 = arith.constant 0 : i32
    %c0_i32_2 = arith.constant 0 : i32
    return %c0_i32, %c0_i32_0, %c0_i32_1 : i32, i32, i32
  }
  func.func @transform_2(%arg0: i32) -> (i32, i32) {
    %c0_i32 = arith.constant 0 : i32
    %c0_i32_0 = arith.constant 0 : i32
    %c0_i32_1 = arith.constant 0 : i32
    return %c0_i32, %c0_i32_0 : i32, i32
  }
  func.func @transform_3(%arg0: i32) -> (i32, i32) {
    %c0_i32 = arith.constant 0 : i32
    %c0_i32_0 = arith.constant 0 : i32
    %c0_i32_1 = arith.constant 0 : i32
    return %c0_i32, %c0_i32_0 : i32, i32
  }
  func.func @transform_4(%arg0: i32) -> (i32, i32) {
    %c0_i32 = arith.constant 0 : i32
    %c0_i32_0 = arith.constant 0 : i32
    %c0_i32_1 = arith.constant 0 : i32
    return %c0_i32, %c0_i32_0 : i32, i32
  }
  func.func @transform_5(%arg0: i32) -> (i32, i32) {
    %c0_i32 = arith.constant 0 : i32
    %c0_i32_0 = arith.constant 0 : i32
    %c0_i32_1 = arith.constant 0 : i32
    return %c0_i32, %c0_i32_0 : i32, i32
  }
  func.func @transform_6(%arg0: i32) -> (i32, i32) {
    %c0_i32 = arith.constant 0 : i32
    %c0_i32_0 = arith.constant 0 : i32
    %c0_i32_1 = arith.constant 0 : i32
    return %c0_i32, %c0_i32_0 : i32, i32
  }
  func.func @transform_7(%arg0: i32) -> (i32, i32) {
    %c0_i32 = arith.constant 0 : i32
    %c0_i32_0 = arith.constant 0 : i32
    %c0_i32_1 = arith.constant 0 : i32
    return %c0_i32, %c0_i32_0 : i32, i32
  }
  func.func @transform_8(%arg0: i32) -> (i32, i32) {
    %c0_i32 = arith.constant 0 : i32
    %c0_i32_0 = arith.constant 0 : i32
    %c0_i32_1 = arith.constant 0 : i32
    return %c0_i32, %c0_i32_0 : i32, i32
  }
  func.func @transform_9(%arg0: i32) -> (i32, i32) {
    %c0_i32 = arith.constant 0 : i32
    %c0_i32_0 = arith.constant 0 : i32
    %c0_i32_1 = arith.constant 0 : i32
    return %c0_i32, %c0_i32_0 : i32, i32
  }
  func.func @transform_10(%arg0: i32) -> (i32, i32) {
    %c0_i32 = arith.constant 0 : i32
    %c0_i32_0 = arith.constant 0 : i32
    %c0_i32_1 = arith.constant 0 : i32
    return %c0_i32, %c0_i32_0 : i32, i32
  }
  func.func @transform_11(%arg0: i32) -> (i32, i32) {
    %c0_i32 = arith.constant 0 : i32
    %c0_i32_0 = arith.constant 0 : i32
    %c0_i32_1 = arith.constant 0 : i32
    return %c0_i32, %c0_i32_0 : i32, i32
  }
  func.func @transform_12(%arg0: i32) -> (i32, i32) {
    %c0_i32 = arith.constant 0 : i32
    %c0_i32_0 = arith.constant 0 : i32
    %c0_i32_1 = arith.constant 0 : i32
    return %c0_i32, %c0_i32_0 : i32, i32
  }
  func.func @transform_13(%arg0: i32) -> (i32, i32) {
    %c0_i32 = arith.constant 0 : i32
    %c0_i32_0 = arith.constant 0 : i32
    %c0_i32_1 = arith.constant 0 : i32
    return %c0_i32, %c0_i32_0 : i32, i32
  }
  func.func @transform_14(%arg0: i32) -> (i32, i32) {
    %c0_i32 = arith.constant 0 : i32
    %c0_i32_0 = arith.constant 0 : i32
    %c0_i32_1 = arith.constant 0 : i32
    return %c0_i32, %c0_i32_0 : i32, i32
  }
  func.func @transform_15(%arg0: i32) -> (i32, i32) {
    %c0_i32 = arith.constant 0 : i32
    %c0_i32_0 = arith.constant 0 : i32
    %c0_i32_1 = arith.constant 0 : i32
    return %c0_i32, %c0_i32_0 : i32, i32
  }
  func.func @transform_16(%arg0: i32) -> (i32, i32) {
    %c0_i32 = arith.constant 0 : i32
    %c0_i32_0 = arith.constant 0 : i32
    return %arg0, %c0_i32 : i32, i32
  }
}

</mosaic_0001>

<bundles_post_ra>
// kernel: tpu_custom_call.1
= control target key start
LH: loop header
LB: loop body
LE: loop exit
PB: predicated region body
PF: predicated region fallthrough
CT: control target
= control target key end

     0   :  { %s5368_s0 = inlined_call_operand.hbm [shape: bf16[4,8,1024], index: 0, kind: input, shape index: {}]   ;;  %s5369_s1 = inlined_call_operand.hbm [shape: f32[1,1,1024], index: 1, kind: input, shape index: {}]   ;;  %s5370_s2 = inlined_call_operand.hbm [shape: f32[1,1024], index: 2, kind: input, shape index: {}]   ;;  %s5371_s3 = inlined_call_operand.hbm [shape: f32[1,1024], index: 3, kind: input, shape index: {}]   ;;  %s5372_s4 = inlined_call_operand.hbm [shape: f32[1024,512], index: 4, kind: input, shape index: {}]   ;;  %s5373_s5 = inlined_call_operand.hbm [shape: f32[1,512], index: 5, kind: input, shape index: {}]   ;;  %s5374_s6 = inlined_call_operand.hbm [shape: f32[512,256], index: 6, kind: input, shape index: {}]   ;;  %s5375_s7 = inlined_call_operand.hbm [shape: f32[1,256], index: 7, kind: input, shape index: {}]   ;;  %s5376_s8 = inlined_call_operand.hbm [shape: f32[256,128], index: 8, kind: input, shape index: {}]   ;;  %s5377_s9 = inlined_call_operand.hbm [shape: f32[1,128], index: 9, kind: input, shape index: {}]   ;;  %s5378_s10 = inlined_call_operand.vmem [shape: f32[128,64], index: 10, kind: input, shape index: {}]   ;;  %s5379_s11 = inlined_call_operand.hbm [shape: f32[1,64], index: 11, kind: input, shape index: {}]   ;;  %s5380_s12 = inlined_call_operand.vmem [shape: f32[64,16], index: 12, kind: input, shape index: {}]   ;;  %s5381_s13 = inlined_call_operand.hbm [shape: f32[1,16], index: 13, kind: input, shape index: {}]   ;;  %s5382_s14 = inlined_call_operand.vmem [shape: f32[16,1], index: 14, kind: input, shape index: {}]   ;;  %s5383_s15 = inlined_call_operand.<no memory space> [shape: f32[1,1], index: 15, kind: input, shape index: {}]   ;;  %s5384_s16 = inlined_call_operand.vmem [shape: f32[4,1], index: 16, kind: output, shape index: {}]  }
   0x1   :  { %5512 = sst [smem:[#allocation98_spill]] %s5368_s0  ;;  %v21_v0 = vstv %s5383_s15 }
   0x2   :  { %22 = vst [vmem:[#allocation2] sm:$0x1] %v21_v0 }
   0x3   :  { %23 = vsyncpa [#allocation4], 0 }
   0x4   :  { %24 = vsyncpa [#allocation6], 0 }
   0x5   :  { %25 = vsyncpa [#allocation9], 0 }
   0x6   :  { %26 = vsyncpa [#allocation12], 0 }
   0x7   :  { %27 = vsyncpa [#allocation15], 0 }
   0x8   :  { %28 = vsyncpa [#allocation18], 0 }
   0x9   :  { %29 = vsyncpa [#allocation21], 0  ;;  %s3948_s23 = smov [#allocation5]   ;;  %s3949_s25 = smov [#allocation8]  }
   0xa   :  { %s48_s24 = sshll.u32 %s3948_s23, 4  ;;  %s68_s26 = sshll.u32 %s3949_s25, 4  ;;  %s49_s24 = int_to_ptr.vmem [resolvable:$true] %s48_s24  ;;  %s69_s26 = int_to_ptr.vmem [resolvable:$true] %s68_s26 }
   0xb   :  { %s3670_s29 = scalar_lea.hbm %s5369_s1, 128 }
   0xc   :  { %p3671_p0 = scmp.ne.s32.totalorder %s5369_s1, %s3670_s29  ;;  %p3674_p1 = scmp.lt.u32.totalorder %s3670_s29, %s5369_s1 }
   0xe   :  { %p3676_p2 = pnand %p3674_p1, %p3671_p0 }
  0x10   :  { %3679 = shalt.err (!%p3676_p2)
}
  0x11   :  { %s3680_s18 = scalar_lea.vmem %s49_s24, 128  ;;  %p3685_p4 = scmp.lt.s32.totalorder %s49_s24, %s49_s24 }
  0x12   :  { %p3681_p3 = scmp.ne.s32.totalorder %s49_s24, %s3680_s18  ;;  %p3686_p5 = scmp.lt.s32.totalorder %s3680_s18, %s3680_s18 }
  0x14   :  { %p3687_p6 = por %p3686_p5, %p3685_p4 }
  0x16   :  { %p3688_p7 = pnand %p3687_p6, %p3681_p3 }
  0x18   :  { %3691 = shalt.err (!%p3688_p7)
}
  0x19   :  { %51 = dma.hbm_to_vmem [thread:$0]  %s5369_s1, 128, %s49_s24, [#allocation6]  }
  0x1a   :  { %s3692_s23 = scalar_lea.hbm %s5371_s3, 128 }
  0x1b   :  { %p3693_p8 = scmp.ne.s32.totalorder %s5371_s3, %s3692_s23  ;;  %p3696_p9 = scmp.lt.u32.totalorder %s3692_s23, %s5371_s3 }
  0x1d   :  { %p3698_p10 = pnand %p3696_p9, %p3693_p8 }
  0x1f   :  { %3701 = shalt.err (!%p3698_p10)
}
  0x20   :  { %s3702_s30 = scalar_lea.vmem %s69_s26, 128  ;;  %p3707_p12 = scmp.lt.s32.totalorder %s69_s26, %s69_s26 }
  0x21   :  { %p3703_p11 = scmp.ne.s32.totalorder %s69_s26, %s3702_s30  ;;  %p3708_p13 = scmp.lt.s32.totalorder %s3702_s30, %s3702_s30 }
  0x23   :  { %p3709_p0 = por %p3708_p13, %p3707_p12 }
  0x25   :  { %p3710_p1 = pnand %p3709_p0, %p3703_p11 }
  0x27   :  { %3713 = shalt.err (!%p3710_p1)
}
  0x28   :  { %71 = dma.hbm_to_vmem [thread:$0]  %s5371_s3, 128, %s69_s26, [#allocation9]  }
  0x29   :  { %s3950_s15 = smov [#allocation11]   ;;  %s3951_s17 = smov [#allocation14]  }
  0x2a   :  { %s90_s0 = sshll.u32 %s3950_s15, 4  ;;  %s112_s18 = sshll.u32 %s3951_s17, 4  ;;  %s91_s0 = int_to_ptr.vmem [resolvable:$true] %s90_s0  ;;  %s113_s18 = int_to_ptr.vmem [resolvable:$true] %s112_s18 }
  0x2b   :  { %s3714_s21 = scalar_lea.hbm %s5373_s5, 64 }
  0x2c   :  { %p3715_p2 = scmp.ne.s32.totalorder %s5373_s5, %s3714_s21  ;;  %p3718_p3 = scmp.lt.u32.totalorder %s3714_s21, %s5373_s5 }
  0x2e   :  { %p3720_p4 = pnand %p3718_p3, %p3715_p2 }
  0x30   :  { %3723 = shalt.err (!%p3720_p4)
}
  0x31   :  { %s3724_s3 = scalar_lea.vmem %s91_s0, 64  ;;  %p3729_p6 = scmp.lt.s32.totalorder %s91_s0, %s91_s0 }
  0x32   :  { %p3725_p5 = scmp.ne.s32.totalorder %s91_s0, %s3724_s3  ;;  %p3730_p7 = scmp.lt.s32.totalorder %s3724_s3, %s3724_s3 }
  0x34   :  { %p3731_p8 = por %p3730_p7, %p3729_p6 }
  0x36   :  { %p3732_p9 = pnand %p3731_p8, %p3725_p5 }
  0x38   :  { %3735 = shalt.err (!%p3732_p9)
}
  0x39   :  { %93 = dma.hbm_to_vmem [thread:$0]  %s5373_s5, 64, %s91_s0, [#allocation12]  }
  0x3a   :  { %s3736_s1 = scalar_lea.hbm %s5375_s7, 32 }
  0x3b   :  { %p3737_p10 = scmp.ne.s32.totalorder %s5375_s7, %s3736_s1  ;;  %p3740_p11 = scmp.lt.u32.totalorder %s3736_s1, %s5375_s7 }
  0x3d   :  { %p3742_p12 = pnand %p3740_p11, %p3737_p10 }
  0x3f   :  { %3745 = shalt.err (!%p3742_p12)
}
  0x40   :  { %s3746_s20 = scalar_lea.vmem %s113_s18, 32  ;;  %p3751_p0 = scmp.lt.s32.totalorder %s113_s18, %s113_s18 }
  0x41   :  { %p3747_p13 = scmp.ne.s32.totalorder %s113_s18, %s3746_s20  ;;  %p3752_p1 = scmp.lt.s32.totalorder %s3746_s20, %s3746_s20 }
  0x43   :  { %p3753_p2 = por %p3752_p1, %p3751_p0 }
  0x45   :  { %p3754_p3 = pnand %p3753_p2, %p3747_p13 }
  0x47   :  { %3757 = shalt.err (!%p3754_p3)
}
  0x48   :  { %115 = dma.hbm_to_vmem [thread:$0]  %s5375_s7, 32, %s113_s18, [#allocation15]  }
  0x49   :  { %s3952_s21 = smov [#allocation17]   ;;  %s3953_s23 = smov [#allocation3]  }
  0x4a   :  { %s134_s22 = sshll.u32 %s3952_s21, 4  ;;  %s35_s25 = sshll.u32 %s3953_s23, 4  ;;  %s135_s22 = int_to_ptr.vmem [resolvable:$true] %s134_s22  ;;  %s4106_s25 = int_to_ptr.vmem [resolvable:$true] %s35_s25 }
  0x4b   :  { %s3758_s26 = scalar_lea.hbm %s5377_s9, 16 }
  0x4c   :  { %p3759_p4 = scmp.ne.s32.totalorder %s5377_s9, %s3758_s26  ;;  %p3762_p5 = scmp.lt.u32.totalorder %s3758_s26, %s5377_s9 }
  0x4e   :  { %p3764_p6 = pnand %p3762_p5, %p3759_p4 }
  0x50   :  { %3767 = shalt.err (!%p3764_p6)
}
  0x51   :  { %s3768_s7 = scalar_lea.vmem %s135_s22, 16  ;;  %s3772_s18 = scalar_lea.vmem %s135_s22, 32 }
  0x52   :  { %p3769_p7 = scmp.ne.s32.totalorder %s135_s22, %s3768_s7  ;;  %p3773_p8 = scmp.lt.s32.totalorder %s135_s22, %s135_s22 }
  0x53   :  { %p3774_p9 = scmp.lt.s32.totalorder %s3772_s18, %s3768_s7 }
  0x55   :  { %p3775_p10 = por %p3774_p9, %p3773_p8 }
  0x57   :  { %p3776_p11 = pnand %p3775_p10, %p3769_p7 }
  0x59   :  { %3779 = shalt.err (!%p3776_p11)
}
  0x5a   :  { %137 = dma.hbm_to_vmem [thread:$0]  %s5377_s9, 16, %s135_s22, [#allocation18]  }
  0x5b   :  { %s5513_s20 = sld [smem:[#allocation98_spill]] }
  0x61   :  { %s3780_s5 = scalar_lea.hbm %s5513_s20, 2048 }
  0x62   :  { %p3781_p12 = scmp.ne.s32.totalorder %s5513_s20, %s3780_s5  ;;  %p3784_p13 = scmp.lt.u32.totalorder %s3780_s5, %s5513_s20 }
  0x64   :  { %p3786_p0 = pnand %p3784_p13, %p3781_p12 }
  0x66   :  { %3789 = shalt.err (!%p3786_p0)
}
  0x67   :  { %s3790_s3 = scalar_lea.vmem %s4106_s25, 2048  ;;  %p3795_p2 = scmp.lt.s32.totalorder %s4106_s25, %s4106_s25 }
  0x68   :  { %p3791_p1 = scmp.ne.s32.totalorder %s4106_s25, %s3790_s3  ;;  %p3796_p3 = scmp.lt.s32.totalorder %s3790_s3, %s3790_s3 }
  0x6a   :  { %p3797_p4 = por %p3796_p3, %p3795_p2 }
  0x6c   :  { %p3798_p5 = pnand %p3797_p4, %p3791_p1 }
  0x6e   :  { %3801 = shalt.err (!%p3798_p5)
}
  0x6f   :  { %s3954_s9 = smov 512   ;;  %s3955_s22 = smov 32  }
  0x70   :  { %41 = dma.hbm_to_vmem [thread:$0]  %s5513_s20, 2048, %s4106_s25, [#allocation4], %s3954_s9, %s3954_s9, %s3955_s22  }
  0x71   :  { %s3956_s29 = smov [#allocation7]   ;;  %s3957_s1 = smov [#allocation10]  }
  0x72   :  { %s58_s30 = sshll.u32 %s3956_s29, 4  ;;  %s77_s7 = sshll.u32 %s3957_s1, 4  ;;  %s59_s30 = int_to_ptr.vmem [resolvable:$true] %s58_s30  ;;  %s4140_s7 = int_to_ptr.vmem [resolvable:$true] %s77_s7 }
  0x73   :  { %s3802_s15 = scalar_lea.hbm %s5370_s2, 128 }
  0x74   :  { %p3803_p6 = scmp.ne.s32.totalorder %s5370_s2, %s3802_s15  ;;  %p3806_p7 = scmp.lt.u32.totalorder %s3802_s15, %s5370_s2 }
  0x76   :  { %p3808_p8 = pnand %p3806_p7, %p3803_p6 }
  0x78   :  { %3811 = shalt.err (!%p3808_p8)
}
  0x79   :  { %s3812_s25 = scalar_lea.vmem %s59_s30, 128  ;;  %p3817_p10 = scmp.lt.s32.totalorder %s59_s30, %s59_s30 }
  0x7a   :  { %p3813_p9 = scmp.ne.s32.totalorder %s59_s30, %s3812_s25  ;;  %p3818_p11 = scmp.lt.s32.totalorder %s3812_s25, %s3812_s25 }
  0x7c   :  { %p3819_p12 = por %p3818_p11, %p3817_p10 }
  0x7e   :  { %p3820_p13 = pnand %p3819_p12, %p3813_p9 }
  0x80   :  { %3823 = shalt.err (!%p3820_p13)
}
  0x81   :  { %61 = dma.hbm_to_vmem [thread:$0]  %s5370_s2, 128, %s59_s30, [#allocation6]  }
  0x82   :  { %s3824_s3 = scalar_lea.hbm %s5372_s4, 65536 }
  0x83   :  { %p3825_p0 = scmp.ne.s32.totalorder %s5372_s4, %s3824_s3  ;;  %p3828_p1 = scmp.lt.u32.totalorder %s3824_s3, %s5372_s4 }
  0x85   :  { %p3830_p2 = pnand %p3828_p1, %p3825_p0 }
  0x87   :  { %3833 = shalt.err (!%p3830_p2)
}
  0x88   :  { %s3834_s18 = scalar_lea.vmem %s4140_s7, 65536  ;;  %p3839_p4 = scmp.lt.s32.totalorder %s4140_s7, %s4140_s7 }
  0x89   :  { %p3835_p3 = scmp.ne.s32.totalorder %s4140_s7, %s3834_s18  ;;  %p3840_p5 = scmp.lt.s32.totalorder %s3834_s18, %s3834_s18 }
  0x8b   :  { %p3841_p6 = por %p3840_p5, %p3839_p4 }
  0x8d   :  { %p3842_p7 = pnand %p3841_p6, %p3835_p3 }
  0x8f   :  { %3845 = shalt.err (!%p3842_p7)
}
  0x90   :  { %83 = dma.hbm_to_vmem [thread:$0]  %s5372_s4, 65536, %s4140_s7, [#allocation9], %s3954_s9, %s3954_s9, %s3955_s22  }
  0x91   :  { %s3958_s24 = smov [#allocation13]   ;;  %s3846_s5 = scalar_lea.hbm %s5374_s6, 16384 }
  0x92   :  { %s99_s15 = sshll.u32 %s3958_s24, 4  ;;  %p3847_p8 = scmp.ne.s32.totalorder %s5374_s6, %s3846_s5  ;;  %s100_s15 = int_to_ptr.vmem [resolvable:$true] %s99_s15 }
  0x93   :  { %p3850_p9 = scmp.lt.u32.totalorder %s3846_s5, %s5374_s6 }
  0x95   :  { %p3852_p10 = pnand %p3850_p9, %p3847_p8 }
  0x97   :  { %3855 = shalt.err (!%p3852_p10)
}
  0x98   :  { %s3856_s23 = scalar_lea.vmem %s100_s15, 16384  ;;  %p3861_p12 = scmp.lt.s32.totalorder %s100_s15, %s100_s15 }
  0x99   :  { %p3857_p11 = scmp.ne.s32.totalorder %s100_s15, %s3856_s23  ;;  %p3862_p13 = scmp.lt.s32.totalorder %s3856_s23, %s3856_s23 }
  0x9b   :  { %p3863_p0 = por %p3862_p13, %p3861_p12 }
  0x9d   :  { %p3864_p1 = pnand %p3863_p0, %p3857_p11 }
  0x9f   :  { %3867 = shalt.err (!%p3864_p1)
}
  0xa0   :  { %s3959_s4 = smov 256   ;;  %s3960_s9 = smov 16  }
  0xa1   :  { %105 = dma.hbm_to_vmem [thread:$0]  %s5374_s6, 16384, %s100_s15, [#allocation12], %s3959_s4, %s3959_s4, %s3960_s9  }
  0xa2   :  { %s3961_s27 = smov [#allocation16]   ;;  %s3868_s29 = scalar_lea.hbm %s5376_s8, 4096 }
  0xa3   :  { %s121_s3 = sshll.u32 %s3961_s27, 4  ;;  %p3869_p2 = scmp.ne.s32.totalorder %s5376_s8, %s3868_s29  ;;  %s122_s3 = int_to_ptr.vmem [resolvable:$true] %s121_s3 }
  0xa4   :  { %p3872_p3 = scmp.lt.u32.totalorder %s3868_s29, %s5376_s8 }
  0xa6   :  { %p3874_p4 = pnand %p3872_p3, %p3869_p2 }
  0xa8   :  { %3877 = shalt.err (!%p3874_p4)
}
  0xa9   :  { %s3878_s24 = scalar_lea.vmem %s122_s3, 4096  ;;  %p3883_p6 = scmp.lt.s32.totalorder %s122_s3, %s122_s3 }
  0xaa   :  { %p3879_p5 = scmp.ne.s32.totalorder %s122_s3, %s3878_s24  ;;  %p3884_p7 = scmp.lt.s32.totalorder %s3878_s24, %s3878_s24 }
  0xac   :  { %p3885_p8 = por %p3884_p7, %p3883_p6 }
  0xae   :  { %p3886_p9 = pnand %p3885_p8, %p3879_p5 }
  0xb0   :  { %3889 = shalt.err (!%p3886_p9)
}
  0xb1   :  { %s3962_s6 = smov 128   ;;  %s3963_s15 = smov 8  }
  0xb2   :  { %127 = dma.hbm_to_vmem [thread:$0]  %s5376_s8, 4096, %s122_s3, [#allocation15], %s3962_s6, %s3962_s6, %s3963_s15  }
  0xb3   :  { %s3964_s5 = smov [#allocation19]   ;;  %s3965_s25 = smov [#allocation20]  }
  0xb4   :  { %s146_s0 = sshll.u32 %s3964_s5, 4  ;;  %s158_s20 = sshll.u32 %s3965_s25, 4  ;;  %s147_s0 = int_to_ptr.vmem [resolvable:$true] %s146_s0  ;;  %s159_s20 = int_to_ptr.vmem [resolvable:$true] %s158_s20 }
  0xb5   :  { %s3890_s4 = scalar_lea.hbm %s5379_s11, 16 }
  0xb6   :  { %p3891_p10 = scmp.ne.s32.totalorder %s5379_s11, %s3890_s4  ;;  %p3894_p11 = scmp.lt.u32.totalorder %s3890_s4, %s5379_s11 }
  0xb8   :  { %p3896_p12 = pnand %p3894_p11, %p3891_p10 }
  0xba   :  { %3899 = shalt.err (!%p3896_p12)
}
  0xbb   :  { %s3900_s8 = scalar_lea.vmem %s147_s0, 16  ;;  %s3904_s3 = scalar_lea.vmem %s147_s0, 32 }
  0xbc   :  { %p3901_p13 = scmp.ne.s32.totalorder %s147_s0, %s3900_s8  ;;  %p3905_p0 = scmp.lt.s32.totalorder %s147_s0, %s147_s0 }
  0xbd   :  { %p3906_p1 = scmp.lt.s32.totalorder %s3904_s3, %s3900_s8 }
  0xbf   :  { %p3907_p2 = por %p3906_p1, %p3905_p0 }
  0xc1   :  { %p3908_p3 = pnand %p3907_p2, %p3901_p13 }
  0xc3   :  { %3911 = shalt.err (!%p3908_p3)
}
  0xc4   :  { %149 = dma.hbm_to_vmem [thread:$0]  %s5379_s11, 16, %s147_s0, [#allocation18]  }
  0xc5   :  { %s3912_s18 = scalar_lea.hbm %s5381_s13, 16 }
  0xc6   :  { %p3913_p4 = scmp.ne.s32.totalorder %s5381_s13, %s3912_s18  ;;  %p3916_p5 = scmp.lt.u32.totalorder %s3912_s18, %s5381_s13 }
  0xc8   :  { %p3918_p6 = pnand %p3916_p5, %p3913_p4 }
  0xca   :  { %3921 = shalt.err (!%p3918_p6)
}
  0xcb   :  { %s3922_s15 = scalar_lea.vmem %s159_s20, 16  ;;  %s3926_s17 = scalar_lea.vmem %s159_s20, 32 }
  0xcc   :  { %p3923_p7 = scmp.ne.s32.totalorder %s159_s20, %s3922_s15  ;;  %p3927_p8 = scmp.lt.s32.totalorder %s159_s20, %s159_s20 }
  0xcd   :  { %p3928_p9 = scmp.lt.s32.totalorder %s3926_s17, %s3922_s15 }
  0xcf   :  { %p3929_p10 = por %p3928_p9, %p3927_p8 }
  0xd1   :  { %p3930_p11 = pnand %p3929_p10, %p3923_p7 }
  0xd3   :  { %3933 = shalt.err (!%p3930_p11)
}
  0xd4   :  { %161 = dma.hbm_to_vmem [thread:$0]  %s5381_s13, 16, %s159_s20, [#allocation21]  }
  0xd5   :  { %3934 = dma.done.wait [#allocation4], 2048  }
  0xd6   :  { %3935 = vsyncadd [#allocation4], 4294965248 }
  0xd7   :  { %3936 = dma.done.wait [#allocation6], 256  }
  0xd8   :  { %3937 = vsyncadd [#allocation6], 4294967040 }
  0xd9   :  { %3938 = dma.done.wait [#allocation9], 65664  }
  0xda   :  { %3939 = vsyncadd [#allocation9], 4294901632 }
  0xdb   :  { %3940 = dma.done.wait [#allocation12], 16448  }
  0xdc   :  { %3941 = vsyncadd [#allocation12], 4294950848 }
  0xdd   :  { %3942 = dma.done.wait [#allocation15], 4128  }
  0xde   :  { %3943 = vsyncadd [#allocation15], 4294963168 }
  0xdf   :  { %3944 = dma.done.wait [#allocation18], 32  }
  0xe0   :  { %3945 = vsyncadd [#allocation18], 4294967264 }
  0xe1   :  { %3946 = dma.done.wait [#allocation21], 16  }
  0xe2   :  { %3947 = vsyncadd [#allocation21], 4294967280  ;;  %v252_v1 = vlaneseq  ;;  %v4237_v7 = vld [vmem:[#allocation3] sm:$0xff]  ;;  %v4239_v8 = vld [vmem:[#allocation3 + $0x8] sm:$0xff]  ;;  %vm386_vm0 = vcmask 1041409   ;;  %vm388_vm1 = vcmask 1042434  }
  0xe3   :  { %v4244_v10 = vld [vmem:[#allocation3 + $0x10] sm:$0xff]  ;;  %v5398_v11 = vunpack.c.l.bf16 %v4237_v7  ;;  %v5394_v12 = vunpack.c.h.bf16 %v4237_v7  ;;  %v5396_v13 = vunpack.c.l.bf16 %v4239_v8  ;;  %v250_v14 = vld [vmem:[#allocation5] sm:$0xff]  ;;  %v5392_v15 = vunpack.c.h.bf16 %v4239_v8  ;;  %v4253_v17 = vld [vmem:[#allocation3 + $0x18] sm:$0xff] }
  0xe4   :  { %v4223_v2 = vshrl.u32 %v252_v1, 7  ;;  %5519 = vst [vmem:[#allocation34_spill] sm:$0xff] %v4244_v10  ;;  %5520 = vst [vmem:[#allocation35_spill] sm:$0xff] %v4253_v17  ;;  %v5388_v22 = vunpack.c.l.bf16 %v4244_v10  ;;  %v4277_v26 = vld [vmem:[#allocation3 + $0x40] sm:$0xff]  ;;  %v4279_v27 = vld [vmem:[#allocation3 + $0x48] sm:$0xff]  ;;  %v5391_v28 = vunpack.c.h.bf16 %v4244_v10  ;;  %v5386_v32 = vunpack.c.l.bf16 %v4253_v17 }
  0xe5   :  { %v5387_v33 = vunpack.c.h.bf16 %v4253_v17  ;;  %v4299_v36 = vld [vmem:[#allocation3 + $0x50] sm:$0xff]  ;;  %v4301_v38 = vld [vmem:[#allocation3 + $0x58] sm:$0xff]  ;;  %v5399_v39 = vunpack.c.l.bf16 %v4277_v26  ;;  %v5413_v40 = vunpack.c.h.bf16 %v4277_v26  ;;  %v5411_v41 = vunpack.c.l.bf16 %v4279_v27  ;;  %v4323_v50 = vld [vmem:[#allocation3 + $0x20] sm:$0xff] }
  0xe6   :  { %v4226_v3 = vsub.s32 0, %v4223_v2  ;;  %v4229_v4 = vsub.s32 1, %v4223_v2  ;;  %v4232_v5 = vsub.s32 2, %v4223_v2  ;;  %v4235_v6 = vsub.s32 3, %v4223_v2  ;;  %5523 = vst [vmem:[#allocation38_spill] sm:$0xff] %v4301_v38  ;;  %v4325_v51 = vld [vmem:[#allocation3 + $0x28] sm:$0xff] }
  0xe7   :  { %v4242_v9 = vsub.s32 4, %v4223_v2  ;;  %v4251_v16 = vsub.s32 5, %v4223_v2  ;;  %v4272_v24 = vsub.s32 6, %v4223_v2  ;;  %v4275_v25 = vsub.s32 7, %v4223_v2  ;;  %v4339_v60 = vld [vmem:[#allocation3 + $0x30] sm:$0xff]  ;;  %v4589_v17 = vld [vmem:[#allocation10 + $0x520] sm:$0xff] }
  0xe8   :  { %5514 = vst [vmem:[#allocation29_spill] sm:$0xff] %v4226_v3  ;;  %5515 = vst [vmem:[#allocation30_spill] sm:$0xff] %v4229_v4  ;;  %v4256_v18 = vrot.slane %v250_v14, %v4226_v3  ;;  %v4259_v19 = vrot.slane %v250_v14, %v4229_v4  ;;  %v4262_v20 = vrot.slane %v250_v14, %v4232_v5  ;;  %v5397_v45 = vunpack.c.h.bf16 %v4279_v27 }
  0xe9   :  { %5516 = vst [vmem:[#allocation31_spill] sm:$0xff] %v4232_v5  ;;  %5517 = vst [vmem:[#allocation32_spill] sm:$0xff] %v4235_v6  ;;  %v4265_v21 = vrot.slane %v250_v14, %v4235_v6  ;;  %v4269_v23 = vrot.slane %v250_v14, %v4242_v9  ;;  %v4294_v34 = vrot.slane %v250_v14, %v4251_v16  ;;  %v5389_v47 = vunpack.c.l.bf16 %v4299_v36 }
  0xea   :  { %5518 = vst [vmem:[#allocation33_spill] sm:$0xff] %v4242_v9  ;;  %5521 = vst [vmem:[#allocation36_spill] sm:$0xff] %v4272_v24  ;;  %v292_v29 = vmul.f32 %v4256_v18, %v5398_v11  ;;  %v293_v30 = vmul.f32 %v4259_v19, %v5394_v12  ;;  %v294_v31 = vmul.f32 %v4262_v20, %v5396_v13  ;;  %v5390_v53 = vunpack.c.h.bf16 %v4299_v36  ;;  %v4388_v12 = vld [vmem:[#allocation3 + $0x70] sm:$0xff] }
  0xeb   :  { %5522 = vst [vmem:[#allocation37_spill] sm:$0xff] %v4275_v25  ;;  %v295_v35 = vmul.f32 %v4265_v21, %v5392_v15  ;;  %v4307_v42 = vrot.slane %v250_v14, %v4272_v24  ;;  %v4310_v43 = vrot.slane %v250_v14, %v4275_v25  ;;  %v296_v44 = vmul.f32 %v4269_v23, %v5388_v22  ;;  %v4591_v25 = vld [vmem:[#allocation10 + $0x510] sm:$0xff] }
  0xec   :  { %v324_v37 = vadd.f32 %v293_v30, %v292_v29  ;;  %v308_v48 = vmul.f32 %v4256_v18, %v5399_v39  ;;  %v309_v49 = vmul.f32 %v4259_v19, %v5413_v40  ;;  %v297_v52 = vmul.f32 %v4294_v34, %v5391_v28  ;;  %5524 = vst [vmem:[#allocation39_spill] sm:$0xff] %v4339_v60  ;;  %v4559_v40 = vld [vmem:[#allocation10 + $0x4f0] sm:$0xff] }
  0xed   :  { %v5393_v54 = vunpack.c.l.bf16 %v4301_v38  ;;  %v310_v55 = vmul.f32 %v4262_v20, %v5411_v41  ;;  %v5395_v57 = vunpack.c.h.bf16 %v4301_v38  ;;  %v311_v58 = vmul.f32 %v4265_v21, %v5397_v45  ;;  %5526 = vst [vmem:[#allocation41_spill] sm:$0xff] %v4388_v12  ;;  %v4555_v41 = vld [vmem:[#allocation10 + $0x4e0] sm:$0xff]  ;;  %5542 = vst [vmem:[#allocation57_spill] sm:$0xff] %v4559_v40 }
  0xee   :  { %v325_v46 = vadd.f32 %v324_v37, %v294_v31  ;;  %v342_v59 = vadd.f32 %v309_v49, %v308_v48  ;;  %v5417_v61 = vunpack.c.l.bf16 %v4323_v50  ;;  %v5416_v62 = vunpack.c.h.bf16 %v4323_v50  ;;  %5540 = vst [vmem:[#allocation55_spill] sm:$0xff] %v4555_v41  ;;  %5550 = vst [vmem:[#allocation65_spill] sm:$0xff] %v4589_v17  ;;  %v4687_v17 = vld [vmem:[#allocation10 + $0x5e8] sm:$0xff] }
  0xef   :  { %v5415_v63 = vunpack.c.l.bf16 %v4325_v51  ;;  %v5414_v0 = vunpack.c.h.bf16 %v4325_v51  ;;  %v298_v14 = vmul.f32 %v4307_v42, %v5386_v32  ;;  %v312_v30 = vmul.f32 %v4269_v23, %v5389_v47  ;;  %5551 = vst [vmem:[#allocation66_spill] sm:$0xff] %v4591_v25  ;;  %5577 = vst [vmem:[#allocation88_spill] sm:$0xff] %v4687_v17 }
  0xf0   :  { %v326_v56 = vadd.f32 %v325_v46, %v295_v35  ;;  %v343_v31 = vadd.f32 %v342_v59, %v310_v55  ;;  %v299_v35 = vmul.f32 %v4310_v43, %v5387_v33  ;;  %v5400_v37 = vunpack.c.l.bf16 %v4339_v60  ;;  %v4366_v59 = vld [vmem:[#allocation3 + $0x38] sm:$0xff]  ;;  %v4371_v33 = vld [vmem:[#allocation3 + $0x68] sm:$0xff] }
  0xf1   :  { %v300_v46 = vmul.f32 %v4256_v18, %v5417_v61  ;;  %v301_v48 = vmul.f32 %v4259_v19, %v5416_v62  ;;  %v313_v55 = vmul.f32 %v4294_v34, %v5390_v53  ;;  %5525 = vst [vmem:[#allocation40_spill] sm:$0xff] %v4366_v59  ;;  %v302_v32 = vmul.f32 %v4262_v20, %v5415_v63  ;;  %v4565_v62 = vld [vmem:[#allocation10 + $0x508] sm:$0xff] }
  0xf2   :  { %v327_v29 = vadd.f32 %v326_v56, %v296_v44  ;;  %v4361_v44 = vld [vmem:[#allocation3 + $0x60] sm:$0xff]  ;;  %v344_v56 = vadd.f32 %v343_v31, %v311_v58  ;;  %v314_v22 = vmul.f32 %v4307_v42, %v5393_v54  ;;  %v303_v58 = vmul.f32 %v4265_v21, %v5414_v0  ;;  %5543 = vst [vmem:[#allocation58_spill] sm:$0xff] %v4565_v62 }
  0xf3   :  { %v333_v53 = vadd.f32 %v301_v48, %v300_v46  ;;  %v5409_v28 = vunpack.c.l.bf16 %v4361_v44  ;;  %v5402_v15 = vunpack.c.l.bf16 %v4366_v59  ;;  %v304_v54 = vmul.f32 %v4269_v23, %v5400_v37  ;;  %v4567_v61 = vld [vmem:[#allocation10 + $0x528] sm:$0xff] }
  0xf4   :  { %v328_v49 = vadd.f32 %v327_v29, %v297_v52  ;;  %v315_v52 = vmul.f32 %v4310_v43, %v5395_v57  ;;  %v5412_v29 = vunpack.c.h.bf16 %v4339_v60  ;;  %v345_v47 = vadd.f32 %v344_v56, %v312_v30  ;;  %v4410_v56 = vld [vmem:[#allocation3 + $0x78] sm:$0xff]  ;;  %5544 = vst [vmem:[#allocation59_spill] sm:$0xff] %v4567_v61 }
  0xf5   :  { %v5408_v57 = vunpack.c.h.bf16 %v4361_v44  ;;  %v5410_v13 = vunpack.c.l.bf16 %v4371_v33  ;;  %v334_v39 = vadd.f32 %v333_v53, %v302_v32  ;;  %v5404_v30 = vunpack.c.h.bf16 %v4366_v59  ;;  %5527 = vst [vmem:[#allocation42_spill] sm:$0xff] %v4410_v56  ;;  %v4593_v59 = vld [vmem:[#allocation10 + $0x530] sm:$0xff] }
  0xf6   :  { %v329_v31 = vadd.f32 %v328_v49, %v298_v14  ;;  %v346_v11 = vadd.f32 %v345_v47, %v313_v55  ;;  %v5407_v14 = vunpack.c.h.bf16 %v4371_v33  ;;  %v305_v46 = vmul.f32 %v4294_v34, %v5412_v29  ;;  %v4557_v29 = vld [vmem:[#allocation10 + $0x4d0] sm:$0xff]  ;;  %5552 = vst [vmem:[#allocation67_spill] sm:$0xff] %v4593_v59  ;;  %v4711_v59 = vld [vmem:[#allocation10 + $0x5e0] sm:$0xff] }
  0xf7   :  { %v316_v48 = vmul.f32 %v4256_v18, %v5409_v28  ;;  %v317_v49 = vmul.f32 %v4259_v19, %v5408_v57  ;;  %v335_v47 = vadd.f32 %v334_v39, %v303_v58  ;;  %v5405_v32 = vunpack.c.l.bf16 %v4388_v12  ;;  %5541 = vst [vmem:[#allocation56_spill] sm:$0xff] %v4557_v29  ;;  %v4663_v29 = vld [vmem:[#allocation10 + $0x5a0] sm:$0xff]  ;;  %5583 = vst [vmem:[#allocation92_spill] sm:$0xff] %v4711_v59 }
  0xf8   :  { %v330_v45 = vadd.f32 %v329_v31, %v299_v35  ;;  %v347_v35 = vadd.f32 %v346_v11, %v314_v22  ;;  %v318_v53 = vmul.f32 %v4262_v20, %v5410_v13  ;;  %v306_v55 = vmul.f32 %v4307_v42, %v5402_v15  ;;  %v904_v15 = vld [vmem:[#allocation10 + $0x70] sm:$0xff]  ;;  %v4553_v13 = vld [vmem:[#allocation10 + $0x4c0] sm:$0xff]  ;;  %5571 = vst [vmem:[#allocation84_spill] sm:$0xff] %v4663_v29 }
  0xf9   :  { %v5406_v18 = vunpack.c.h.bf16 %v4388_v12  ;;  %v336_v37 = vadd.f32 %v335_v47, %v304_v54  ;;  %v319_v11 = vmul.f32 %v4265_v21, %v5407_v14  ;;  %v351_v19 = vadd.f32 %v317_v49, %v316_v48  ;;  %5539 = vst [vmem:[#allocation54_spill] sm:$0xff] %v4553_v13 }
  0xfa   :  { %331 = vadd.xlane.f32.xlu0 %v330_v45  ;;  %v348_v31 = vadd.f32 %v347_v35, %v315_v52  ;;  %v307_v22 = vmul.f32 %v4310_v43, %v5404_v30  ;;  %v5401_v39 = vunpack.c.l.bf16 %v4410_v56  ;;  %v320_v45 = vmul.f32 %v4269_v23, %v5405_v32  ;;  %v925_v30 = vld [vmem:[#allocation10 + $0x118] sm:$0xff] }
  0xfb   :  { %v337_v20 = vadd.f32 %v336_v37, %v305_v46  ;;  %v352_v58 = vadd.f32 %v351_v19, %v318_v53  ;;  %v5403_v54 = vunpack.c.h.bf16 %v4410_v56  ;;  %v321_v21 = vmul.f32 %v4294_v34, %v5406_v18  ;;  %v929_v32 = vld [vmem:[#allocation10 + $0x138] sm:$0xff]  ;;  %v4605_v56 = vld [vmem:[#allocation10 + $0x548] sm:$0xff] }
  0xfc   :  { %349 = vadd.xlane.f32.xlu1 %v348_v31  ;;  %v322_v37 = vmul.f32 %v4307_v42, %v5401_v39  ;;  %vm390_vm2 = vcmask 1043459   ;;  %vm393_vm3 = vcmask 60416   ;;  %v892_v39 = vld [vmem:[#allocation10 + $0x10] sm:$0xff]  ;;  %5554 = vst [vmem:[#allocation69_spill] sm:$0xff] %v4605_v56  ;;  %v5565_v63 = vunpack.c.h.bf16 %v4323_v50 }
  0xfd   :  { %v338_v52 = vadd.f32 %v337_v20, %v306_v55  ;;  %v353_v48 = vadd.f32 %v352_v58, %v319_v11  ;;  %v323_v23 = vmul.f32 %v4310_v43, %v5403_v54  ;;  %v369_v55 = vand.u32 127, %v252_v1 }
  0xfe   :  { %v5572_v40 = vunpack.c.l.bf16 %v4325_v51  ;;  %v5578_v62 = vunpack.c.h.bf16 %v4277_v26  ;;  %v5588_v25 = vunpack.c.l.bf16 %v4277_v26  ;;  %v5591_v26 = vunpack.c.l.bf16 %v4239_v8 }
  0xff   :  { %v339_v49 = vadd.f32 %v338_v52, %v307_v22  ;;  %v354_v46 = vadd.f32 %v353_v48, %v320_v45  ;;  %v4435_v34 = vsub.s32 %v369_v55, %v4223_v2  ;;  %vm3968_vm4 = vmmov 0  }
 0x100   :  { %vm2587_vm5 = vcmask 523264   ;;  %vm2671_vm6 = vcmask 130048   ;;  %vm2745_vm7 = vcmask 3072  }
 0x101   :  { %340 = vadd.xlane.f32.xlu0 %v339_v49  ;;  %v355_v35 = vadd.f32 %v354_v46, %v321_v21  ;;  %v3966_v46 = vmov 0  }
 0x102   :  { %3643 = vset.pattern.permute.xlu0 %v3966_v46  ;;  %3642 = vset.pattern.permute.xlu1 %v3966_v46 }
 0x103   :  { %v356_v47 = vadd.f32 %v355_v35, %v322_v37 }
 0x105   :  { %v357_v53 = vadd.f32 %v356_v47, %v323_v23 }
 0x107   :  { %358 = vadd.xlane.f32.xlu1 %v357_v53 }
 0x187   :  { %v332_v31 = vpop.xlane.xlu0 %331 }
 0x188   :  { %3644 = vtanh.f32 %v332_v31 }
 0x189   :  { %v350_v11 = vpop.xlane.xlu1 %349 }
 0x18e   :  { %v341_v19 = vpop.xlane.xlu0 %340 }
 0x18f   :  { %3646 = vtanh.f32 %v341_v19 }
 0x190   :  { %3648 = vtanh.f32 %v350_v11 }
 0x192   :  { %v3645_v22 = vpop.eup %3644 }
 0x193   :  { %v373_v45 = vrot.slane %v3645_v22, %v4435_v34 }
 0x194   :  { %v359_v42 = vpop.xlane.xlu1 %358 }
 0x195   :  { %3650 = vtanh.f32 %v359_v42 }
 0x199   :  { %v3647_v20 = vpop.eup %3646 }
 0x19a   :  { %v3649_v43 = vpop.eup %3648  ;;  %v377_v58 = vrot.slane %v3647_v20, %v4435_v34 }
 0x19b   :  { %v381_v2 = vrot.slane %v3649_v43, %v4435_v34 }
 0x19c   :  { %v387_v1 = vsel %vm386_vm0, %v377_v58, %v373_v45 }
 0x19d   :  { %v389_v21 = vsel %vm388_vm1, %v381_v2, %v387_v1 }
 0x19f   :  { %v3651_v52 = vpop.eup %3650 }
 0x1a0   :  { %v385_v48 = vrot.slane %v3651_v52, %v4435_v34 }
 0x1a2   :  { %v391_v49 = vsel %vm390_vm2, %v385_v48, %v389_v21 }
 0x1a3   :  { %v394_v37 = vsel %vm393_vm3, %v391_v49, -inf }
 0x1a4   :  { %395 = vmax.xlane.f32.xlu0 %v394_v37 }
 0x231   :  { %v396_v23 = vpop.xlane.xlu0 %395 }
 0x232   :  { %v401_v35 = vrot.slane %v396_v23, %v4226_v3  ;;  %v405_v47 = vrot.slane %v396_v23, %v4229_v4  ;;  %v409_v53 = vrot.slane %v396_v23, %v4232_v5  ;;  %v413_v55 = vrot.slane %v396_v23, %v4235_v6 }
 0x234   :  { %v418_v31 = vsub.f32 %v3645_v22, %v401_v35  ;;  %v419_v11 = vsub.f32 %v3647_v20, %v405_v47  ;;  %v420_v19 = vsub.f32 %v3649_v43, %v409_v53  ;;  %v421_v58 = vsub.f32 %v3651_v52, %v413_v55 }
 0x236   :  { %v422_v42 = vmul.f32 1.442695, %v418_v31  ;;  %v424_v45 = vmul.f32 1.442695, %v419_v11  ;;  %v426_v1 = vmul.f32 1.442695, %v420_v19 }
 0x237   :  { %v428_v2 = vmul.f32 1.442695, %v421_v58  ;;  %v891_v19 = vld [vmem:[#allocation10 + $0x8] sm:$0xff] }
 0x238   :  { %3652 = vpow2.f32 %v422_v42  ;;  %v895_v42 = vld [vmem:[#allocation10 + $0x28] sm:$0xff] }
 0x239   :  { %3654 = vpow2.f32 %v424_v45  ;;  %v893_v45 = vld [vmem:[#allocation10 + $0x18] sm:$0xff]  ;;  %v2889_v58 = vpack.c.bf16 %v895_v42, %v891_v19  ;;  %v900_v19 = vld [vmem:[#allocation10 + $0x50] sm:$0xff] }
 0x23a   :  { %3656 = vpow2.f32 %v426_v1  ;;  %v897_v1 = vld [vmem:[#allocation10 + $0x38] sm:$0xff] }
 0x23b   :  { %3658 = vpow2.f32 %v428_v2  ;;  %v890_v2 = vld [vmem:[#allocation10] sm:$0xff]  ;;  %2890 = vmatprep.subr.bf16.mxu0 %v2889_v58 }
 0x242   :  { %v4449_v21 = vpop.eup %3652 }
 0x243   :  { %v4451_v48 = vpop.eup %3654  ;;  %435 = vperm.xlu1 %3642, %v4449_v21  }
 0x244   :  { %438 = vperm.xlu0 %3643, %v4451_v48   ;;  %v4455_v22 = vpop.eup %3656 }
 0x245   :  { %v4458_v20 = vpop.eup %3658 }
 0x247   :  { %441 = vperm.xlu1 %3642, %v4455_v22  }
 0x24b   :  { %444 = vperm.xlu1 %3642, %v4458_v20  }
 0x2c2   :  { %v436_v43 = vpop.permute.xlu1 %435 }
 0x2c3   :  { %v439_v52 = vpop.permute.xlu0 %438  ;;  %v449_v46 = vrot.slane %v436_v43, %v4435_v34  ;;  %v894_v43 = vld [vmem:[#allocation10 + $0x20] sm:$0xff] }
 0x2c4   :  { %v453_v37 = vrot.slane %v439_v52, %v4435_v34  ;;  %v3145_v52 = vpack.c.bf16 %v897_v1, %v893_v45  ;;  %v907_v45 = vld [vmem:[#allocation10 + $0x88] sm:$0xff] }
 0x2c5   :  { %v911_v1 = vld [vmem:[#allocation10 + $0xa8] sm:$0xff] }
 0x2c6   :  { %v442_v49 = vpop.permute.xlu1 %441  ;;  %v462_v47 = vsel %vm386_vm0, %v453_v37, %v449_v46  ;;  %v896_v37 = vld [vmem:[#allocation10 + $0x30] sm:$0xff]  ;;  %v899_v46 = vld [vmem:[#allocation10 + $0x48] sm:$0xff]  ;;  %3146 = vmatprep.subr.bf16.mxu1 %v3145_v52  ;;  %v2897_v58 = vpack.c.bf16 %v911_v1, %v907_v45  ;;  %v910_v52 = vld [vmem:[#allocation10 + $0xa0] sm:$0xff] }
 0x2c7   :  { %v457_v23 = vrot.slane %v442_v49, %v4435_v34  ;;  %v2891_v49 = vpack.c.bf16 %v894_v43, %v890_v2  ;;  %v3151_v2 = vpack.c.bf16 %v904_v15, %v900_v19  ;;  %v913_v43 = vld [vmem:[#allocation10 + $0xb8] sm:$0xff]  ;;  %v918_v15 = vld [vmem:[#allocation10 + $0xe0] sm:$0xff]  ;;  %v916_v45 = vld [vmem:[#allocation10 + $0xd0] sm:$0xff] }
 0x2c8   :  { %v920_v1 = vld [vmem:[#allocation10 + $0xf0] sm:$0xff] }
 0x2c9   :  { %v463_v55 = vsel %vm388_vm1, %v457_v23, %v462_v47  ;;  %v903_v23 = vld [vmem:[#allocation10 + $0x68] sm:$0xff]  ;;  %v905_v47 = vld [vmem:[#allocation10 + $0x78] sm:$0xff]  ;;  %2892 = vmatpush1.bf16.msra.mxu0 %v2891_v49  ;;  %v908_v49 = vld [vmem:[#allocation10 + $0x90] sm:$0xff] }
 0x2ca   :  { %v445_v35 = vpop.permute.xlu1 %444 }
 0x2cb   :  { %v461_v53 = vrot.slane %v445_v35, %v4435_v34  ;;  %v3147_v34 = vpack.c.bf16 %v896_v37, %v892_v39  ;;  %v901_v35 = vld [vmem:[#allocation10 + $0x58] sm:$0xff]  ;;  %v906_v37 = vld [vmem:[#allocation10 + $0x80] sm:$0xff] }
 0x2cc   :  { %v909_v39 = vld [vmem:[#allocation10 + $0x98] sm:$0xff] }
 0x2cd   :  { %v464_v31 = vsel %vm390_vm2, %v461_v53, %v463_v55  ;;  %v2893_v53 = vpack.c.bf16 %v903_v23, %v899_v46  ;;  %v3149_v55 = vpack.c.bf16 %v905_v47, %v901_v35  ;;  %3148 = vmatpush1.bf16.msra.mxu1 %v3147_v34  ;;  %v3153_v54 = vpack.c.bf16 %v913_v43, %v909_v39  ;;  %v912_v46 = vld [vmem:[#allocation10 + $0xb0] sm:$0xff]  ;;  %v915_v35 = vld [vmem:[#allocation10 + $0xc8] sm:$0xff]  ;;  %v917_v34 = vld [vmem:[#allocation10 + $0xd8] sm:$0xff] }
 0x2ce   :  { %v466_v11 = vsel %vm393_vm3, %v464_v31, 0.0  ;;  %v898_v31 = vld [vmem:[#allocation10 + $0x40] sm:$0xff]  ;;  %v2899_v23 = vpack.c.bf16 %v910_v52, %v906_v37  ;;  %v919_v47 = vld [vmem:[#allocation10 + $0xe8] sm:$0xff]  ;;  %v3159_v37 = vpack.c.bf16 %v920_v1, %v916_v45  ;;  %v936_v1 = vld [vmem:[#allocation10 + $0x170] sm:$0xff] }
 0x2cf   :  { %467 = vadd.xlane.f32.xlu1 %v466_v11  ;;  %v902_v11 = vld [vmem:[#allocation10 + $0x60] sm:$0xff]  ;;  %2894 = vmatprep.subr.bf16.mxu0 %v2893_v53  ;;  %v921_v53 = vld [vmem:[#allocation10 + $0xf8] sm:$0xff]  ;;  %v923_v39 = vld [vmem:[#allocation10 + $0x108] sm:$0xff] }
 0x2d0   :  { %v2895_v42 = vpack.c.bf16 %v902_v11, %v898_v31  ;;  %3150 = vmatprep.subr.bf16.mxu1 %v3149_v55  ;;  %v3155_v31 = vpack.c.bf16 %v912_v46, %v908_v49  ;;  %v2901_v11 = vpack.c.bf16 %v919_v47, %v915_v35  ;;  %v914_v55 = vld [vmem:[#allocation10 + $0xc0] sm:$0xff]  ;;  %v3157_v19 = vpack.c.bf16 %v921_v53, %v917_v34  ;;  %v927_v43 = vld [vmem:[#allocation10 + $0x128] sm:$0xff]  ;;  %v924_v49 = vld [vmem:[#allocation10 + $0x110] sm:$0xff] }
 0x2d1   :  { %3152 = vmatpush1.bf16.msra.mxu1 %v3151_v2  ;;  %v2905_v2 = vpack.c.bf16 %v927_v43, %v923_v39  ;;  %v926_v52 = vld [vmem:[#allocation10 + $0x120] sm:$0xff]  ;;  %v3161_v46 = vpack.c.bf16 %v929_v32, %v925_v30  ;;  %v928_v35 = vld [vmem:[#allocation10 + $0x130] sm:$0xff]  ;;  %v935_v47 = vld [vmem:[#allocation10 + $0x168] sm:$0xff] }
 0x2d2   :  { %2896 = vmatpush1.bf16.msra.mxu0 %v2895_v42  ;;  %3154 = vmatprep.subr.bf16.mxu1 %v3153_v54  ;;  %v2903_v42 = vpack.c.bf16 %v918_v15, %v914_v55  ;;  %v931_v54 = vld [vmem:[#allocation10 + $0x148] sm:$0xff]  ;;  %v933_v34 = vld [vmem:[#allocation10 + $0x158] sm:$0xff]  ;;  %v932_v15 = vld [vmem:[#allocation10 + $0x150] sm:$0xff] }
 0x2d3   :  { %2898 = vmatprep.subr.bf16.mxu0 %v2897_v58  ;;  %v922_v58 = vld [vmem:[#allocation10 + $0x100] sm:$0xff]  ;;  %v937_v53 = vld [vmem:[#allocation10 + $0x178] sm:$0xff]  ;;  %v2909_v55 = vpack.c.bf16 %v935_v47, %v931_v54  ;;  %v939_v39 = vld [vmem:[#allocation10 + $0x188] sm:$0xff] }
 0x2d4   :  { %v2907_v18 = vpack.c.bf16 %v926_v52, %v922_v58  ;;  %v3165_v45 = vpack.c.bf16 %v937_v53, %v933_v34  ;;  %v941_v30 = vld [vmem:[#allocation10 + $0x198] sm:$0xff]  ;;  %v940_v52 = vld [vmem:[#allocation10 + $0x190] sm:$0xff]  ;;  %v947_v54 = vld [vmem:[#allocation10 + $0x1c8] sm:$0xff] }
 0x2d5   :  { %3156 = vmatpush1.bf16.msra.mxu1 %v3155_v31  ;;  %v930_v31 = vld [vmem:[#allocation10 + $0x140] sm:$0xff]  ;;  %v945_v32 = vld [vmem:[#allocation10 + $0x1b8] sm:$0xff] }
 0x2d6   :  { %2900 = vmatpush1.bf16.msra.mxu0 %v2899_v23  ;;  %3158 = vmatprep.subr.bf16.mxu1 %v3157_v19  ;;  %v3163_v23 = vpack.c.bf16 %v928_v35, %v924_v49  ;;  %v943_v19 = vld [vmem:[#allocation10 + $0x1a8] sm:$0xff]  ;;  %v3169_v49 = vpack.c.bf16 %v945_v32, %v941_v30  ;;  %v944_v35 = vld [vmem:[#allocation10 + $0x1b0] sm:$0xff]  ;;  %v949_v47 = vld [vmem:[#allocation10 + $0x1d8] sm:$0xff] }
 0x2d7   :  { %2902 = vmatprep.subr.bf16.mxu0 %v2901_v11  ;;  %v934_v11 = vld [vmem:[#allocation10 + $0x160] sm:$0xff]  ;;  %v2913_v58 = vpack.c.bf16 %v943_v19, %v939_v39  ;;  %v953_v34 = vld [vmem:[#allocation10 + $0x1f8] sm:$0xff] }
 0x2d8   :  { %v2911_v43 = vpack.c.bf16 %v934_v11, %v930_v31  ;;  %v3173_v11 = vpack.c.bf16 %v953_v34, %v949_v47  ;;  %v954_v47 = vld [vmem:[#allocation10 + $0x200] sm:$0xff] }
 0x2d9   :  { %3160 = vmatpush1.bf16.msra.mxu1 %v3159_v37  ;;  %v938_v37 = vld [vmem:[#allocation10 + $0x180] sm:$0xff] }
 0x2da   :  { %2904 = vmatpush1.bf16.msra.mxu0 %v2903_v42  ;;  %3162 = vmatprep.subr.bf16.mxu1 %v3161_v46  ;;  %v3167_v42 = vpack.c.bf16 %v936_v1, %v932_v15  ;;  %v951_v46 = vld [vmem:[#allocation10 + $0x1e8] sm:$0xff]  ;;  %v948_v15 = vld [vmem:[#allocation10 + $0x1d0] sm:$0xff]  ;;  %v958_v34 = vld [vmem:[#allocation10 + $0x220] sm:$0xff] }
 0x2db   :  { %2906 = vmatprep.subr.bf16.mxu0 %v2905_v2  ;;  %v942_v2 = vld [vmem:[#allocation10 + $0x1a0] sm:$0xff]  ;;  %v2917_v31 = vpack.c.bf16 %v951_v46, %v947_v54  ;;  %v952_v1 = vld [vmem:[#allocation10 + $0x1f0] sm:$0xff]  ;;  %v961_v46 = vld [vmem:[#allocation10 + $0x238] sm:$0xff] }
 0x2dc   :  { %v2915_v53 = vpack.c.bf16 %v942_v2, %v938_v37  ;;  %v3175_v39 = vpack.c.bf16 %v952_v1, %v948_v15  ;;  %v967_v1 = vld [vmem:[#allocation10 + $0x268] sm:$0xff] }
 0x2dd   :  { %3164 = vmatpush1.bf16.msra.mxu1 %v3163_v23  ;;  %v946_v23 = vld [vmem:[#allocation10 + $0x1c0] sm:$0xff] }
 0x2de   :  { %2908 = vmatpush1.bf16.msra.mxu0 %v2907_v18  ;;  %3166 = vmatprep.subr.bf16.mxu1 %v3165_v45  ;;  %v3171_v18 = vpack.c.bf16 %v944_v35, %v940_v52  ;;  %v955_v52 = vld [vmem:[#allocation10 + $0x208] sm:$0xff]  ;;  %v957_v35 = vld [vmem:[#allocation10 + $0x218] sm:$0xff] }
 0x2df   :  { %2910 = vmatprep.subr.bf16.mxu0 %v2909_v55  ;;  %v950_v55 = vld [vmem:[#allocation10 + $0x1e0] sm:$0xff] }
 0x2e0   :  { %v2919_v45 = vpack.c.bf16 %v950_v55, %v946_v23  ;;  %v956_v23 = vld [vmem:[#allocation10 + $0x210] sm:$0xff] }
 0x2e1   :  { %3168 = vmatpush1.bf16.msra.mxu1 %v3167_v42  ;;  %v960_v55 = vld [vmem:[#allocation10 + $0x230] sm:$0xff] }
 0x2e2   :  { %2912 = vmatpush1.bf16.msra.mxu0 %v2911_v43  ;;  %3170 = vmatprep.subr.bf16.mxu1 %v3169_v49  ;;  %v959_v49 = vld [vmem:[#allocation10 + $0x228] sm:$0xff]  ;;  %v3179_v15 = vpack.c.bf16 %v960_v55, %v956_v23  ;;  %v972_v23 = vld [vmem:[#allocation10 + $0x290] sm:$0xff] }
 0x2e3   :  { %2914 = vmatprep.subr.bf16.mxu0 %v2913_v58  ;;  %v2921_v54 = vpack.c.bf16 %v959_v49, %v955_v52  ;;  %v971_v49 = vld [vmem:[#allocation10 + $0x288] sm:$0xff]  ;;  %v976_v55 = vld [vmem:[#allocation10 + $0x2b0] sm:$0xff] }
 0x2e5   :  { %3172 = vmatpush1.bf16.msra.mxu1 %v3171_v18  ;;  %v3177_v18 = vpack.c.bf16 %v961_v46, %v957_v35  ;;  %v975_v35 = vld [vmem:[#allocation10 + $0x2a8] sm:$0xff] }
 0x2e6   :  { %2916 = vmatpush1.bf16.msra.mxu0 %v2915_v53  ;;  %3174 = vmatprep.subr.bf16.mxu1 %v3173_v11  ;;  %v2929_v46 = vpack.c.bf16 %v975_v35, %v971_v49  ;;  %v993_v49 = vld [vmem:[#allocation10 + $0x338] sm:$0xff]  ;;  %v986_v35 = vld [vmem:[#allocation10 + $0x300] sm:$0xff] }
 0x2e7   :  { %2918 = vmatprep.subr.bf16.mxu0 %v2917_v31  ;;  %v2923_v31 = vpack.c.bf16 %v958_v34, %v954_v47  ;;  %v977_v47 = vld [vmem:[#allocation10 + $0x2b8] sm:$0xff]  ;;  %v970_v34 = vld [vmem:[#allocation10 + $0x280] sm:$0xff] }
 0x2e9   :  { %3176 = vmatpush1.bf16.msra.mxu1 %v3175_v39 }
 0x2ea   :  { %2920 = vmatpush1.bf16.msra.mxu0 %v2919_v45  ;;  %3178 = vmatprep.subr.bf16.mxu1 %v3177_v18  ;;  %v965_v45 = vld [vmem:[#allocation10 + $0x258] sm:$0xff] }
 0x2eb   :  { %2922 = vmatprep.subr.bf16.mxu0 %v2921_v54  ;;  %v973_v54 = vld [vmem:[#allocation10 + $0x298] sm:$0xff] }
 0x2ec   :  { %v3185_v18 = vpack.c.bf16 %v977_v47, %v973_v54  ;;  %v990_v54 = vld [vmem:[#allocation10 + $0x320] sm:$0xff] }
 0x2ed   :  { %3180 = vmatpush1.bf16.msra.mxu1 %v3179_v15  ;;  %v979_v15 = vld [vmem:[#allocation10 + $0x2c8] sm:$0xff]  ;;  %v2939_v47 = vpack.c.bf16 %v990_v54, %v986_v35 }
 0x2ee   :  { %2924 = vmatpush1.bf16.msra.mxu0 %v2923_v31  ;;  %v1011_v35 = vld [vmem:[#allocation10 + $0x3c8] sm:$0xff] }
 0x2ef   :  { %v1015_v54 = vld [vmem:[#allocation10 + $0x3e8] sm:$0xff] }
 0x35c   :  { %v468_v19 = vpop.xlane.xlu1 %467 }
 0x35d   :  { %v477_v30 = vrot.slane %v468_v19, %v4229_v4  ;;  %v481_v32 = vrot.slane %v468_v19, %v4232_v5  ;;  %v473_v43 = vrot.slane %v468_v19, %v4226_v3  ;;  %v485_v42 = vrot.slane %v468_v19, %v4235_v6  ;;  %v969_v19 = vld [vmem:[#allocation10 + $0x278] sm:$0xff] }
 0x35f   :  { %3660 = vrcp.f32 %v477_v30  ;;  %v962_v30 = vld [vmem:[#allocation10 + $0x240] sm:$0xff] }
 0x360   :  { %3662 = vrcp.f32 %v481_v32  ;;  %v966_v32 = vld [vmem:[#allocation10 + $0x260] sm:$0xff] }
 0x361   :  { %3664 = vrcp.f32 %v473_v43  ;;  %v3181_v43 = vpack.c.bf16 %v969_v19, %v965_v45  ;;  %v978_v19 = vld [vmem:[#allocation10 + $0x2c0] sm:$0xff] }
 0x362   :  { %3666 = vrcp.f32 %v485_v42  ;;  %v2927_v42 = vpack.c.bf16 %v966_v32, %v962_v30  ;;  %v982_v30 = vld [vmem:[#allocation10 + $0x2e0] sm:$0xff] }
 0x363   :  { %3182 = vmatprep.subr.bf16.mxu1 %v3181_v43  ;;  %v984_v43 = vld [vmem:[#allocation10 + $0x2f0] sm:$0xff] }
 0x369   :  { %v3661_v58 = vpop.eup %3660 }
 0x36a   :  { %v493_v37 = vmul.f32 %v3661_v58, %v4451_v48  ;;  %v3663_v2 = vpop.eup %3662  ;;  %v963_v48 = vld [vmem:[#allocation10 + $0x248] sm:$0xff]  ;;  %v964_v58 = vld [vmem:[#allocation10 + $0x250] sm:$0xff] }
 0x36b   :  { %v495_v53 = vmul.f32 %v3663_v2, %v4455_v22  ;;  %v3665_v11 = vpop.eup %3664  ;;  %v2925_v39 = vpack.c.bf16 %v967_v1, %v963_v48  ;;  %v983_v48 = vld [vmem:[#allocation10 + $0x2e8] sm:$0xff]  ;;  %v981_v1 = vld [vmem:[#allocation10 + $0x2d8] sm:$0xff] }
 0x36c   :  { %505 = vperm.xlu0 %3643, %v493_v37   ;;  %v491_v22 = vmul.f32 %v3665_v11, %v4449_v21  ;;  %v968_v37 = vld [vmem:[#allocation10 + $0x270] sm:$0xff]  ;;  %v3667_v2 = vpop.eup %3666  ;;  %v3187_v11 = vpack.c.bf16 %v976_v55, %v972_v23  ;;  %v2933_v45 = vpack.c.bf16 %v983_v48, %v979_v15  ;;  %v997_v23 = vld [vmem:[#allocation10 + $0x358] sm:$0xff]  ;;  %v994_v48 = vld [vmem:[#allocation10 + $0x340] sm:$0xff] }
 0x36d   :  { %2926 = vmatprep.subr.bf16.mxu0 %v2925_v39  ;;  %v3183_v52 = vpack.c.bf16 %v968_v37, %v964_v58  ;;  %v497_v21 = vmul.f32 %v3667_v2, %v4458_v20  ;;  %v985_v39 = vld [vmem:[#allocation10 + $0x2f8] sm:$0xff]  ;;  %v980_v20 = vld [vmem:[#allocation10 + $0x2d0] sm:$0xff]  ;;  %v987_v58 = vld [vmem:[#allocation10 + $0x308] sm:$0xff] }
 0x36e   :  { %2928 = vmatpush1.bf16.msra.mxu0 %v2927_v42  ;;  %v3189_v32 = vpack.c.bf16 %v985_v39, %v981_v1  ;;  %v3191_v42 = vpack.c.bf16 %v984_v43, %v980_v20  ;;  %v991_v37 = vld [vmem:[#allocation10 + $0x328] sm:$0xff]  ;;  %v989_v2 = vld [vmem:[#allocation10 + $0x318] sm:$0xff]  ;;  %v998_v1 = vld [vmem:[#allocation10 + $0x360] sm:$0xff] }
 0x36f   :  { %3184 = vmatpush1.bf16.msra.mxu1 %v3183_v52  ;;  %2930 = vmatprep.subr.bf16.mxu0 %v2929_v46  ;;  %v2937_v52 = vpack.c.bf16 %v991_v37, %v987_v58  ;;  %v3193_v46 = vpack.c.bf16 %v993_v49, %v989_v2  ;;  %v1001_v55 = vld [vmem:[#allocation10 + $0x378] sm:$0xff]  ;;  %v1000_v39 = vld [vmem:[#allocation10 + $0x370] sm:$0xff]  ;;  %v1006_v2 = vld [vmem:[#allocation10 + $0x3a0] sm:$0xff] }
 0x370   :  { %510 = vperm.xlu0 %3643, %v495_v53   ;;  %v974_v53 = vld [vmem:[#allocation10 + $0x2a0] sm:$0xff]  ;;  %3186 = vmatprep.subr.bf16.mxu1 %v3185_v18  ;;  %v3197_v15 = vpack.c.bf16 %v1001_v55, %v997_v23  ;;  %v1005_v20 = vld [vmem:[#allocation10 + $0x398] sm:$0xff]  ;;  %v1008_v49 = vld [vmem:[#allocation10 + $0x3b0] sm:$0xff] }
 0x371   :  { %v2931_v31 = vpack.c.bf16 %v974_v53, %v970_v34  ;;  %v988_v34 = vld [vmem:[#allocation10 + $0x310] sm:$0xff]  ;;  %v1009_v43 = vld [vmem:[#allocation10 + $0x3b8] sm:$0xff]  ;;  %v1014_v23 = vld [vmem:[#allocation10 + $0x3e0] sm:$0xff] }
 0x372   :  { %v992_v53 = vld [vmem:[#allocation10 + $0x330] sm:$0xff]  ;;  %v3201_v37 = vpack.c.bf16 %v1009_v43, %v1005_v20  ;;  %v4479_v20 = vld [vmem:[#allocation8] sm:$0xff]  ;;  %v4481_v43 = vld [vmem:[#allocation10 + $0x400] sm:$0xff] }
 0x373   :  { %2932 = vmatpush1.bf16.msra.mxu0 %v2931_v31  ;;  %3188 = vmatpush1.bf16.msra.mxu1 %v3187_v11  ;;  %v3195_v18 = vpack.c.bf16 %v992_v53, %v988_v34  ;;  %v999_v31 = vld [vmem:[#allocation10 + $0x368] sm:$0xff]  ;;  %v1017_v34 = vld [vmem:[#allocation10 + $0x3f8] sm:$0xff]  ;;  %v1012_v55 = vld [vmem:[#allocation10 + $0x3d0] sm:$0xff]  ;;  %5529 = vst [vmem:[#allocation44_spill] sm:$0xff] %v4479_v20  ;;  %v4543_v14 = vrot.slane %v4479_v20, %v4226_v3 }
 0x374   :  { %500 = vperm.xlu0 %3643, %v491_v22   ;;  %v2935_v22 = vpack.c.bf16 %v982_v30, %v978_v19  ;;  %2934 = vmatprep.subr.bf16.mxu0 %v2933_v45  ;;  %v996_v45 = vld [vmem:[#allocation10 + $0x350] sm:$0xff]  ;;  %v1003_v19 = vld [vmem:[#allocation10 + $0x388] sm:$0xff]  ;;  %v4551_v28 = vrot.slane %v4479_v20, %v4235_v6  ;;  %v4581_v0 = vrot.slane %v4479_v20, %v4232_v5 }
 0x375   :  { %3190 = vmatprep.subr.bf16.mxu1 %v3189_v32  ;;  %v1007_v30 = vld [vmem:[#allocation10 + $0x3a8] sm:$0xff]  ;;  %v2943_v32 = vpack.c.bf16 %v998_v1, %v994_v48 }
 0x376   :  { %v2945_v58 = vpack.c.bf16 %v1007_v30, %v1003_v19  ;;  %v1019_v1 = vld [vmem:[#allocation10 + $0x408] sm:$0xff]  ;;  %v1025_v30 = vld [vmem:[#allocation10 + $0x438] sm:$0xff]  ;;  %5549 = vst [vmem:[#allocation64_spill] sm:$0xff] %v4581_v0 }
 0x377   :  { %2936 = vmatpush1.bf16.msra.mxu0 %v2935_v22  ;;  %3192 = vmatpush1.bf16.msra.mxu1 %v3191_v42  ;;  %v3199_v22 = vpack.c.bf16 %v1000_v39, %v996_v45  ;;  %v1002_v42 = vld [vmem:[#allocation10 + $0x380] sm:$0xff]  ;;  %v1023_v45 = vld [vmem:[#allocation10 + $0x428] sm:$0xff]  ;;  %v1021_v39 = vld [vmem:[#allocation10 + $0x418] sm:$0xff] }
 0x378   :  { %515 = vperm.xlu0 %3643, %v497_v21   ;;  %v995_v21 = vld [vmem:[#allocation10 + $0x348] sm:$0xff]  ;;  %2938 = vmatprep.subr.bf16.mxu0 %v2937_v52  ;;  %v1004_v52 = vld [vmem:[#allocation10 + $0x390] sm:$0xff]  ;;  %v2953_v19 = vpack.c.bf16 %v1023_v45, %v1019_v1 }
 0x379   :  { %3194 = vmatprep.subr.bf16.mxu1 %v3193_v46  ;;  %v2941_v11 = vpack.c.bf16 %v999_v31, %v995_v21  ;;  %v1013_v46 = vld [vmem:[#allocation10 + $0x3d8] sm:$0xff]  ;;  %v3203_v53 = vpack.c.bf16 %v1008_v49, %v1004_v52  ;;  %v1010_v21 = vld [vmem:[#allocation10 + $0x3c0] sm:$0xff]  ;;  %v4491_v52 = vld [vmem:[#allocation10 + $0x468] sm:$0xff] }
 0x37a   :  { %v3205_v31 = vpack.c.bf16 %v1017_v34, %v1013_v46  ;;  %v4493_v49 = vld [vmem:[#allocation10 + $0x458] sm:$0xff]  ;;  %v4499_v46 = vld [vmem:[#allocation10 + $0x460] sm:$0xff]  ;;  %v4501_v34 = vld [vmem:[#allocation10 + $0x450] sm:$0xff] }
 0x37b   :  { %2940 = vmatpush1.bf16.msra.mxu0 %v2939_v47  ;;  %3196 = vmatpush1.bf16.msra.mxu1 %v3195_v18  ;;  %v2947_v47 = vpack.c.bf16 %v1006_v2, %v1002_v42  ;;  %v2949_v18 = vpack.c.bf16 %v1015_v54, %v1011_v35  ;;  %v4483_v42 = vld [vmem:[#allocation10 + $0x420] sm:$0xff]  ;;  %v4489_v2 = vld [vmem:[#allocation10 + $0x448] sm:$0xff]  ;;  %v4495_v35 = vld [vmem:[#allocation10 + $0x478] sm:$0xff]  ;;  %5531 = vst [vmem:[#allocation46_spill] sm:$0xff] %v4499_v46 }
 0x37c   :  { %2942 = vmatprep.subr.bf16.mxu0 %v2941_v11  ;;  %3198 = vmatprep.subr.bf16.mxu1 %v3197_v15  ;;  %v1016_v11 = vld [vmem:[#allocation10 + $0x3f0] sm:$0xff]  ;;  %v2951_v15 = vpack.c.bf16 %v1014_v23, %v1010_v21  ;;  %v4497_v54 = vld [vmem:[#allocation10 + $0x440] sm:$0xff]  ;;  %v4507_v21 = vld [vmem:[#allocation10 + $0x4a8] sm:$0xff] }
 0x37d   :  { %v3207_v48 = vpack.c.bf16 %v1016_v11, %v1012_v55  ;;  %5530 = vst [vmem:[#allocation45_spill] sm:$0xff] %v4497_v54  ;;  %v4521_v11 = vld [vmem:[#allocation10 + $0x480] sm:$0xff]  ;;  %v4527_v1 = vld [vmem:[#allocation10 + $0x4b0] sm:$0xff]  ;;  %v4529_v45 = vld [vmem:[#allocation10 + $0x4c8] sm:$0xff] }
 0x37e   :  { %5535 = vst [vmem:[#allocation50_spill] sm:$0xff] %v4529_v45  ;;  %v4607_v0 = vld [vmem:[#allocation10 + $0x568] sm:$0xff]  ;;  %v4611_v54 = vld [vmem:[#allocation10 + $0x578] sm:$0xff]  ;;  %v4613_v46 = vld [vmem:[#allocation10 + $0x540] sm:$0xff] }
 0x37f   :  { %2944 = vmatpush1.bf16.msra.mxu0 %v2943_v32  ;;  %3200 = vmatpush1.bf16.msra.mxu1 %v3199_v22  ;;  %v3209_v32 = vpack.c.bf16 %v1025_v30, %v1021_v39  ;;  %v4477_v22 = vld [vmem:[#allocation7] sm:$0xff]  ;;  %v4531_v39 = vld [vmem:[#allocation10 + $0x4e8] sm:$0xff]  ;;  %v4535_v30 = vld [vmem:[#allocation10 + $0x4f8] sm:$0xff]  ;;  %5555 = vst [vmem:[#allocation70_spill] sm:$0xff] %v4607_v0 }
 0x380   :  { %2946 = vmatprep.subr.bf16.mxu0 %v2945_v58  ;;  %3202 = vmatprep.subr.bf16.mxu1 %v3201_v37  ;;  %5528 = vst [vmem:[#allocation43_spill] sm:$0xff] %v4477_v22  ;;  %v4485_v58 = vld [vmem:[#allocation10 + $0x410] sm:$0xff]  ;;  %v4515_v23 = vrot.slane %v4477_v22, %v4229_v4  ;;  %v4519_v55 = vrot.slane %v4477_v22, %v4226_v3  ;;  %5536 = vst [vmem:[#allocation51_spill] sm:$0xff] %v4531_v39  ;;  %v4573_v3 = vld [vmem:[#allocation10 + $0x500] sm:$0xff]  ;;  %v5573_v39 = vunpack.c.h.bf16 %v4325_v51 }
 0x381   :  { %v4487_v37 = vld [vmem:[#allocation10 + $0x430] sm:$0xff]  ;;  %5538 = vst [vmem:[#allocation53_spill] sm:$0xff] %v4535_v30  ;;  %v4547_v57 = vrot.slane %v4477_v22, %v4235_v6  ;;  %v4569_v6 = vld [vmem:[#allocation10 + $0x518] sm:$0xff]  ;;  %5547 = vst [vmem:[#allocation62_spill] sm:$0xff] %v4573_v3  ;;  %v4577_v24 = vrot.slane %v4477_v22, %v4232_v5  ;;  %v4597_v9 = vrot.slane %v4477_v22, %v4251_v16 }
 0x382   :  { %5545 = vst [vmem:[#allocation60_spill] sm:$0xff] %v4569_v6  ;;  %5557 = vst [vmem:[#allocation72_spill] sm:$0xff] %v4611_v54  ;;  %v4617_v22 = vrot.slane %v4479_v20, %v4251_v16  ;;  %v4633_v16 = vld [vmem:[#allocation10 + $0x570] sm:$0xff]  ;;  %v4647_v30 = vld [vmem:[#allocation10 + $0x5a8] sm:$0xff] }
 0x383   :  { %2948 = vmatpush1.bf16.msra.mxu0 %v2947_v47  ;;  %3204 = vmatpush1.bf16.msra.mxu1 %v3203_v53  ;;  %v4503_v47 = vld [vmem:[#allocation10 + $0x470] sm:$0xff]  ;;  %v4505_v53 = vld [vmem:[#allocation10 + $0x488] sm:$0xff]  ;;  %5548 = vst [vmem:[#allocation63_spill] sm:$0xff] %v4577_v24  ;;  %5553 = vst [vmem:[#allocation68_spill] sm:$0xff] %v4597_v9 }
 0x384   :  { %2950 = vmatprep.subr.bf16.mxu0 %v2949_v18  ;;  %3206 = vmatprep.subr.bf16.mxu1 %v3205_v31  ;;  %5532 = vst [vmem:[#allocation47_spill] sm:$0xff] %v4505_v53  ;;  %v4509_v18 = vld [vmem:[#allocation10 + $0x498] sm:$0xff]  ;;  %5558 = vst [vmem:[#allocation73_spill] sm:$0xff] %v4613_v46  ;;  %v4631_v53 = vld [vmem:[#allocation10 + $0x550] sm:$0xff] }
 0x385   :  { %5533 = vst [vmem:[#allocation48_spill] sm:$0xff] %v4509_v18  ;;  %v4511_v31 = vld [vmem:[#allocation10 + $0x4b8] sm:$0xff]  ;;  %5559 = vst [vmem:[#allocation74_spill] sm:$0xff] %v4617_v22  ;;  %v4661_v18 = vld [vmem:[#allocation10 + $0x580] sm:$0xff] }
 0x386   :  { %5534 = vst [vmem:[#allocation49_spill] sm:$0xff] %v4511_v31  ;;  %v4609_v24 = vld [vmem:[#allocation10 + $0x558] sm:$0xff]  ;;  %v4629_v31 = vld [vmem:[#allocation10 + $0x560] sm:$0xff]  ;;  %5562 = vst [vmem:[#allocation77_spill] sm:$0xff] %v4631_v53  ;;  %v5581_v53 = vunpack.c.h.bf16 %v4339_v60 }
 0x387   :  { %2952 = vmatpush1.bf16.msra.mxu0 %v2951_v15  ;;  %3208 = vmatpush1.bf16.msra.mxu1 %v3207_v48  ;;  %v4523_v15 = vld [vmem:[#allocation10 + $0x4a0] sm:$0xff]  ;;  %v4525_v48 = vld [vmem:[#allocation10 + $0x490] sm:$0xff]  ;;  %5556 = vst [vmem:[#allocation71_spill] sm:$0xff] %v4609_v24  ;;  %5561 = vst [vmem:[#allocation76_spill] sm:$0xff] %v4629_v31 }
 0x388   :  { %2954 = vmatprep.subr.bf16.mxu0 %v2953_v19  ;;  %3210 = vmatprep.subr.bf16.mxu1 %v3209_v32  ;;  %v4533_v19 = vld [vmem:[#allocation10 + $0x4d8] sm:$0xff]  ;;  %v4539_v32 = vrot.slane %v4479_v20, %v4229_v4  ;;  %5563 = vst [vmem:[#allocation78_spill] sm:$0xff] %v4633_v16  ;;  %v5564_v20 = vunpack.c.l.bf16 %v4323_v50  ;;  %5567 = vst [vmem:[#allocation80_spill] sm:$0xff] %v4647_v30  ;;  %v4673_v3 = vld [vmem:[#allocation10 + $0x5b0] sm:$0xff] }
 0x389   :  { %5537 = vst [vmem:[#allocation52_spill] sm:$0xff] %v4533_v19  ;;  %v4571_v4 = vld [vmem:[#allocation10 + $0x538] sm:$0xff]  ;;  %v4645_v19 = vld [vmem:[#allocation10 + $0x588] sm:$0xff]  ;;  %5570 = vst [vmem:[#allocation83_spill] sm:$0xff] %v4661_v18 }
 0x38a   :  { %5546 = vst [vmem:[#allocation61_spill] sm:$0xff] %v4571_v4  ;;  %5566 = vst [vmem:[#allocation79_spill] sm:$0xff] %v4645_v19  ;;  %v4649_v45 = vld [vmem:[#allocation10 + $0x598] sm:$0xff]  ;;  %v4709_v19 = vld [vmem:[#allocation10 + $0x5c0] sm:$0xff] }
 0x38b   :  { %5568 = vst [vmem:[#allocation81_spill] sm:$0xff] %v4649_v45  ;;  %v4659_v9 = vld [vmem:[#allocation10 + $0x5b8] sm:$0xff]  ;;  %5575 = vst [vmem:[#allocation86_spill] sm:$0xff] %v4673_v3  ;;  %v5589_v3 = vunpack.c.l.bf16 %v4237_v7 }
 0x38c   :  { %5569 = vst [vmem:[#allocation82_spill] sm:$0xff] %v4659_v9  ;;  %v4698_v46 = vld [vmem:[#allocation10 + $0x5d8] sm:$0xff]  ;;  %5582 = vst [vmem:[#allocation91_spill] sm:$0xff] %v4709_v19  ;;  %v4720_v9 = vld [vmem:[#allocation10 + $0x5d0] sm:$0xff] }
 0x38d   :  { %5579 = vst [vmem:[#allocation89_spill] sm:$0xff] %v4698_v46  ;;  %v4700_v51 = vld [vmem:[#allocation10 + $0x5f8] sm:$0xff]  ;;  %5585 = vst [vmem:[#allocation93_spill] sm:$0xff] %v4720_v9 }
 0x38e   :  { %5580 = vst [vmem:[#allocation90_spill] sm:$0xff] %v4700_v51 }
 0x3eb   :  { %v4619_v5 = vpop.permute.xlu0 %505 }
 0x3ec   :  { %5560 = vst [vmem:[#allocation75_spill] sm:$0xff] %v4619_v5  ;;  %v526_v22 = vmul.f32 %v4619_v5, %v5564_v20  ;;  %v527_v38 = vmul.f32 %v4619_v5, %v5565_v63  ;;  %v528_v13 = vmul.f32 %v4619_v5, %v5572_v40  ;;  %v529_v50 = vmul.f32 %v4619_v5, %v5573_v39  ;;  %v4671_v63 = vld [vmem:[#allocation10 + $0x590] sm:$0xff]  ;;  %v4685_v39 = vld [vmem:[#allocation10 + $0x5c8] sm:$0xff] }
 0x3ed   :  { %5574 = vst [vmem:[#allocation85_spill] sm:$0xff] %v4671_v63  ;;  %5576 = vst [vmem:[#allocation87_spill] sm:$0xff] %v4685_v39  ;;  %v4705_v16 = vmul.f32 %v4619_v5, %v5581_v53  ;;  %v5584_v40 = vunpack.c.l.bf16 %v4279_v27  ;;  %v5590_v39 = vunpack.c.h.bf16 %v4279_v27 }
 0x3ee   :  { %v604_v6 = vrot.slane %v527_v38, 4  ;;  %v598_v4 = vrot.slane %v526_v22, 4  ;;  %v610_v45 = vrot.slane %v528_v13, 4  ;;  %v616_v29 = vrot.slane %v529_v50, 4 }
 0x3ef   :  { %v4675_v20 = vpop.permute.xlu0 %510 }
 0x3f0   :  { %v535_v61 = vmul.f32 %v4675_v20, %v5578_v62  ;;  %v605_v31 = vadd.f32 %v604_v6, %v527_v38  ;;  %v599_v62 = vadd.f32 %v598_v4, %v526_v22  ;;  %v4716_v18 = vmul.f32 %v4675_v20, %v5584_v40  ;;  %v4722_v4 = vld [vmem:[#allocation10 + $0x5f0] sm:$0xff] }
 0x3f1   :  { %5586 = vst [vmem:[#allocation94_spill] sm:$0xff] %v4722_v4  ;;  %v534_v63 = vmul.f32 %v4675_v20, %v5588_v25  ;;  %v4737_v17 = vmul.f32 %v4675_v20, %v5590_v39  ;;  %v5592_v40 = vunpack.c.h.bf16 %v4237_v7  ;;  %v4752_v39 = vadd.f32 %v616_v29, %v529_v50 }
 0x3f2   :  { %v606_v38 = vrot.slane %v605_v31, 2  ;;  %v652_v22 = vrot.slane %v535_v61, 4  ;;  %v600_v53 = vrot.slane %v599_v62, 2  ;;  %v4754_v60 = vadd.f32 %v610_v45, %v528_v13 }
 0x3f3   :  { %v4724_v6 = vpop.permute.xlu0 %500  ;;  %v646_v7 = vrot.slane %v534_v63, 4  ;;  %v5596_v45 = vunpack.c.h.bf16 %v4244_v10 }
 0x3f4   :  { %5587 = vst [vmem:[#allocation95_spill] sm:$0xff] %v4724_v6  ;;  %v518_v30 = vmul.f32 %v4724_v6, %v5589_v3  ;;  %v4744_v25 = vmul.f32 %v4724_v6, %v5591_v26  ;;  %v519_v46 = vmul.f32 %v4724_v6, %v5592_v40  ;;  %v607_v51 = vadd.f32 %v606_v38, %v605_v31 }
 0x3f5   :  { %v653_v59 = vadd.f32 %v652_v22, %v535_v61  ;;  %v5594_v40 = vunpack.c.h.bf16 %v4239_v8  ;;  %v5595_v3 = vunpack.c.l.bf16 %v4371_v33  ;;  %v601_v29 = vadd.f32 %v600_v53, %v599_v62 }
 0x3f6   :  { %v556_v26 = vrot.slane %v519_v46, 4  ;;  %v550_v24 = vrot.slane %v518_v30, 4  ;;  %v4771_v50 = vmul.f32 %v4724_v6, %v5596_v45  ;;  %v5597_v38 = vunpack.c.l.bf16 %v4361_v44 }
 0x3f7   :  { %v4757_v19 = vpop.permute.xlu0 %515  ;;  %v521_v54 = vmul.f32 %v4724_v6, %v5594_v40  ;;  %v5598_v22 = vunpack.c.h.bf16 %v4361_v44  ;;  %v5600_v53 = vunpack.c.h.bf16 %v4388_v12  ;;  %v608_v5 = vrot.slane %v607_v51, 1 }
 0x3f8   :  { %5593 = vst [vmem:[#allocation96_spill] sm:$0xff] %v4757_v19  ;;  %v4765_v31 = vmul.f32 %v4757_v19, %v5595_v3  ;;  %v542_v8 = vmul.f32 %v4757_v19, %v5597_v38  ;;  %v5599_v3 = vunpack.c.h.bf16 %v4371_v33  ;;  %v557_v27 = vadd.f32 %v556_v26, %v519_v46 }
 0x3f9   :  { %v543_v40 = vmul.f32 %v4757_v19, %v5598_v22  ;;  %v4788_v45 = vmul.f32 %v4757_v19, %v5600_v53  ;;  %v654_v13 = vrot.slane %v653_v59, 2  ;;  %v551_v9 = vadd.f32 %v550_v24, %v518_v30 }
 0x3fa   :  { %v4783_v62 = vmul.f32 %v4757_v19, %v5599_v3  ;;  %v558_v44 = vrot.slane %v557_v27, 2  ;;  %v609_v4 = vadd.f32 %v608_v5, %v607_v51  ;;  %v602_v22 = vrot.slane %v601_v29, 1 }
 0x3fb   :  { %5601 = vst [vmem:[#allocation97_spill] sm:$0xff] %v4788_v45  ;;  %v700_v38 = vrot.slane %v543_v40, 4  ;;  %v647_v6 = vadd.f32 %v646_v7, %v534_v63  ;;  %v655_v33 = vadd.f32 %v654_v13, %v653_v59  ;;  %v552_v3 = vrot.slane %v551_v9, 2 }
 0x3fc   :  { %v694_v56 = vrot.slane %v542_v8, 4  ;;  %v559_v0 = vadd.f32 %v558_v44, %v557_v27  ;;  %v793_v12 = vmul.f32 %v4515_v23, %v609_v4  ;;  %v603_v53 = vadd.f32 %v602_v22, %v601_v29 }
 0x3fd   :  { %v701_v10 = vadd.f32 %v700_v38, %v543_v40  ;;  %v648_v19 = vrot.slane %v647_v6, 2  ;;  %v656_v46 = vrot.slane %v655_v33, 1  ;;  %v553_v41 = vadd.f32 %v552_v3, %v551_v9 }
 0x3fe   :  { %v695_v61 = vadd.f32 %v694_v56, %v542_v8  ;;  %v560_v45 = vrot.slane %v559_v0, 1  ;;  %v867_v24 = vadd.f32 %v4539_v32, %v793_v12  ;;  %v792_v5 = vmul.f32 %v4519_v55, %v603_v53 }
 0x3ff   :  { %v702_v26 = vrot.slane %v701_v10, 2  ;;  %v649_v30 = vadd.f32 %v648_v19, %v647_v6  ;;  %v657_v63 = vadd.f32 %v656_v46, %v655_v33  ;;  %v554_v51 = vrot.slane %v553_v41, 1 }
 0x400   :  { %v696_v7 = vrot.slane %v695_v61, 2  ;;  %v561_v13 = vadd.f32 %v560_v45, %v559_v0  ;;  %v1462_v27 = vrot.slane %v867_v24, 7  ;;  %v866_v4 = vadd.f32 %v4543_v14, %v792_v5 }
 0x401   :  { %v703_v59 = vadd.f32 %v702_v26, %v701_v10  ;;  %v650_v40 = vrot.slane %v649_v30, 1  ;;  %v801_v38 = vmul.f32 %v4515_v23, %v657_v63  ;;  %v555_v9 = vadd.f32 %v554_v51, %v553_v41 }
 0x402   :  { %v697_v56 = vadd.f32 %v696_v7, %v695_v61  ;;  %v785_v8 = vmul.f32 %v4515_v23, %v561_v13  ;;  %v1456_v19 = vrot.slane %v866_v4, 7  ;;  %v568_v6 = vrot.slane %v521_v54, 4 }
 0x403   :  { %v704_v29 = vrot.slane %v703_v59, 1  ;;  %v651_v12 = vadd.f32 %v650_v40, %v649_v30  ;;  %v875_v10 = vadd.f32 %v4539_v32, %v801_v38  ;;  %v784_v0 = vmul.f32 %v4519_v55, %v555_v9 }
 0x404   :  { %v698_v22 = vrot.slane %v697_v56, 1  ;;  %v859_v45 = vadd.f32 %v4539_v32, %v785_v8  ;;  %v569_v3 = vadd.f32 %v568_v6, %v521_v54  ;;  %v618_v53 = vrot.slane %v4752_v39, 2 }
 0x405   :  { %v705_v44 = vadd.f32 %v704_v29, %v703_v59  ;;  %v800_v33 = vmul.f32 %v4519_v55, %v651_v12  ;;  %v1464_v61 = vrot.slane %v875_v10, 6  ;;  %v858_v26 = vadd.f32 %v4543_v14, %v784_v0 }
 0x406   :  { %v699_v46 = vadd.f32 %v698_v22, %v697_v56  ;;  %v1463_v24 = vsel %vm386_vm0, %v1462_v27, %v859_v45  ;;  %v570_v5 = vrot.slane %v569_v3, 2  ;;  %v619_v63 = vadd.f32 %v618_v53, %v4752_v39 }
 0x407   :  { %v809_v41 = vmul.f32 %v4515_v23, %v705_v44  ;;  %v874_v30 = vadd.f32 %v4543_v14, %v800_v33  ;;  %v1465_v51 = vsel %vm388_vm1, %v1464_v61, %v1463_v24  ;;  %v1457_v7 = vsel %vm386_vm0, %v1456_v19, %v858_v26 }
 0x408   :  { %v808_v54 = vmul.f32 %v4519_v55, %v699_v46  ;;  %v571_v13 = vadd.f32 %v570_v5, %v569_v3  ;;  %v620_v40 = vrot.slane %v619_v63, 1  ;;  %v5602_v4 = vrot.slane %v4737_v17, 4 }
 0x409   :  { %v883_v59 = vadd.f32 %v4539_v32, %v809_v41  ;;  %v1458_v23 = vrot.slane %v874_v30, 6  ;;  %v712_v39 = vrot.slane %v4783_v62, 4  ;;  %v5603_v32 = vrot.slane %v4744_v25, 4 }
 0x40a   :  { %v665_v27 = vadd.f32 %v5602_v4, %v4737_v17  ;;  %v882_v38 = vadd.f32 %v4543_v14, %v808_v54  ;;  %v572_v56 = vrot.slane %v571_v13, 1  ;;  %v621_v8 = vadd.f32 %v620_v40, %v619_v63 }
 0x40b   :  { %v1466_v29 = vrot.slane %v883_v59, 5  ;;  %v563_v9 = vadd.f32 %v5603_v32, %v4744_v25  ;;  %v1459_v55 = vsel %vm388_vm1, %v1458_v23, %v1457_v7  ;;  %v713_v44 = vadd.f32 %v712_v39, %v4783_v62 }
 0x40c   :  { %v666_v12 = vrot.slane %v665_v27, 2  ;;  %v1460_v6 = vrot.slane %v882_v38, 5  ;;  %v573_v14 = vadd.f32 %v572_v56, %v571_v13  ;;  %v795_v22 = vmul.f32 %v4547_v57, %v621_v8  ;;  %v5612_v38 = vld [vmem:[#allocation45_spill] sm:$0xff]  ;;  %v5616_v8 = vld [vmem:[#allocation47_spill] sm:$0xff] }
 0x40d   :  { %v1467_v19 = vsel %vm390_vm2, %v1466_v29, %v1465_v51  ;;  %v564_v17 = vrot.slane %v563_v9, 2  ;;  %v612_v0 = vrot.slane %v4754_v60, 2  ;;  %v714_v45 = vrot.slane %v713_v44, 2 }
 0x40e   :  { %1576 = vmatprep.mubr.f32.mxu0 %v1467_v19  ;;  %1860 = vmatprep.mubr.f32.mxu1 %v1467_v19  ;;  %v667_v10 = vadd.f32 %v666_v12, %v665_v27  ;;  %v1461_v25 = vsel %vm390_vm2, %v1460_v6, %v1459_v55  ;;  %v5604_v3 = vrot.slane %v4716_v18, 4  ;;  %v787_v41 = vmul.f32 %v4547_v57, %v573_v14  ;;  %v5618_v19 = vld [vmem:[#allocation49_spill] sm:$0xff]  ;;  %v5619_v6 = vld [vmem:[#allocation48_spill] sm:$0xff] }
 0x40f   :  { %v565_v33 = vadd.f32 %v564_v17, %v563_v9  ;;  %1577 = vmatmul.mubr.f32.vlgmr.msra.gmra.mrb[0].mxu0 %v1461_v25  ;;  %1861 = vmatmul.mubr.f32.vlgmr.msra.gmra.mrb[0].mxu1 %v1461_v25  ;;  %v869_v61 = vadd.f32 %v4551_v28, %v795_v22  ;;  %v613_v46 = vadd.f32 %v612_v0, %v4754_v60  ;;  %v5607_v63 = vrot.slane %v4765_v31, 4  ;;  %v5615_v9 = vld [vmem:[#allocation63_spill] sm:$0xff]  ;;  %v5622_v25 = vld [vmem:[#allocation64_spill] sm:$0xff] }
 0x410   :  { %v659_v53 = vadd.f32 %v5604_v3, %v4716_v18  ;;  %v668_v62 = vrot.slane %v667_v10, 1  ;;  %v5605_v26 = vpack.c.bf16 %v4483_v42, %v4481_v43  ;;  %v5606_v24 = vpack.c.bf16 %v4487_v37, %v4485_v58 }
 0x411   :  { %v715_v30 = vadd.f32 %v714_v45, %v713_v44  ;;  %v566_v5 = vrot.slane %v565_v33, 1  ;;  %v707_v59 = vadd.f32 %v5607_v63, %v4765_v31  ;;  %v861_v54 = vadd.f32 %v4551_v28, %v787_v41 }
 0x412   :  { %2956 = vmatpush1.bf16.msra.mxu0 %v5605_v26  ;;  %3212 = vmatpush1.bf16.msra.mxu1 %v5606_v24  ;;  %v660_v18 = vrot.slane %v659_v53, 2  ;;  %v669_v51 = vadd.f32 %v668_v62, %v667_v10  ;;  %v1474_v7 = vrot.slane %v869_v61, 7  ;;  %v5608_v60 = vpack.c.bf16 %v4491_v52, %v4489_v2  ;;  %v5611_v52 = vld [vmem:[#allocation46_spill] sm:$0xff]  ;;  %v5625_v24 = vld [vmem:[#allocation51_spill] sm:$0xff] }
 0x413   :  { %v5609_v43 = vpack.c.bf16 %v4495_v35, %v4493_v49  ;;  %v614_v42 = vrot.slane %v613_v46, 1  ;;  %v716_v58 = vrot.slane %v715_v30, 1  ;;  %v567_v37 = vadd.f32 %v566_v5, %v565_v33  ;;  %v5628_v5 = vld [vmem:[#allocation53_spill] sm:$0xff] }
 0x414   :  { %2958 = vmatprep.subr.bf16.mxu0 %v5608_v60  ;;  %v661_v23 = vadd.f32 %v660_v18, %v659_v53  ;;  %v708_v13 = vrot.slane %v707_v59, 2  ;;  %v803_v40 = vmul.f32 %v4547_v57, %v669_v51  ;;  %v1475_v31 = vsel %vm386_vm0, %v1474_v7, %v861_v54  ;;  %v4896_v60 = vld [vmem:[#allocation10 + $0x618] sm:$0xff] }
 0x415   :  { %3214 = vmatprep.subr.bf16.mxu1 %v5609_v43  ;;  %v615_v4 = vadd.f32 %v614_v42, %v613_v46  ;;  %v5610_v27 = vunpack.c.h.bf16 %v4299_v36  ;;  %v717_v2 = vadd.f32 %v716_v58, %v715_v30  ;;  %v5613_v39 = vpack.c.bf16 %v5611_v52, %v5612_v38  ;;  %v5626_v30 = vld [vmem:[#allocation50_spill] sm:$0xff]  ;;  %v5636_v52 = vld [vmem:[#allocation56_spill] sm:$0xff] }
 0x416   :  { %v5614_v49 = vpack.c.bf16 %v4503_v47, %v4501_v34  ;;  %v662_v35 = vrot.slane %v661_v23, 1  ;;  %v709_v32 = vadd.f32 %v708_v13, %v707_v59  ;;  %v786_v55 = vmul.f32 %v5615_v9, %v567_v37  ;;  %v4898_v43 = vld [vmem:[#allocation10 + $0x638] sm:$0xff] }
 0x417   :  { %v539_v29 = vmul.f32 %v4675_v20, %v5610_v27  ;;  %2960 = vmatpush1.bf16.msra.mxu0 %v5613_v39  ;;  %v877_v56 = vadd.f32 %v4551_v28, %v803_v40  ;;  %v5617_v12 = vpack.c.bf16 %v4507_v21, %v5616_v8  ;;  %v5620_v44 = vpack.c.bf16 %v5618_v19, %v5619_v6  ;;  %v4911_v39 = vld [vmem:[#allocation10 + $0x620] sm:$0xff]  ;;  %v4920_v8 = vld [vmem:[#allocation10 + $0x648] sm:$0xff] }
 0x418   :  { %3216 = vmatpush1.bf16.msra.mxu1 %v5614_v49  ;;  %v794_v17 = vmul.f32 %v5615_v9, %v615_v4  ;;  %v580_v14 = vrot.slane %v4771_v50, 4  ;;  %v5621_v34 = vrot.slane %v4705_v16, 4  ;;  %v811_v10 = vmul.f32 %v4547_v57, %v717_v2  ;;  %v5633_v4 = vld [vmem:[#allocation54_spill] sm:$0xff]  ;;  %v5635_v2 = vld [vmem:[#allocation57_spill] sm:$0xff] }
 0x419   :  { %2962 = vmatprep.subr.bf16.mxu0 %v5617_v12  ;;  %3218 = vmatprep.subr.bf16.mxu1 %v5620_v44  ;;  %v663_v22 = vadd.f32 %v662_v35, %v661_v23  ;;  %v710_v0 = vrot.slane %v709_v32, 1  ;;  %v860_v45 = vadd.f32 %v5622_v25, %v786_v55  ;;  %v1476_v21 = vrot.slane %v877_v56, 6  ;;  %v5631_v23 = vld [vmem:[#allocation97_spill] sm:$0xff]  ;;  %v5703_v55 = vld [vmem:[#allocation87_spill] sm:$0xff] }
 0x41a   :  { %v629_v47 = vadd.f32 %v5621_v34, %v4705_v16  ;;  %v868_v33 = vadd.f32 %v5622_v25, %v794_v17  ;;  %v581_v3 = vadd.f32 %v580_v14, %v4771_v50  ;;  %v885_v62 = vadd.f32 %v4551_v28, %v811_v10  ;;  %v5629_v28 = vld [vmem:[#allocation52_spill] sm:$0xff]  ;;  %v4913_v49 = vld [vmem:[#allocation10 + $0x610] sm:$0xff]  ;;  %v5638_v17 = vld [vmem:[#allocation59_spill] sm:$0xff] }
 0x41b   :  { %v5623_v41 = vpack.c.bf16 %v4523_v15, %v4521_v11  ;;  %v5624_v16 = vpack.c.bf16 %v4527_v1, %v4525_v48  ;;  %v711_v57 = vadd.f32 %v710_v0, %v709_v32  ;;  %v802_v61 = vmul.f32 %v5615_v9, %v663_v22  ;;  %v4890_v48 = vld [vmem:[#allocation10 + $0x608] sm:$0xff]  ;;  %v4918_v56 = vld [vmem:[#allocation10 + $0x630] sm:$0xff] }
 0x41c   :  { %v630_v53 = vrot.slane %v629_v47, 2  ;;  %v676_v46 = vrot.slane %v539_v29, 4  ;;  %v1477_v26 = vsel %vm388_vm1, %v1476_v21, %v1475_v31  ;;  %v5627_v50 = vpack.c.bf16 %v5625_v24, %v5626_v30  ;;  %v4892_v1 = vld [vmem:[#allocation10 + $0x628] sm:$0xff]  ;;  %v5632_v31 = vld [vmem:[#allocation55_spill] sm:$0xff]  ;;  %v5639_v14 = vld [vmem:[#allocation58_spill] sm:$0xff] }
 0x41d   :  { %2964 = vmatpush1.bf16.msra.mxu0 %v5623_v41  ;;  %3220 = vmatpush1.bf16.msra.mxu1 %v5624_v16  ;;  %v5630_v18 = vpack.c.bf16 %v5628_v5, %v5629_v28  ;;  %v1468_v11 = vrot.slane %v868_v33, 7  ;;  %v582_v15 = vrot.slane %v581_v3, 2  ;;  %v1478_v59 = vrot.slane %v885_v62, 5  ;;  %v4922_v12 = vld [vmem:[#allocation10 + $0x668] sm:$0xff]  ;;  %v4937_v21 = vld [vmem:[#allocation10 + $0x640] sm:$0xff]  ;;  %v4944_v16 = vld [vmem:[#allocation10 + $0x650] sm:$0xff] }
 0x41e   :  { %2966 = vmatprep.subr.bf16.mxu0 %v5627_v50  ;;  %v631_v63 = vadd.f32 %v630_v53, %v629_v47  ;;  %v810_v51 = vmul.f32 %v5615_v9, %v711_v57  ;;  %v876_v54 = vadd.f32 %v5622_v25, %v802_v61  ;;  %v677_v7 = vadd.f32 %v676_v46, %v539_v29  ;;  %v4909_v29 = vld [vmem:[#allocation10 + $0x600] sm:$0xff]  ;;  %v5641_v47 = vld [vmem:[#allocation61_spill] sm:$0xff]  ;;  %v5646_v50 = vld [vmem:[#allocation62_spill] sm:$0xff] }
 0x41f   :  { %3222 = vmatprep.subr.bf16.mxu1 %v5630_v18  ;;  %v1469_v42 = vsel %vm386_vm0, %v1468_v11, %v860_v45  ;;  %v583_v58 = vadd.f32 %v582_v15, %v581_v3  ;;  %v724_v13 = vrot.slane %v5631_v23, 4  ;;  %v1479_v40 = vsel %vm390_vm2, %v1478_v59, %v1477_v26  ;;  %v5642_v10 = vld [vmem:[#allocation60_spill] sm:$0xff]  ;;  %v4935_v45 = vld [vmem:[#allocation10 + $0x678] sm:$0xff]  ;;  %v4946_v57 = vld [vmem:[#allocation10 + $0x670] sm:$0xff] }
 0x420   :  { %v632_v37 = vrot.slane %v631_v63, 1  ;;  %v5634_v27 = vpack.c.bf16 %v5632_v31, %v5633_v4  ;;  %v5637_v38 = vpack.c.bf16 %v5635_v2, %v5636_v52  ;;  %v884_v35 = vadd.f32 %v5622_v25, %v810_v51  ;;  %1647 = vmatprep.mubr.f32.mxu0 %v1479_v40  ;;  %1931 = vmatprep.mubr.f32.mxu1 %v1479_v40  ;;  %v4933_v25 = vld [vmem:[#allocation10 + $0x658] sm:$0xff]  ;;  %v4942_v41 = vld [vmem:[#allocation10 + $0x660] sm:$0xff]  ;;  %v5645_v30 = vld [vmem:[#allocation65_spill] sm:$0xff] }
 0x421   :  { %v1470_v32 = vrot.slane %v876_v54, 6  ;;  %v678_v9 = vrot.slane %v677_v7, 2  ;;  %v584_v19 = vrot.slane %v583_v58, 1  ;;  %v725_v44 = vadd.f32 %v724_v13, %v5631_v23  ;;  %v5644_v26 = vld [vmem:[#allocation68_spill] sm:$0xff]  ;;  %v5648_v28 = vld [vmem:[#allocation67_spill] sm:$0xff]  ;;  %v5649_v18 = vld [vmem:[#allocation66_spill] sm:$0xff] }
 0x422   :  { %2968 = vmatpush1.bf16.msra.mxu0 %v5634_v27  ;;  %3224 = vmatpush1.bf16.msra.mxu1 %v5637_v38  ;;  %v633_v6 = vadd.f32 %v632_v37, %v631_v63  ;;  %v5640_v34 = vpack.c.bf16 %v5638_v17, %v5639_v14  ;;  %v5643_v22 = vpack.c.bf16 %v5641_v47, %v5642_v10  ;;  %v1472_v3 = vrot.slane %v884_v35, 5  ;;  %v4959_v59 = vld [vmem:[#allocation10 + $0x688] sm:$0xff]  ;;  %v5656_v13 = vld [vmem:[#allocation71_spill] sm:$0xff]  ;;  %v5658_v52 = vld [vmem:[#allocation74_spill] sm:$0xff] }
 0x423   :  { %v1471_v33 = vsel %vm388_vm1, %v1470_v32, %v1469_v42  ;;  %v679_v53 = vadd.f32 %v678_v9, %v677_v7  ;;  %v585_v61 = vadd.f32 %v584_v19, %v583_v58  ;;  %v726_v46 = vrot.slane %v725_v44, 2  ;;  %v4961_v51 = vld [vmem:[#allocation10 + $0x6a8] sm:$0xff]  ;;  %v5652_v42 = vld [vmem:[#allocation70_spill] sm:$0xff]  ;;  %v4986_v17 = vld [vmem:[#allocation10 + $0x680] sm:$0xff] }
 0x424   :  { %2970 = vmatprep.subr.bf16.mxu0 %v5640_v34  ;;  %3226 = vmatprep.subr.bf16.mxu1 %v5643_v22  ;;  %v797_v24 = vmul.f32 %v5644_v26, %v633_v6  ;;  %v5647_v5 = vpack.c.bf16 %v5645_v30, %v5646_v50  ;;  %v5650_v11 = vpack.c.bf16 %v5648_v28, %v5649_v18  ;;  %v5653_v58 = vld [vmem:[#allocation69_spill] sm:$0xff]  ;;  %v5655_v23 = vld [vmem:[#allocation72_spill] sm:$0xff]  ;;  %v4972_v31 = vld [vmem:[#allocation10 + $0x698] sm:$0xff] }
 0x425   :  { %v4964_v54 = vsel %vm390_vm2, %v1472_v3, %v1471_v33  ;;  %v680_v7 = vrot.slane %v679_v53, 1  ;;  %v5654_v37 = vpack.c.bf16 %v5652_v42, %v5653_v58  ;;  %v5657_v40 = vpack.c.bf16 %v5655_v23, %v5656_v13  ;;  %v4974_v4 = vld [vmem:[#allocation10 + $0x6b8] sm:$0xff]  ;;  %v5659_v47 = vld [vmem:[#allocation76_spill] sm:$0xff]  ;;  %v5660_v10 = vld [vmem:[#allocation73_spill] sm:$0xff] }
 0x426   :  { %2972 = vmatpush1.bf16.msra.mxu0 %v5647_v5  ;;  %3228 = vmatpush1.bf16.msra.mxu1 %v5650_v11  ;;  %5651 = vst [vmem:[#allocation46_spill] sm:$0xff] %v4964_v54  ;;  %v727_v27 = vadd.f32 %v726_v46, %v725_v44  ;;  %v789_v2 = vmul.f32 %v5644_v26, %v585_v61  ;;  %v5662_v33 = vld [vmem:[#allocation78_spill] sm:$0xff]  ;;  %v5663_v3 = vld [vmem:[#allocation77_spill] sm:$0xff]  ;;  %v4997_v46 = vld [vmem:[#allocation10 + $0x6a0] sm:$0xff] }
 0x427   :  { %2974 = vmatprep.subr.bf16.mxu0 %v5654_v37  ;;  %3230 = vmatprep.subr.bf16.mxu1 %v5657_v40  ;;  %v871_v38 = vadd.f32 %v5658_v52, %v797_v24  ;;  %v681_v19 = vadd.f32 %v680_v7, %v679_v53  ;;  %v5661_v22 = vpack.c.bf16 %v5659_v47, %v5660_v10  ;;  %v4999_v24 = vld [vmem:[#allocation10 + $0x690] sm:$0xff]  ;;  %v5666_v28 = vld [vmem:[#allocation43_spill] sm:$0xff]  ;;  %v5670_v37 = vld [vmem:[#allocation80_spill] sm:$0xff] }
 0x428   :  { %v728_v44 = vrot.slane %v727_v27, 1  ;;  %v863_v14 = vadd.f32 %v5658_v52, %v789_v2  ;;  %v5664_v61 = vpack.c.bf16 %v5662_v33, %v5663_v3  ;;  %v5001_v30 = vld [vmem:[#allocation10 + $0x6b0] sm:$0xff]  ;;  %v5667_v11 = vld [vmem:[#allocation39_spill] sm:$0xff]  ;;  %v5019_v47 = vld [vmem:[#allocation10 + $0x6c8] sm:$0xff]  ;;  %v5676_v33 = vunpack.c.l.bf16 %v4299_v36 }
 0x429   :  { %v1486_v34 = vrot.slane %v871_v38, 7  ;;  %v805_v50 = vmul.f32 %v5644_v26, %v681_v19  ;;  %v5665_v5 = vld [vmem:[#allocation33_spill] sm:$0xff]  ;;  %v5668_v7 = vunpack.c.l.bf16 %v5667_v11  ;;  %v5669_v42 = vld [vmem:[#allocation75_spill] sm:$0xff]  ;;  %v5673_v40 = vld [vmem:[#allocation82_spill] sm:$0xff] }
 0x42a   :  { %2976 = vmatpush1.bf16.msra.mxu0 %v5661_v22  ;;  %3232 = vmatpush1.bf16.msra.mxu1 %v5664_v61  ;;  %v5006_v18 = vrot.slane %v5666_v28, %v5665_v5  ;;  %v5671_v23 = vld [vmem:[#allocation79_spill] sm:$0xff]  ;;  %v5674_v2 = vld [vmem:[#allocation81_spill] sm:$0xff]  ;;  %v729_v10 = vadd.f32 %v728_v44, %v727_v27  ;;  %v538_v3 = vmul.f32 %v4675_v20, %v5676_v33  ;;  %v5677_v61 = vld [vmem:[#allocation34_spill] sm:$0xff] }
 0x42b   :  { %v5011_v58 = vmul.f32 %v5669_v42, %v5668_v7  ;;  %v5672_v13 = vpack.c.bf16 %v5670_v37, %v5671_v23  ;;  %v5675_v38 = vpack.c.bf16 %v5673_v40, %v5674_v2  ;;  %v5021_v19 = vld [vmem:[#allocation10 + $0x6e8] sm:$0xff]  ;;  %v1487_v22 = vsel %vm386_vm0, %v1486_v34, %v863_v14  ;;  %v5679_v7 = vld [vmem:[#allocation95_spill] sm:$0xff]  ;;  %v5693_v36 = vld [vmem:[#allocation86_spill] sm:$0xff] }
 0x42c   :  { %v5678_v11 = vunpack.c.l.bf16 %v5677_v61  ;;  %v5680_v23 = vld [vmem:[#allocation41_spill] sm:$0xff]  ;;  %v5682_v53 = vld [vmem:[#allocation96_spill] sm:$0xff]  ;;  %v5033_v2 = vld [vmem:[#allocation10 + $0x6d8] sm:$0xff]  ;;  %v813_v33 = vmul.f32 %v5644_v26, %v729_v10 }
 0x42d   :  { %2978 = vmatprep.subr.bf16.mxu0 %v5672_v13  ;;  %3234 = vmatprep.subr.bf16.mxu1 %v5675_v38  ;;  %v5681_v13 = vunpack.c.l.bf16 %v5680_v23  ;;  %5683 = vst [vmem:[#allocation45_spill] sm:$0xff] %v5033_v2  ;;  %v879_v38 = vadd.f32 %v5658_v52, %v805_v50  ;;  %v5040_v44 = vld [vmem:[#allocation10 + $0x6f8] sm:$0xff]  ;;  %v5042_v14 = vld [vmem:[#allocation10 + $0x6c0] sm:$0xff]  ;;  %v5694_v32 = vld [vmem:[#allocation85_spill] sm:$0xff] }
 0x42e   :  { %v522_v37 = vmul.f32 %v5679_v7, %v5678_v11  ;;  %5684 = vst [vmem:[#allocation63_spill] sm:$0xff] %v5042_v14  ;;  %v5044_v34 = vld [vmem:[#allocation10 + $0x6e0] sm:$0xff]  ;;  %v5695_v35 = vpack.c.bf16 %v5693_v36, %v5694_v32  ;;  %v5062_v26 = vld [vmem:[#allocation10 + $0x6d0] sm:$0xff] }
 0x42f   :  { %v546_v40 = vmul.f32 %v5682_v53, %v5681_v13  ;;  %5685 = vst [vmem:[#allocation47_spill] sm:$0xff] %v5044_v34  ;;  %v5686_v61 = vld [vmem:[#allocation44_spill] sm:$0xff]  ;;  %v5691_v6 = vld [vmem:[#allocation83_spill] sm:$0xff]  ;;  %v5064_v10 = vld [vmem:[#allocation10 + $0x6f0] sm:$0xff]  ;;  %v1488_v15 = vrot.slane %v879_v38, 6 }
 0x430   :  { %v5049_v11 = vrot.slane %v5686_v61, %v5665_v5  ;;  %v5688_v23 = vld [vmem:[#allocation40_spill] sm:$0xff]  ;;  %3236 = vmatpush1.bf16.msra.mxu1 %v5695_v35  ;;  %v5696_v62 = vld [vmem:[#allocation37_spill] sm:$0xff]  ;;  %v5700_v32 = vld [vmem:[#allocation42_spill] sm:$0xff] }
 0x431   :  { %v5689_v50 = vunpack.c.h.bf16 %v5688_v23  ;;  %v5690_v27 = vld [vmem:[#allocation84_spill] sm:$0xff]  ;;  %v5701_v36 = vunpack.c.h.bf16 %v5700_v32  ;;  %v5706_v38 = vld [vmem:[#allocation89_spill] sm:$0xff]  ;;  %v718_v32 = vrot.slane %v546_v40, 4 }
 0x432   :  { %5687 = vst [vmem:[#allocation49_spill] sm:$0xff] %v5049_v11  ;;  %v5692_v9 = vpack.c.bf16 %v5690_v27, %v5691_v6  ;;  %v5066_v5 = vld [vmem:[#allocation10 + $0x708] sm:$0xff]  ;;  %v5698_v6 = vld [vmem:[#allocation35_spill] sm:$0xff]  ;;  %v5119_v34 = vld [vmem:[#allocation10 + $0x730] sm:$0xff] }
 0x433   :  { %v533_v13 = vmul.f32 %v5669_v42, %v5689_v50  ;;  %v5070_v50 = vrot.slane %v5666_v28, %v5696_v62  ;;  %v5699_v27 = vunpack.c.h.bf16 %v5698_v6  ;;  %v549_v63 = vmul.f32 %v5682_v53, %v5701_v36  ;;  %v5702_v0 = vld [vmem:[#allocation88_spill] sm:$0xff]  ;;  %v5705_v42 = vld [vmem:[#allocation90_spill] sm:$0xff] }
 0x434   :  { %2980 = vmatpush1.bf16.msra.mxu0 %v5692_v9  ;;  %v622_v9 = vrot.slane %v5011_v58, 4  ;;  %v5704_v54 = vpack.c.bf16 %v5702_v0, %v5703_v55  ;;  %v5707_v23 = vpack.c.bf16 %v5705_v42, %v5706_v38  ;;  %v5085_v28 = vld [vmem:[#allocation10 + $0x728] sm:$0xff]  ;;  %v5089_v11 = vld [vmem:[#allocation10 + $0x738] sm:$0xff]  ;;  %v1489_v36 = vsel %vm388_vm1, %v1488_v15, %v1487_v22  ;;  %v5099_v42 = vld [vmem:[#allocation10 + $0x720] sm:$0xff] }
 0x435   :  { %5697 = vst [vmem:[#allocation48_spill] sm:$0xff] %v5070_v50  ;;  %v525_v35 = vmul.f32 %v5679_v7, %v5699_v27  ;;  %v5087_v50 = vld [vmem:[#allocation10 + $0x718] sm:$0xff]  ;;  %v887_v27 = vadd.f32 %v5658_v52, %v813_v33  ;;  %v574_v7 = vrot.slane %v522_v37, 4  ;;  %v670_v53 = vrot.slane %v538_v3, 4  ;;  %v5710_v33 = vld [vmem:[#allocation92_spill] sm:$0xff]  ;;  %v5714_v55 = vld [vmem:[#allocation93_spill] sm:$0xff] }
 0x436   :  { %2982 = vmatprep.subr.bf16.mxu0 %v5704_v54  ;;  %3238 = vmatprep.subr.bf16.mxu1 %v5707_v23  ;;  %5708 = vst [vmem:[#allocation64_spill] sm:$0xff] %v5087_v50  ;;  %v5097_v54 = vld [vmem:[#allocation10 + $0x700] sm:$0xff]  ;;  %v5101_v23 = vld [vmem:[#allocation10 + $0x710] sm:$0xff]  ;;  %v5105_v52 = vrot.slane %v5686_v61, %v5696_v62  ;;  %v5121_v62 = vld [vmem:[#allocation10 + $0x748] sm:$0xff]  ;;  %v623_v14 = vadd.f32 %v622_v9, %v5011_v58 }
 0x437   :  { %v1490_v38 = vrot.slane %v887_v27, 5  ;;  %v5711_v15 = vld [vmem:[#allocation91_spill] sm:$0xff]  ;;  %v5713_v6 = vld [vmem:[#allocation94_spill] sm:$0xff]  ;;  %v5123_v61 = vld [vmem:[#allocation10 + $0x768] sm:$0xff]  ;;  %v575_v27 = vadd.f32 %v574_v7, %v522_v37  ;;  %v671_v0 = vadd.f32 %v670_v53, %v538_v3  ;;  %v3003_v50 = vpack.c.bf16 %v5099_v42, %v5097_v54 }
 0x438   :  { %5709 = vst [vmem:[#allocation51_spill] sm:$0xff] %v5105_v52  ;;  %v5712_v22 = vpack.c.bf16 %v5710_v33, %v5711_v15  ;;  %v5715_v2 = vpack.c.bf16 %v5713_v6, %v5714_v55  ;;  %v5716_v33 = vpack.c.bf16 %v4892_v1, %v4890_v48  ;;  %v592_v55 = vrot.slane %v525_v35, 4  ;;  %v1136_v42 = vld [vmem:[#allocation10 + $0x7b0] sm:$0xff] }
 0x439   :  { %v5132_v6 = vsel %vm390_vm2, %v1490_v38, %v1489_v36  ;;  %v640_v15 = vrot.slane %v533_v13, 4  ;;  %v719_v52 = vadd.f32 %v718_v32, %v546_v40  ;;  %v5720_v7 = vpack.c.bf16 %v4911_v39, %v4909_v29 }
 0x43a   :  { %2984 = vmatpush1.bf16.msra.mxu0 %v5712_v22  ;;  %3240 = vmatpush1.bf16.msra.mxu1 %v5715_v2  ;;  %v5717_v2 = vpack.c.bf16 %v4898_v43, %v4896_v60  ;;  %v736_v22 = vrot.slane %v549_v63, 4  ;;  %v5718_v60 = vld [vmem:[#allocation38_spill] sm:$0xff]  ;;  %v5721_v53 = vpack.c.bf16 %v4918_v56, %v4913_v49  ;;  %v576_v58 = vrot.slane %v575_v27, 2 }
 0x43b   :  { %2986 = vmatprep.subr.bf16.mxu0 %v5716_v33  ;;  %v5719_v43 = vunpack.c.h.bf16 %v5718_v60  ;;  %v624_v3 = vrot.slane %v623_v14, 2  ;;  %v672_v37 = vrot.slane %v671_v0, 2  ;;  %v720_v40 = vrot.slane %v719_v52, 2 }
 0x43c   :  { %3242 = vmatprep.subr.bf16.mxu1 %v5717_v2  ;;  %v5722_v9 = vpack.c.bf16 %v4922_v12, %v4920_v8  ;;  %v5723_v32 = vpack.c.bf16 %v4935_v45, %v4933_v25  ;;  %v593_v38 = vadd.f32 %v592_v55, %v525_v35  ;;  %v641_v33 = vadd.f32 %v640_v15, %v533_v13 }
 0x43d   :  { %v541_v36 = vmul.f32 %v4675_v20, %v5719_v43  ;;  %v737_v39 = vadd.f32 %v736_v22, %v549_v63  ;;  %v577_v2 = vadd.f32 %v576_v58, %v575_v27  ;;  %v625_v43 = vadd.f32 %v624_v3, %v623_v14 }
 0x43e   :  { %2988 = vmatpush1.bf16.msra.mxu0 %v5720_v7  ;;  %3244 = vmatpush1.bf16.msra.mxu1 %v5721_v53  ;;  %v673_v49 = vadd.f32 %v672_v37, %v671_v0  ;;  %v721_v56 = vadd.f32 %v720_v40, %v719_v52  ;;  %v594_v7 = vrot.slane %v593_v38, 2  ;;  %v642_v53 = vrot.slane %v641_v33, 2 }
 0x43f   :  { %2990 = vmatprep.subr.bf16.mxu0 %v5722_v9  ;;  %3246 = vmatprep.subr.bf16.mxu1 %v5723_v32  ;;  %v688_v29 = vrot.slane %v541_v36, 4  ;;  %v738_v48 = vrot.slane %v737_v39, 2  ;;  %v5724_v8 = vpack.c.bf16 %v4942_v41, %v4937_v21  ;;  %v5725_v12 = vpack.c.bf16 %v4946_v57, %v4944_v16  ;;  %v5733_v32 = vld [vmem:[#allocation49_spill] sm:$0xff] }
 0x440   :  { %v578_v25 = vrot.slane %v577_v2, 1  ;;  %v626_v45 = vrot.slane %v625_v43, 1  ;;  %v674_v13 = vrot.slane %v673_v49, 1  ;;  %v722_v63 = vrot.slane %v721_v56, 1 }
 0x441   :  { %v689_v1 = vadd.f32 %v688_v29, %v541_v36  ;;  %v5726_v14 = vpack.c.bf16 %v4961_v51, %v4959_v59  ;;  %v5727_v35 = vpack.c.bf16 %v4974_v4, %v4972_v31  ;;  %v595_v0 = vadd.f32 %v594_v7, %v593_v38 }
 0x442   :  { %2992 = vmatpush1.bf16.msra.mxu0 %v5724_v8  ;;  %3248 = vmatpush1.bf16.msra.mxu1 %v5725_v12  ;;  %v643_v52 = vadd.f32 %v642_v53, %v641_v33  ;;  %v739_v41 = vadd.f32 %v738_v48, %v737_v39  ;;  %v579_v27 = vadd.f32 %v578_v25, %v577_v2  ;;  %v5734_v2 = vld [vmem:[#allocation48_spill] sm:$0xff] }
 0x443   :  { %2994 = vmatprep.subr.bf16.mxu0 %v5726_v14  ;;  %3250 = vmatprep.subr.bf16.mxu1 %v5727_v35  ;;  %v690_v21 = vrot.slane %v689_v1, 2  ;;  %v627_v55 = vadd.f32 %v626_v45, %v625_v43  ;;  %v675_v16 = vadd.f32 %v674_v13, %v673_v49  ;;  %v723_v57 = vadd.f32 %v722_v63, %v721_v56  ;;  %v5735_v49 = vld [vmem:[#allocation47_spill] sm:$0xff]  ;;  %v5740_v14 = vld [vmem:[#allocation64_spill] sm:$0xff] }
 0x444   :  { %v596_v15 = vrot.slane %v595_v0, 1  ;;  %v644_v22 = vrot.slane %v643_v52, 1  ;;  %v740_v58 = vrot.slane %v739_v41, 1  ;;  %v5728_v59 = vpack.c.bf16 %v4997_v46, %v4986_v17  ;;  %v1125_v17 = vld [vmem:[#allocation10 + $0x758] sm:$0xff]  ;;  %v1122_v8 = vld [vmem:[#allocation10 + $0x740] sm:$0xff] }
 0x445   :  { %v691_v36 = vadd.f32 %v690_v21, %v689_v1  ;;  %v5729_v51 = vpack.c.bf16 %v5001_v30, %v4999_v24  ;;  %v788_v31 = vmul.f32 %v5006_v18, %v579_v27  ;;  %v796_v4 = vmul.f32 %v5006_v18, %v627_v55  ;;  %v5731_v1 = vld [vmem:[#allocation45_spill] sm:$0xff]  ;;  %v1129_v46 = vld [vmem:[#allocation10 + $0x778] sm:$0xff]  ;;  %v1126_v12 = vld [vmem:[#allocation10 + $0x760] sm:$0xff] }
 0x446   :  { %2996 = vmatpush1.bf16.msra.mxu0 %v5728_v59  ;;  %v804_v48 = vmul.f32 %v5006_v18, %v675_v16  ;;  %v5730_v3 = vpack.c.bf16 %v5021_v19, %v5019_v47  ;;  %v5732_v37 = vpack.c.bf16 %v5040_v44, %v5731_v1  ;;  %v812_v40 = vmul.f32 %v5006_v18, %v723_v57  ;;  %v5736_v56 = vld [vmem:[#allocation63_spill] sm:$0xff]  ;;  %v1131_v21 = vld [vmem:[#allocation10 + $0x788] sm:$0xff] }
 0x447   :  { %3252 = vmatpush1.bf16.msra.mxu1 %v5729_v51  ;;  %v597_v24 = vadd.f32 %v596_v15, %v595_v0  ;;  %v645_v30 = vadd.f32 %v644_v22, %v643_v52  ;;  %v692_v9 = vrot.slane %v691_v36, 1  ;;  %v862_v38 = vadd.f32 %v5733_v32, %v788_v31  ;;  %v1124_v0 = vld [vmem:[#allocation10 + $0x750] sm:$0xff]  ;;  %v1135_v16 = vld [vmem:[#allocation10 + $0x7a8] sm:$0xff]  ;;  %v1133_v57 = vld [vmem:[#allocation10 + $0x798] sm:$0xff] }
 0x448   :  { %2998 = vmatprep.subr.bf16.mxu0 %v5730_v3  ;;  %3254 = vmatprep.subr.bf16.mxu1 %v5732_v37  ;;  %v870_v33 = vadd.f32 %v5733_v32, %v796_v4  ;;  %v878_v29 = vadd.f32 %v5733_v32, %v804_v48  ;;  %v741_v39 = vadd.f32 %v740_v58, %v739_v41  ;;  %v1128_v52 = vld [vmem:[#allocation10 + $0x770] sm:$0xff]  ;;  %v5742_v41 = vld [vmem:[#allocation51_spill] sm:$0xff] }
 0x449   :  { %v886_v47 = vadd.f32 %v5733_v32, %v812_v40  ;;  %v693_v19 = vadd.f32 %v692_v9, %v691_v36  ;;  %v791_v44 = vmul.f32 %v5734_v2, %v597_v24  ;;  %v799_v43 = vmul.f32 %v5734_v2, %v645_v30  ;;  %v1137_v15 = vld [vmem:[#allocation10 + $0x7b8] sm:$0xff]  ;;  %v1130_v31 = vld [vmem:[#allocation10 + $0x780] sm:$0xff] }
 0x44a   :  { %v5737_v18 = vpack.c.bf16 %v5735_v49, %v5736_v56  ;;  %v5738_v7 = vpack.c.bf16 %v5064_v10, %v5062_v26  ;;  %v3261_v53 = vpack.c.bf16 %v1129_v46, %v1125_v17  ;;  %v1480_v25 = vrot.slane %v870_v33, 7  ;;  %v1134_v4 = vld [vmem:[#allocation10 + $0x7a0] sm:$0xff]  ;;  %v1139_v17 = vld [vmem:[#allocation10 + $0x7c8] sm:$0xff]  ;;  %v1141_v40 = vld [vmem:[#allocation10 + $0x7d8] sm:$0xff] }
 0x44b   :  { %v1482_v45 = vrot.slane %v878_v29, 6  ;;  %v815_v13 = vmul.f32 %v5734_v2, %v741_v39  ;;  %v5739_v63 = vpack.c.bf16 %v5085_v28, %v5066_v5  ;;  %v5741_v35 = vpack.c.bf16 %v5089_v11, %v5740_v14  ;;  %v1143_v46 = vld [vmem:[#allocation10 + $0x7e8] sm:$0xff]  ;;  %v1145_v24 = vld [vmem:[#allocation10 + $0x7f8] sm:$0xff]  ;;  %v1140_v39 = vld [vmem:[#allocation10 + $0x7d0] sm:$0xff] }
 0x44c   :  { %3000 = vmatpush1.bf16.msra.mxu0 %v5737_v18  ;;  %3256 = vmatpush1.bf16.msra.mxu1 %v5738_v7  ;;  %v1484_v26 = vrot.slane %v886_v47, 5  ;;  %v807_v10 = vmul.f32 %v5734_v2, %v693_v19  ;;  %v865_v27 = vadd.f32 %v5742_v41, %v791_v44  ;;  %v873_v55 = vadd.f32 %v5742_v41, %v799_v43  ;;  %v1144_v47 = vld [vmem:[#allocation10 + $0x7f0] sm:$0xff]  ;;  %v1147_v19 = vld [vmem:[#allocation10 + $0x808] sm:$0xff]  ;;  %v1149_v44 = vld [vmem:[#allocation10 + $0x818] sm:$0xff] }
 0x44d   :  { %3002 = vmatprep.subr.bf16.mxu0 %v5739_v63  ;;  %3258 = vmatprep.subr.bf16.mxu1 %v5741_v35  ;;  %v1481_v5 = vsel %vm386_vm0, %v1480_v25, %v862_v38  ;;  %v889_v28 = vadd.f32 %v5742_v41, %v815_v13  ;;  %v5743_v58 = vpack.c.bf16 %v5119_v34, %v5101_v23  ;;  %v1151_v2 = vld [vmem:[#allocation10 + $0x828] sm:$0xff]  ;;  %v1153_v43 = vld [vmem:[#allocation10 + $0x838] sm:$0xff]  ;;  %v5748_v14 = vunpack.c.l.bf16 %v5718_v60  ;;  %v1158_v60 = vld [vmem:[#allocation10 + $0x860] sm:$0xff] }
 0x44e   :  { %v1483_v11 = vsel %vm388_vm1, %v1482_v45, %v1481_v5  ;;  %v881_v22 = vadd.f32 %v5742_v41, %v807_v10  ;;  %v1498_v36 = vrot.slane %v873_v55, 7  ;;  %v3007_v59 = vpack.c.bf16 %v1126_v12, %v1122_v8  ;;  %v1150_v8 = vld [vmem:[#allocation10 + $0x820] sm:$0xff]  ;;  %v1148_v12 = vld [vmem:[#allocation10 + $0x810] sm:$0xff]  ;;  %v1155_v41 = vld [vmem:[#allocation10 + $0x848] sm:$0xff] }
 0x44f   :  { %v3263_v51 = vpack.c.bf16 %v1128_v52, %v1124_v0  ;;  %v5217_v48 = vsel %vm390_vm2, %v1484_v26, %v1483_v11  ;;  %v1502_v3 = vrot.slane %v889_v28, 5  ;;  %v5744_v1 = vpack.c.bf16 %v5123_v61, %v5121_v62  ;;  %v1138_v62 = vld [vmem:[#allocation10 + $0x7c0] sm:$0xff]  ;;  %v1152_v10 = vld [vmem:[#allocation10 + $0x830] sm:$0xff]  ;;  %v1157_v5 = vld [vmem:[#allocation10 + $0x858] sm:$0xff] }
 0x450   :  { %3004 = vmatpush1.bf16.msra.mxu0 %v3003_v50  ;;  %3260 = vmatpush1.bf16.msra.mxu1 %v5743_v58  ;;  %v3009_v37 = vpack.c.bf16 %v1135_v16, %v1131_v21  ;;  %v3265_v54 = vpack.c.bf16 %v1137_v15, %v1133_v57  ;;  %v1132_v50 = vld [vmem:[#allocation10 + $0x790] sm:$0xff]  ;;  %v1499_v34 = vsel %vm386_vm0, %v1498_v36, %v865_v27  ;;  %v1500_v23 = vrot.slane %v881_v22, 6  ;;  %v1142_v61 = vld [vmem:[#allocation10 + $0x7e0] sm:$0xff]  ;;  %v1159_v27 = vld [vmem:[#allocation10 + $0x868] sm:$0xff] }
 0x451   :  { %3006 = vmatprep.subr.bf16.mxu0 %v5744_v1  ;;  %3262 = vmatprep.subr.bf16.mxu1 %v3261_v53  ;;  %v3011_v9 = vpack.c.bf16 %v1134_v4, %v1130_v31  ;;  %v3267_v32 = vpack.c.bf16 %v1136_v42, %v1132_v50  ;;  %v3013_v33 = vpack.c.bf16 %v1143_v46, %v1139_v17  ;;  %v1146_v53 = vld [vmem:[#allocation10 + $0x800] sm:$0xff]  ;;  %v5752_v55 = vld [vmem:[#allocation42_spill] sm:$0xff]  ;;  %v1167_v1 = vld [vmem:[#allocation10 + $0x8a8] sm:$0xff] }
 0x452   :  { %v1501_v30 = vsel %vm388_vm1, %v1500_v23, %v1499_v34  ;;  %v3269_v29 = vpack.c.bf16 %v1145_v24, %v1141_v40  ;;  %v3015_v49 = vpack.c.bf16 %v1142_v61, %v1138_v62  ;;  %v3271_v56 = vpack.c.bf16 %v1144_v47, %v1140_v39  ;;  %v5745_v25 = vld [vmem:[#allocation40_spill] sm:$0xff]  ;;  %v5747_v13 = vld [vmem:[#allocation75_spill] sm:$0xff]  ;;  %v1156_v58 = vld [vmem:[#allocation10 + $0x850] sm:$0xff] }
 0x453   :  { %v5225_v38 = vsel %vm390_vm2, %v1502_v3, %v1501_v30  ;;  %v3017_v18 = vpack.c.bf16 %v1151_v2, %v1147_v19  ;;  %v3273_v7 = vpack.c.bf16 %v1153_v43, %v1149_v44  ;;  %v5746_v45 = vunpack.c.l.bf16 %v5745_v25  ;;  %v5749_v0 = vld [vmem:[#allocation35_spill] sm:$0xff]  ;;  %v5754_v57 = vld [vmem:[#allocation96_spill] sm:$0xff]  ;;  %v5755_v17 = vld [vmem:[#allocation46_spill] sm:$0xff] }
 0x454   :  { %3008 = vmatpush1.bf16.msra.mxu0 %v3007_v59  ;;  %3264 = vmatpush1.bf16.msra.mxu1 %v3263_v51  ;;  %v540_v35 = vmul.f32 %v4675_v20, %v5748_v14  ;;  %v5750_v52 = vunpack.c.l.bf16 %v5749_v0  ;;  %v5751_v21 = vld [vmem:[#allocation95_spill] sm:$0xff]  ;;  %v5753_v16 = vunpack.c.l.bf16 %v5752_v55  ;;  %v3019_v11 = vpack.c.bf16 %v1150_v8, %v1146_v53  ;;  %v1160_v59 = vld [vmem:[#allocation10 + $0x870] sm:$0xff]  ;;  %v1163_v51 = vld [vmem:[#allocation10 + $0x888] sm:$0xff] }
 0x455   :  { %3010 = vmatprep.subr.bf16.mxu0 %v3009_v37  ;;  %3266 = vmatprep.subr.bf16.mxu1 %v3265_v54  ;;  %v532_v63 = vmul.f32 %v5747_v13, %v5746_v45  ;;  %v1161_v28 = vld [vmem:[#allocation10 + $0x878] sm:$0xff]  ;;  %v1154_v22 = vld [vmem:[#allocation10 + $0x840] sm:$0xff]  ;;  %v3275_v20 = vpack.c.bf16 %v1152_v10, %v1148_v12  ;;  %v3021_v36 = vpack.c.bf16 %v1159_v27, %v1155_v41  ;;  %v1171_v62 = vld [vmem:[#allocation10 + $0x8c8] sm:$0xff] }
 0x456   :  { %v524_v26 = vmul.f32 %v5751_v21, %v5750_v52  ;;  %v548_v15 = vmul.f32 %v5754_v57, %v5753_v16  ;;  %v3277_v3 = vpack.c.bf16 %v1161_v28, %v1157_v5  ;;  %v1165_v37 = vld [vmem:[#allocation10 + $0x898] sm:$0xff]  ;;  %v682_v50 = vrot.slane %v540_v35, 4  ;;  %v1162_v24 = vld [vmem:[#allocation10 + $0x880] sm:$0xff]  ;;  %v1175_v61 = vld [vmem:[#allocation10 + $0x8e8] sm:$0xff] }
 0x457   :  { %v634_v31 = vrot.slane %v532_v63, 4  ;;  %v1169_v54 = vld [vmem:[#allocation10 + $0x8b8] sm:$0xff]  ;;  %v3023_v34 = vpack.c.bf16 %v1158_v60, %v1154_v22  ;;  %v3279_v23 = vpack.c.bf16 %v1160_v59, %v1156_v58  ;;  %v3025_v46 = vpack.c.bf16 %v1167_v1, %v1163_v51  ;;  %v1166_v30 = vld [vmem:[#allocation10 + $0x8a0] sm:$0xff]  ;;  %v1172_v8 = vld [vmem:[#allocation10 + $0x8d0] sm:$0xff] }
 0x458   :  { %3012 = vmatpush1.bf16.msra.mxu0 %v3011_v9  ;;  %3268 = vmatpush1.bf16.msra.mxu1 %v3267_v32  ;;  %v586_v4 = vrot.slane %v524_v26, 4  ;;  %v730_v42 = vrot.slane %v548_v15, 4  ;;  %v3281_v40 = vpack.c.bf16 %v1169_v54, %v1165_v37  ;;  %v1164_v9 = vld [vmem:[#allocation10 + $0x890] sm:$0xff]  ;;  %v683_v39 = vadd.f32 %v682_v50, %v540_v35  ;;  %v1173_v47 = vld [vmem:[#allocation10 + $0x8d8] sm:$0xff]  ;;  %v1174_v53 = vld [vmem:[#allocation10 + $0x8e0] sm:$0xff] }
 0x459   :  { %3014 = vmatprep.subr.bf16.mxu0 %v3013_v33  ;;  %3270 = vmatprep.subr.bf16.mxu1 %v3269_v29  ;;  %v1168_v32 = vld [vmem:[#allocation10 + $0x8b0] sm:$0xff]  ;;  %v635_v29 = vadd.f32 %v634_v31, %v532_v63  ;;  %v1177_v19 = vld [vmem:[#allocation10 + $0x8f8] sm:$0xff]  ;;  %v3027_v44 = vpack.c.bf16 %v1166_v30, %v1162_v24  ;;  %v1179_v13 = vld [vmem:[#allocation10 + $0x908] sm:$0xff] }
 0x45a   :  { %v587_v33 = vadd.f32 %v586_v4, %v524_v26  ;;  %v731_v2 = vadd.f32 %v730_v42, %v548_v15  ;;  %v3285_v25 = vpack.c.bf16 %v1177_v19, %v1173_v47  ;;  %v1176_v45 = vld [vmem:[#allocation10 + $0x8f0] sm:$0xff]  ;;  %v1183_v63 = vld [vmem:[#allocation10 + $0x928] sm:$0xff]  ;;  %v1181_v52 = vld [vmem:[#allocation10 + $0x918] sm:$0xff] }
 0x45b   :  { %v636_v43 = vrot.slane %v635_v29, 2  ;;  %v1185_v21 = vld [vmem:[#allocation10 + $0x938] sm:$0xff]  ;;  %v3668_v10 = vld [vmem:[#allocation7] sm:$0xff]  ;;  %v5756_v41 = vld [vmem:[#allocation36_spill] sm:$0xff]  ;;  %v3287_v5 = vpack.c.bf16 %v1176_v45, %v1172_v8  ;;  %v3033_v28 = vpack.c.bf16 %v1183_v63, %v1179_v13 }
 0x45c   :  { %3016 = vmatpush1.bf16.msra.mxu0 %v3015_v49  ;;  %3272 = vmatpush1.bf16.msra.mxu1 %v3271_v56  ;;  %v684_v49 = vrot.slane %v683_v39, 2  ;;  %v3283_v56 = vpack.c.bf16 %v1168_v32, %v1164_v9  ;;  %v732_v12 = vrot.slane %v731_v2, 2  ;;  %v771_v27 = vrot.slane %v3668_v10, %v5756_v41  ;;  %v1182_v22 = vld [vmem:[#allocation10 + $0x920] sm:$0xff]  ;;  %v1180_v60 = vld [vmem:[#allocation10 + $0x910] sm:$0xff]  ;;  %v1187_v31 = vld [vmem:[#allocation10 + $0x948] sm:$0xff] }
 0x45d   :  { %3018 = vmatprep.subr.bf16.mxu0 %v3017_v18  ;;  %3274 = vmatprep.subr.bf16.mxu1 %v3273_v7  ;;  %v3029_v18 = vpack.c.bf16 %v1175_v61, %v1171_v62  ;;  %v1170_v7 = vld [vmem:[#allocation10 + $0x8c0] sm:$0xff]  ;;  %v637_v35 = vadd.f32 %v636_v43, %v635_v29  ;;  %v3289_v59 = vpack.c.bf16 %v1185_v21, %v1181_v52  ;;  %v1184_v51 = vld [vmem:[#allocation10 + $0x930] sm:$0xff]  ;;  %v1191_v4 = vld [vmem:[#allocation10 + $0x968] sm:$0xff] }
 0x45e   :  { %v685_v0 = vadd.f32 %v684_v49, %v683_v39  ;;  %v733_v26 = vadd.f32 %v732_v12, %v731_v2  ;;  %v3031_v55 = vpack.c.bf16 %v1174_v53, %v1170_v7  ;;  %v1189_v54 = vld [vmem:[#allocation10 + $0x958] sm:$0xff]  ;;  %v3037_v24 = vpack.c.bf16 %v1191_v4, %v1187_v31  ;;  %v1186_v30 = vld [vmem:[#allocation10 + $0x940] sm:$0xff]  ;;  %v1188_v32 = vld [vmem:[#allocation10 + $0x950] sm:$0xff] }
 0x45f   :  { %1648 = vmatmul.mubr.f32.vlgmr.msra.gmra.mrb[0].mxu0 %v5755_v17  ;;  %1932 = vmatmul.mubr.f32.vlgmr.msra.gmra.mrb[0].mxu1 %v5755_v17  ;;  %v638_v57 = vrot.slane %v637_v35, 1  ;;  %v1193_v50 = vld [vmem:[#allocation10 + $0x978] sm:$0xff]  ;;  %v1190_v9 = vld [vmem:[#allocation10 + $0x960] sm:$0xff]  ;;  %v1195_v29 = vld [vmem:[#allocation10 + $0x988] sm:$0xff] }
 0x460   :  { %3020 = vmatpush1.bf16.msra.mxu0 %v3019_v11  ;;  %1718 = vmatprep.mubr.f32.mxu0 %v5132_v6  ;;  %v686_v15 = vrot.slane %v685_v0, 1  ;;  %v1178_v11 = vld [vmem:[#allocation10 + $0x900] sm:$0xff]  ;;  %v3293_v61 = vpack.c.bf16 %v1193_v50, %v1189_v54  ;;  %v1199_v39 = vld [vmem:[#allocation10 + $0x9a8] sm:$0xff]  ;;  %v3039_v49 = vpack.c.bf16 %v1190_v9, %v1186_v30  ;;  %v1196_v12 = vld [vmem:[#allocation10 + $0x990] sm:$0xff] }
 0x461   :  { %3276 = vmatpush1.bf16.msra.mxu1 %v3275_v20  ;;  %2002 = vmatprep.mubr.f32.mxu1 %v5132_v6  ;;  %v588_v6 = vrot.slane %v587_v33, 2  ;;  %v734_v20 = vrot.slane %v733_v26, 1  ;;  %v639_v1 = vadd.f32 %v638_v57, %v637_v35  ;;  %v3035_v17 = vpack.c.bf16 %v1182_v22, %v1178_v11  ;;  %v1194_v53 = vld [vmem:[#allocation10 + $0x980] sm:$0xff]  ;;  %v1200_v63 = vld [vmem:[#allocation10 + $0x9b0] sm:$0xff]  ;;  %v1207_v35 = vld [vmem:[#allocation10 + $0x9e8] sm:$0xff] }
 0x462   :  { %3022 = vmatprep.subr.bf16.mxu0 %v3021_v36  ;;  %3278 = vmatprep.subr.bf16.mxu1 %v3277_v3  ;;  %v3669_v36 = vld [vmem:[#allocation8] sm:$0xff]  ;;  %v687_v37 = vadd.f32 %v686_v15, %v685_v0  ;;  %v3041_v7 = vpack.c.bf16 %v1199_v39, %v1195_v29  ;;  %v1198_v8 = vld [vmem:[#allocation10 + $0x9a0] sm:$0xff]  ;;  %v1204_v15 = vld [vmem:[#allocation10 + $0x9d0] sm:$0xff] }
 0x463   :  { %v589_v14 = vadd.f32 %v588_v6, %v587_v33  ;;  %v845_v58 = vrot.slane %v3669_v36, %v5756_v41  ;;  %v735_v42 = vadd.f32 %v734_v20, %v733_v26  ;;  %v1192_v33 = vld [vmem:[#allocation10 + $0x970] sm:$0xff]  ;;  %v1201_v6 = vld [vmem:[#allocation10 + $0x9b8] sm:$0xff]  ;;  %v3043_v10 = vpack.c.bf16 %v1198_v8, %v1194_v53  ;;  %v1206_v57 = vld [vmem:[#allocation10 + $0x9e0] sm:$0xff] }
 0x464   :  { %3024 = vmatpush1.bf16.msra.mxu0 %v3023_v34  ;;  %v1205_v52 = vld [vmem:[#allocation10 + $0x9d8] sm:$0xff]  ;;  %v1211_v11 = vld [vmem:[#allocation10 + $0xa08] sm:$0xff]  ;;  %v1214_v31 = vld [vmem:[#allocation10 + $0xa20] sm:$0xff] }
 0x465   :  { %3280 = vmatpush1.bf16.msra.mxu1 %v3279_v23  ;;  %3026 = vmatprep.subr.bf16.mxu0 %v3025_v46  ;;  %v590_v16 = vrot.slane %v589_v14, 1  ;;  %v798_v23 = vmul.f32 %v771_v27, %v639_v1  ;;  %v806_v46 = vmul.f32 %v771_v27, %v687_v37  ;;  %v814_v62 = vmul.f32 %v771_v27, %v735_v42  ;;  %v1209_v21 = vld [vmem:[#allocation10 + $0x9f8] sm:$0xff]  ;;  %v1215_v22 = vld [vmem:[#allocation10 + $0xa28] sm:$0xff]  ;;  %v1212_v4 = vld [vmem:[#allocation10 + $0xa10] sm:$0xff] }
 0x466   :  { %3282 = vmatprep.subr.bf16.mxu1 %v3281_v40  ;;  %v3291_v40 = vpack.c.bf16 %v1184_v51, %v1180_v60  ;;  %v1213_v60 = vld [vmem:[#allocation10 + $0xa18] sm:$0xff]  ;;  %v1210_v51 = vld [vmem:[#allocation10 + $0xa00] sm:$0xff]  ;;  %v1216_v1 = vld [vmem:[#allocation10 + $0xa30] sm:$0xff] }
 0x467   :  { %v591_v3 = vadd.f32 %v590_v16, %v589_v14  ;;  %v872_v19 = vadd.f32 %v845_v58, %v798_v23  ;;  %v880_v2 = vadd.f32 %v845_v58, %v806_v46  ;;  %v888_v43 = vadd.f32 %v845_v58, %v814_v62  ;;  %v1203_v14 = vld [vmem:[#allocation10 + $0x9c8] sm:$0xff]  ;;  %v1202_v16 = vld [vmem:[#allocation10 + $0x9c0] sm:$0xff]  ;;  %v1217_v20 = vld [vmem:[#allocation10 + $0xa38] sm:$0xff] }
 0x468   :  { %3028 = vmatpush1.bf16.msra.mxu0 %v3027_v44  ;;  %v1197_v44 = vld [vmem:[#allocation10 + $0x998] sm:$0xff]  ;;  %v3047_v36 = vpack.c.bf16 %v1206_v57, %v1202_v16  ;;  %v1219_v37 = vld [vmem:[#allocation10 + $0xa48] sm:$0xff]  ;;  %v1218_v46 = vld [vmem:[#allocation10 + $0xa40] sm:$0xff] }
 0x469   :  { %3284 = vmatpush1.bf16.msra.mxu1 %v3283_v56  ;;  %3030 = vmatprep.subr.bf16.mxu0 %v3029_v18  ;;  %v790_v34 = vmul.f32 %v771_v27, %v591_v3  ;;  %v1492_v56 = vrot.slane %v872_v19, 7  ;;  %v3295_v18 = vpack.c.bf16 %v1192_v33, %v1188_v32  ;;  %v1496_v45 = vrot.slane %v888_v43, 5  ;;  %v1223_v54 = vld [vmem:[#allocation10 + $0xa68] sm:$0xff]  ;;  %v1221_v50 = vld [vmem:[#allocation10 + $0xa58] sm:$0xff]  ;;  %v1224_v9 = vld [vmem:[#allocation10 + $0xa70] sm:$0xff] }
 0x46a   :  { %3286 = vmatprep.subr.bf16.mxu1 %v3285_v25  ;;  %v1494_v25 = vrot.slane %v880_v2, 6  ;;  %v3297_v13 = vpack.c.bf16 %v1201_v6, %v1197_v44  ;;  %v3299_v27 = vpack.c.bf16 %v1200_v63, %v1196_v12  ;;  %v3305_v3 = vpack.c.bf16 %v1217_v20, %v1213_v60  ;;  %v1225_v42 = vld [vmem:[#allocation10 + $0xa78] sm:$0xff]  ;;  %v1227_v32 = vld [vmem:[#allocation10 + $0xa88] sm:$0xff]  ;;  %v1226_v19 = vld [vmem:[#allocation10 + $0xa80] sm:$0xff] }
 0x46b   :  { %v864_v47 = vadd.f32 %v845_v58, %v790_v34  ;;  %v3307_v34 = vpack.c.bf16 %v1216_v1, %v1212_v4  ;;  %v3053_v23 = vpack.c.bf16 %v1223_v54, %v1219_v37  ;;  %v3309_v30 = vpack.c.bf16 %v1225_v42, %v1221_v50  ;;  %v1231_v62 = vld [vmem:[#allocation10 + $0xaa8] sm:$0xff]  ;;  %v1233_v33 = vld [vmem:[#allocation10 + $0xab8] sm:$0xff]  ;;  %v1230_v2 = vld [vmem:[#allocation10 + $0xaa0] sm:$0xff] }
 0x46c   :  { %3032 = vmatpush1.bf16.msra.mxu0 %v3031_v55  ;;  %v3045_v55 = vpack.c.bf16 %v1207_v35, %v1203_v14  ;;  %v1228_v44 = vld [vmem:[#allocation10 + $0xa90] sm:$0xff]  ;;  %v3059_v53 = vpack.c.bf16 %v1230_v2, %v1226_v19  ;;  %v1243_v35 = vld [vmem:[#allocation10 + $0xb08] sm:$0xff]  ;;  %v1246_v16 = vld [vmem:[#allocation10 + $0xb20] sm:$0xff] }
 0x46d   :  { %3288 = vmatpush1.bf16.msra.mxu1 %v3287_v5  ;;  %3034 = vmatprep.subr.bf16.mxu0 %v3033_v28  ;;  %v1493_v0 = vsel %vm386_vm0, %v1492_v56, %v864_v47  ;;  %v3301_v5 = vpack.c.bf16 %v1209_v21, %v1205_v52  ;;  %v1208_v28 = vld [vmem:[#allocation10 + $0x9f0] sm:$0xff]  ;;  %v3057_v47 = vpack.c.bf16 %v1231_v62, %v1227_v32  ;;  %v1239_v56 = vld [vmem:[#allocation10 + $0xae8] sm:$0xff]  ;;  %v1245_v52 = vld [vmem:[#allocation10 + $0xb18] sm:$0xff] }
 0x46e   :  { %3290 = vmatprep.subr.bf16.mxu1 %v3289_v59  ;;  %v1495_v26 = vsel %vm388_vm1, %v1494_v25, %v1493_v0  ;;  %v3303_v58 = vpack.c.bf16 %v1208_v28, %v1204_v15  ;;  %v3049_v59 = vpack.c.bf16 %v1215_v22, %v1211_v11  ;;  %v1232_v43 = vld [vmem:[#allocation10 + $0xab0] sm:$0xff]  ;;  %v1234_v25 = vld [vmem:[#allocation10 + $0xac0] sm:$0xff]  ;;  %v1247_v0 = vld [vmem:[#allocation10 + $0xb28] sm:$0xff] }
 0x46f   :  { %v5248_v41 = vsel %vm390_vm2, %v1496_v45, %v1495_v26  ;;  %v3315_v8 = vpack.c.bf16 %v1232_v43, %v1228_v44  ;;  %v1238_v45 = vld [vmem:[#allocation10 + $0xae0] sm:$0xff]  ;;  %v1240_v14 = vld [vmem:[#allocation10 + $0xaf0] sm:$0xff]  ;;  %v1249_v21 = vld [vmem:[#allocation10 + $0xb38] sm:$0xff] }
 0x470   :  { %3036 = vmatpush1.bf16.msra.mxu0 %v3035_v17  ;;  %v3051_v17 = vpack.c.bf16 %v1214_v31, %v1210_v51  ;;  %v3063_v26 = vpack.c.bf16 %v1238_v45, %v1234_v25  ;;  %v1244_v57 = vld [vmem:[#allocation10 + $0xb10] sm:$0xff]  ;;  %v3321_v15 = vpack.c.bf16 %v1249_v21, %v1245_v52  ;;  %v1251_v28 = vld [vmem:[#allocation10 + $0xb48] sm:$0xff]  ;;  %v1253_v22 = vld [vmem:[#allocation10 + $0xb58] sm:$0xff] }
 0x471   :  { %3292 = vmatpush1.bf16.msra.mxu1 %v3291_v40  ;;  %3038 = vmatprep.subr.bf16.mxu0 %v3037_v24  ;;  %v1222_v40 = vld [vmem:[#allocation10 + $0xa60] sm:$0xff]  ;;  %v1220_v24 = vld [vmem:[#allocation10 + $0xa50] sm:$0xff]  ;;  %v1255_v11 = vld [vmem:[#allocation10 + $0xb68] sm:$0xff] }
 0x472   :  { %3294 = vmatprep.subr.bf16.mxu1 %v3293_v61  ;;  %v1229_v61 = vld [vmem:[#allocation10 + $0xa98] sm:$0xff]  ;;  %v3055_v29 = vpack.c.bf16 %v1222_v40, %v1218_v46  ;;  %v3311_v39 = vpack.c.bf16 %v1224_v9, %v1220_v24  ;;  %v1254_v51 = vld [vmem:[#allocation10 + $0xb60] sm:$0xff]  ;;  %v1252_v31 = vld [vmem:[#allocation10 + $0xb50] sm:$0xff] }
 0x473   :  { %v3313_v6 = vpack.c.bf16 %v1233_v33, %v1229_v61  ;;  %v1257_v60 = vld [vmem:[#allocation10 + $0xb78] sm:$0xff]  ;;  %v1259_v1 = vld [vmem:[#allocation10 + $0xb88] sm:$0xff]  ;;  %v1262_v46 = vld [vmem:[#allocation10 + $0xba0] sm:$0xff] }
 0x474   :  { %3040 = vmatpush1.bf16.msra.mxu0 %v3039_v49  ;;  %v1235_v49 = vld [vmem:[#allocation10 + $0xac8] sm:$0xff]  ;;  %v3325_v4 = vpack.c.bf16 %v1257_v60, %v1253_v22  ;;  %v1261_v54 = vld [vmem:[#allocation10 + $0xb98] sm:$0xff]  ;;  %v1260_v40 = vld [vmem:[#allocation10 + $0xb90] sm:$0xff] }
 0x475   :  { %3296 = vmatpush1.bf16.msra.mxu1 %v3295_v18  ;;  %3042 = vmatprep.subr.bf16.mxu0 %v3041_v7  ;;  %v1237_v18 = vld [vmem:[#allocation10 + $0xad8] sm:$0xff]  ;;  %v3061_v12 = vpack.c.bf16 %v1239_v56, %v1235_v49  ;;  %v1263_v37 = vld [vmem:[#allocation10 + $0xba8] sm:$0xff]  ;;  %v1270_v19 = vld [vmem:[#allocation10 + $0xbe0] sm:$0xff] }
 0x476   :  { %3298 = vmatprep.subr.bf16.mxu1 %v3297_v13  ;;  %v1241_v7 = vld [vmem:[#allocation10 + $0xaf8] sm:$0xff]  ;;  %v1236_v13 = vld [vmem:[#allocation10 + $0xad0] sm:$0xff]  ;;  %v1267_v9 = vld [vmem:[#allocation10 + $0xbc8] sm:$0xff] }
 0x477   :  { %v3317_v63 = vpack.c.bf16 %v1241_v7, %v1237_v18  ;;  %v1265_v50 = vld [vmem:[#allocation10 + $0xbb8] sm:$0xff]  ;;  %v1271_v32 = vld [vmem:[#allocation10 + $0xbe8] sm:$0xff]  ;;  %v1268_v2 = vld [vmem:[#allocation10 + $0xbd0] sm:$0xff] }
 0x478   :  { %3044 = vmatpush1.bf16.msra.mxu0 %v3043_v10  ;;  %v3319_v10 = vpack.c.bf16 %v1240_v14, %v1236_v13  ;;  %v3329_v24 = vpack.c.bf16 %v1265_v50, %v1261_v54  ;;  %v1269_v62 = vld [vmem:[#allocation10 + $0xbd8] sm:$0xff]  ;;  %v1275_v43 = vld [vmem:[#allocation10 + $0xc08] sm:$0xff]  ;;  %v1278_v25 = vld [vmem:[#allocation10 + $0xc20] sm:$0xff] }
 0x479   :  { %3300 = vmatpush1.bf16.msra.mxu1 %v3299_v27  ;;  %3046 = vmatprep.subr.bf16.mxu0 %v3045_v55  ;;  %v3065_v27 = vpack.c.bf16 %v1247_v0, %v1243_v35  ;;  %v1242_v55 = vld [vmem:[#allocation10 + $0xb00] sm:$0xff]  ;;  %v1273_v61 = vld [vmem:[#allocation10 + $0xbf8] sm:$0xff]  ;;  %v1279_v49 = vld [vmem:[#allocation10 + $0xc28] sm:$0xff] }
 0x47a   :  { %3302 = vmatprep.subr.bf16.mxu1 %v3301_v5  ;;  %v1248_v5 = vld [vmem:[#allocation10 + $0xb30] sm:$0xff]  ;;  %v3067_v20 = vpack.c.bf16 %v1246_v16, %v1242_v55  ;;  %v3333_v44 = vpack.c.bf16 %v1273_v61, %v1269_v62  ;;  %v1277_v56 = vld [vmem:[#allocation10 + $0xc18] sm:$0xff]  ;;  %v1283_v14 = vld [vmem:[#allocation10 + $0xc48] sm:$0xff] }
 0x47b   :  { %v1281_v18 = vld [vmem:[#allocation10 + $0xc38] sm:$0xff]  ;;  %v1276_v13 = vld [vmem:[#allocation10 + $0xc10] sm:$0xff]  ;;  %v1287_v35 = vld [vmem:[#allocation10 + $0xc68] sm:$0xff] }
 0x47c   :  { %3048 = vmatpush1.bf16.msra.mxu0 %v3047_v36  ;;  %v3323_v36 = vpack.c.bf16 %v1248_v5, %v1244_v57  ;;  %v3337_v45 = vpack.c.bf16 %v1281_v18, %v1277_v56  ;;  %v1285_v52 = vld [vmem:[#allocation10 + $0xc58] sm:$0xff]  ;;  %v1284_v55 = vld [vmem:[#allocation10 + $0xc50] sm:$0xff]  ;;  %v3085_v16 = vpack.c.bf16 %v1287_v35, %v1283_v14  ;;  %v1295_v5 = vld [vmem:[#allocation10 + $0xca8] sm:$0xff] }
 0x47d   :  { %3304 = vmatpush1.bf16.msra.mxu1 %v3303_v58  ;;  %3050 = vmatprep.subr.bf16.mxu0 %v3049_v59  ;;  %v3069_v58 = vpack.c.bf16 %v1255_v11, %v1251_v28  ;;  %v1250_v59 = vld [vmem:[#allocation10 + $0xb40] sm:$0xff]  ;;  %v1289_v21 = vld [vmem:[#allocation10 + $0xc78] sm:$0xff]  ;;  %v1288_v57 = vld [vmem:[#allocation10 + $0xc70] sm:$0xff] }
 0x47e   :  { %3306 = vmatprep.subr.bf16.mxu1 %v3305_v3  ;;  %v1256_v3 = vld [vmem:[#allocation10 + $0xb70] sm:$0xff]  ;;  %v3071_v42 = vpack.c.bf16 %v1254_v51, %v1250_v59  ;;  %v3341_v28 = vpack.c.bf16 %v1289_v21, %v1285_v52  ;;  %v1293_v11 = vld [vmem:[#allocation10 + $0xc98] sm:$0xff]  ;;  %v1294_v59 = vld [vmem:[#allocation10 + $0xca0] sm:$0xff] }
 0x47f   :  { %v1297_v22 = vld [vmem:[#allocation10 + $0xcb8] sm:$0xff]  ;;  %v1292_v51 = vld [vmem:[#allocation10 + $0xc90] sm:$0xff]  ;;  %v1322_v21 = vld [vmem:[#allocation10 + $0xd80] sm:$0xff] }
 0x480   :  { %3052 = vmatpush1.bf16.msra.mxu0 %v3051_v17  ;;  %v3327_v17 = vpack.c.bf16 %v1256_v3, %v1252_v31  ;;  %v3345_v31 = vpack.c.bf16 %v1297_v22, %v1293_v11  ;;  %v1299_v3 = vld [vmem:[#allocation10 + $0xcc8] sm:$0xff]  ;;  %v1329_v14 = vld [vmem:[#allocation10 + $0xdb8] sm:$0xff] }
 0x481   :  { %3308 = vmatpush1.bf16.msra.mxu1 %v3307_v34  ;;  %3054 = vmatprep.subr.bf16.mxu0 %v3053_v23  ;;  %v3073_v34 = vpack.c.bf16 %v1263_v37, %v1259_v1  ;;  %v1258_v23 = vld [vmem:[#allocation10 + $0xb80] sm:$0xff]  ;;  %v1303_v1 = vld [vmem:[#allocation10 + $0xce8] sm:$0xff]  ;;  %v1301_v37 = vld [vmem:[#allocation10 + $0xcd8] sm:$0xff] }
 0x482   :  { %3310 = vmatprep.subr.bf16.mxu1 %v3309_v30  ;;  %v1264_v30 = vld [vmem:[#allocation10 + $0xbb0] sm:$0xff]  ;;  %v3075_v33 = vpack.c.bf16 %v1262_v46, %v1258_v23 }
 0x483   :  { %v1300_v23 = vld [vmem:[#allocation10 + $0xcd0] sm:$0xff] }
 0x484   :  { %3056 = vmatpush1.bf16.msra.mxu0 %v3055_v29  ;;  %v3331_v29 = vpack.c.bf16 %v1264_v30, %v1260_v40  ;;  %v1307_v40 = vld [vmem:[#allocation10 + $0xd08] sm:$0xff]  ;;  %v1309_v30 = vld [vmem:[#allocation10 + $0xd18] sm:$0xff] }
 0x485   :  { %3312 = vmatpush1.bf16.msra.mxu1 %v3311_v39  ;;  %3058 = vmatprep.subr.bf16.mxu0 %v3057_v47  ;;  %v3077_v39 = vpack.c.bf16 %v1271_v32, %v1267_v9  ;;  %v1266_v47 = vld [vmem:[#allocation10 + $0xbc0] sm:$0xff]  ;;  %v1313_v9 = vld [vmem:[#allocation10 + $0xd38] sm:$0xff] }
 0x486   :  { %3314 = vmatprep.subr.bf16.mxu1 %v3313_v6  ;;  %v1272_v6 = vld [vmem:[#allocation10 + $0xbf0] sm:$0xff]  ;;  %v3079_v7 = vpack.c.bf16 %v1270_v19, %v1266_v47  ;;  %v3353_v47 = vpack.c.bf16 %v1313_v9, %v1309_v30 }
 0x487   :  { %v1312_v19 = vld [vmem:[#allocation10 + $0xd30] sm:$0xff] }
 0x488   :  { %3060 = vmatpush1.bf16.msra.mxu0 %v3059_v53  ;;  %v3335_v53 = vpack.c.bf16 %v1272_v6, %v1268_v2  ;;  %v1315_v2 = vld [vmem:[#allocation10 + $0xd48] sm:$0xff]  ;;  %v1317_v6 = vld [vmem:[#allocation10 + $0xd58] sm:$0xff] }
 0x489   :  { %3316 = vmatpush1.bf16.msra.mxu1 %v3315_v8  ;;  %3062 = vmatprep.subr.bf16.mxu0 %v3061_v12  ;;  %v3081_v8 = vpack.c.bf16 %v1279_v49, %v1275_v43  ;;  %v1274_v12 = vld [vmem:[#allocation10 + $0xc00] sm:$0xff]  ;;  %v1321_v43 = vld [vmem:[#allocation10 + $0xd78] sm:$0xff] }
 0x48a   :  { %3318 = vmatprep.subr.bf16.mxu1 %v3317_v63  ;;  %v1280_v63 = vld [vmem:[#allocation10 + $0xc30] sm:$0xff]  ;;  %v3083_v0 = vpack.c.bf16 %v1278_v25, %v1274_v12  ;;  %v3357_v12 = vpack.c.bf16 %v1321_v43, %v1317_v6 }
 0x48b   :  { %v1320_v25 = vld [vmem:[#allocation10 + $0xd70] sm:$0xff] }
 0x48c   :  { %3064 = vmatpush1.bf16.msra.mxu0 %v3063_v26  ;;  %v3339_v26 = vpack.c.bf16 %v1280_v63, %v1276_v13  ;;  %v1327_v13 = vld [vmem:[#allocation10 + $0xda8] sm:$0xff]  ;;  %v1325_v63 = vld [vmem:[#allocation10 + $0xd98] sm:$0xff] }
 0x48d   :  { %3320 = vmatpush1.bf16.msra.mxu1 %v3319_v10  ;;  %3066 = vmatprep.subr.bf16.mxu0 %v3065_v27  ;;  %v1282_v10 = vld [vmem:[#allocation10 + $0xc40] sm:$0xff] }
 0x48e   :  { %3322 = vmatprep.subr.bf16.mxu1 %v3321_v15  ;;  %v1286_v27 = vld [vmem:[#allocation10 + $0xc60] sm:$0xff]  ;;  %v1291_v15 = vld [vmem:[#allocation10 + $0xc88] sm:$0xff] }
 0x48f   :  { %v3087_v60 = vpack.c.bf16 %v1286_v27, %v1282_v10  ;;  %v1324_v10 = vld [vmem:[#allocation10 + $0xd90] sm:$0xff]  ;;  %v3361_v27 = vpack.c.bf16 %v1329_v14, %v1325_v63 }
 0x490   :  { %3068 = vmatpush1.bf16.msra.mxu0 %v3067_v20  ;;  %v3343_v20 = vpack.c.bf16 %v1288_v57, %v1284_v55  ;;  %v1328_v55 = vld [vmem:[#allocation10 + $0xdb0] sm:$0xff]  ;;  %v1335_v57 = vld [vmem:[#allocation10 + $0xde8] sm:$0xff] }
 0x491   :  { %3324 = vmatpush1.bf16.msra.mxu1 %v3323_v36  ;;  %3070 = vmatprep.subr.bf16.mxu0 %v3069_v58  ;;  %v3089_v36 = vpack.c.bf16 %v1295_v5, %v1291_v15  ;;  %v1290_v58 = vld [vmem:[#allocation10 + $0xc80] sm:$0xff]  ;;  %v1333_v15 = vld [vmem:[#allocation10 + $0xdd8] sm:$0xff]  ;;  %v3363_v11 = vpack.c.bf16 %v1328_v55, %v1324_v10  ;;  %v1371_v10 = vld [vmem:[#allocation10 + $0xf08] sm:$0xff] }
 0x492   :  { %3326 = vmatprep.subr.bf16.mxu1 %v3325_v4  ;;  %v1296_v4 = vld [vmem:[#allocation10 + $0xcb0] sm:$0xff]  ;;  %v3091_v54 = vpack.c.bf16 %v1294_v59, %v1290_v58  ;;  %v1337_v5 = vld [vmem:[#allocation10 + $0xdf8] sm:$0xff] }
 0x493   :  { %v3347_v50 = vpack.c.bf16 %v1296_v4, %v1292_v51  ;;  %v3365_v58 = vpack.c.bf16 %v1337_v5, %v1333_v15  ;;  %v1336_v59 = vld [vmem:[#allocation10 + $0xdf0] sm:$0xff]  ;;  %v1339_v51 = vld [vmem:[#allocation10 + $0xe08] sm:$0xff]  ;;  %v1341_v4 = vld [vmem:[#allocation10 + $0xe18] sm:$0xff] }
 0x494   :  { %3072 = vmatpush1.bf16.msra.mxu0 %v3071_v42  ;;  %v3093_v42 = vpack.c.bf16 %v1303_v1, %v1299_v3  ;;  %v1345_v3 = vld [vmem:[#allocation10 + $0xe38] sm:$0xff] }
 0x495   :  { %3328 = vmatpush1.bf16.msra.mxu1 %v3327_v17  ;;  %3074 = vmatprep.subr.bf16.mxu0 %v3073_v34  ;;  %v1298_v17 = vld [vmem:[#allocation10 + $0xcc0] sm:$0xff]  ;;  %v1373_v55 = vld [vmem:[#allocation10 + $0xf18] sm:$0xff] }
 0x496   :  { %3330 = vmatprep.subr.bf16.mxu1 %v3329_v24  ;;  %v1302_v34 = vld [vmem:[#allocation10 + $0xce0] sm:$0xff]  ;;  %v1311_v24 = vld [vmem:[#allocation10 + $0xd28] sm:$0xff] }
 0x497   :  { %v3095_v32 = vpack.c.bf16 %v1302_v34, %v1298_v17  ;;  %v3097_v61 = vpack.c.bf16 %v1311_v24, %v1307_v40  ;;  %v3369_v17 = vpack.c.bf16 %v1345_v3, %v1341_v4  ;;  %v1344_v34 = vld [vmem:[#allocation10 + $0xe30] sm:$0xff]  ;;  %v1353_v40 = vld [vmem:[#allocation10 + $0xe78] sm:$0xff] }
 0x498   :  { %3076 = vmatpush1.bf16.msra.mxu0 %v3075_v33  ;;  %v1306_v33 = vld [vmem:[#allocation10 + $0xd00] sm:$0xff] }
 0x499   :  { %3332 = vmatpush1.bf16.msra.mxu1 %v3331_v29  ;;  %3078 = vmatprep.subr.bf16.mxu0 %v3077_v39  ;;  %v1310_v29 = vld [vmem:[#allocation10 + $0xd20] sm:$0xff]  ;;  %v1308_v39 = vld [vmem:[#allocation10 + $0xd10] sm:$0xff] }
 0x49a   :  { %3334 = vmatprep.subr.bf16.mxu1 %v3333_v44  ;;  %v1319_v44 = vld [vmem:[#allocation10 + $0xd68] sm:$0xff]  ;;  %v3099_v49 = vpack.c.bf16 %v1310_v29, %v1306_v33  ;;  %v3355_v56 = vpack.c.bf16 %v1312_v19, %v1308_v39  ;;  %v1352_v29 = vld [vmem:[#allocation10 + $0xe70] sm:$0xff]  ;;  %v1357_v19 = vld [vmem:[#allocation10 + $0xe98] sm:$0xff] }
 0x49b   :  { %v3101_v18 = vpack.c.bf16 %v1319_v44, %v1315_v2  ;;  %v1355_v39 = vld [vmem:[#allocation10 + $0xe88] sm:$0xff]  ;;  %v1361_v2 = vld [vmem:[#allocation10 + $0xeb8] sm:$0xff] }
 0x49c   :  { %3080 = vmatpush1.bf16.msra.mxu0 %v3079_v7  ;;  %v1314_v7 = vld [vmem:[#allocation10 + $0xd40] sm:$0xff] }
 0x49d   :  { %3336 = vmatpush1.bf16.msra.mxu1 %v3335_v53  ;;  %3082 = vmatprep.subr.bf16.mxu0 %v3081_v8  ;;  %v1318_v53 = vld [vmem:[#allocation10 + $0xd60] sm:$0xff]  ;;  %v1316_v8 = vld [vmem:[#allocation10 + $0xd50] sm:$0xff] }
 0x49e   :  { %3338 = vmatprep.subr.bf16.mxu1 %v3337_v45  ;;  %v1323_v45 = vld [vmem:[#allocation10 + $0xd88] sm:$0xff]  ;;  %v3103_v35 = vpack.c.bf16 %v1318_v53, %v1314_v7  ;;  %v3377_v7 = vpack.c.bf16 %v1361_v2, %v1357_v19  ;;  %v1360_v53 = vld [vmem:[#allocation10 + $0xeb0] sm:$0xff] }
 0x49f   :  { %1719 = vmatmul.mubr.f32.vlgmr.msra.gmra.mrb[0].mxu0 %v5217_v48  ;;  %v3105_v52 = vpack.c.bf16 %v1327_v13, %v1323_v45  ;;  %v1369_v45 = vld [vmem:[#allocation10 + $0xef8] sm:$0xff] }
 0x4a0   :  { %2003 = vmatmul.mubr.f32.vlgmr.msra.gmra.mrb[0].mxu1 %v5217_v48  ;;  %3084 = vmatpush1.bf16.msra.mxu0 %v3083_v0  ;;  %v1305_v48 = vld [vmem:[#allocation10 + $0xcf8] sm:$0xff]  ;;  %v3359_v0 = vpack.c.bf16 %v1320_v25, %v1316_v8  ;;  %v1363_v8 = vld [vmem:[#allocation10 + $0xec8] sm:$0xff] }
 0x4a1   :  { %1789 = vmatprep.mubr.f32.mxu0 %v5225_v38  ;;  %3340 = vmatpush1.bf16.msra.mxu1 %v3339_v26  ;;  %v3349_v46 = vpack.c.bf16 %v1305_v48, %v1301_v37  ;;  %v1326_v26 = vld [vmem:[#allocation10 + $0xda0] sm:$0xff]  ;;  %v1365_v25 = vld [vmem:[#allocation10 + $0xed8] sm:$0xff] }
 0x4a2   :  { %2073 = vmatprep.mubr.f32.mxu1 %v5225_v38  ;;  %3086 = vmatprep.subr.bf16.mxu0 %v3085_v16  ;;  %v1304_v38 = vld [vmem:[#allocation10 + $0xcf0] sm:$0xff]  ;;  %v1331_v16 = vld [vmem:[#allocation10 + $0xdc8] sm:$0xff] }
 0x4a3   :  { %3342 = vmatprep.subr.bf16.mxu1 %v3341_v28  ;;  %v3351_v62 = vpack.c.bf16 %v1304_v38, %v1300_v23  ;;  %v3107_v28 = vpack.c.bf16 %v1326_v26, %v1322_v21  ;;  %v3109_v22 = vpack.c.bf16 %v1335_v57, %v1331_v16  ;;  %v1347_v23 = vld [vmem:[#allocation10 + $0xe48] sm:$0xff]  ;;  %v1349_v38 = vld [vmem:[#allocation10 + $0xe58] sm:$0xff]  ;;  %v3381_v21 = vpack.c.bf16 %v1369_v45, %v1365_v25  ;;  %v1368_v26 = vld [vmem:[#allocation10 + $0xef0] sm:$0xff] }
 0x4a4   :  { %3088 = vmatpush1.bf16.msra.mxu0 %v3087_v60  ;;  %v1330_v60 = vld [vmem:[#allocation10 + $0xdc0] sm:$0xff]  ;;  %v3373_v33 = vpack.c.bf16 %v1353_v40, %v1349_v38  ;;  %v1377_v16 = vld [vmem:[#allocation10 + $0xf38] sm:$0xff] }
 0x4a5   :  { %3344 = vmatpush1.bf16.msra.mxu1 %v3343_v20  ;;  %3090 = vmatprep.subr.bf16.mxu0 %v3089_v36  ;;  %v1334_v20 = vld [vmem:[#allocation10 + $0xde0] sm:$0xff]  ;;  %v1332_v36 = vld [vmem:[#allocation10 + $0xdd0] sm:$0xff] }
 0x4a6   :  { %3346 = vmatprep.subr.bf16.mxu1 %v3345_v31  ;;  %v1343_v31 = vld [vmem:[#allocation10 + $0xe28] sm:$0xff]  ;;  %v3111_v1 = vpack.c.bf16 %v1334_v20, %v1330_v60  ;;  %v3367_v37 = vpack.c.bf16 %v1336_v59, %v1332_v36  ;;  %v3385_v60 = vpack.c.bf16 %v1377_v16, %v1373_v55  ;;  %v1376_v20 = vld [vmem:[#allocation10 + $0xf30] sm:$0xff]  ;;  %v1381_v59 = vld [vmem:[#allocation10 + $0xf58] sm:$0xff] }
 0x4a7   :  { %v3113_v48 = vpack.c.bf16 %v1343_v31, %v1339_v51  ;;  %v1379_v36 = vld [vmem:[#allocation10 + $0xf48] sm:$0xff]  ;;  %v1385_v51 = vld [vmem:[#allocation10 + $0xf78] sm:$0xff] }
 0x4a8   :  { %3092 = vmatpush1.bf16.msra.mxu0 %v3091_v54  ;;  %v1338_v54 = vld [vmem:[#allocation10 + $0xe00] sm:$0xff]  ;;  %v2086_v45 = vld [vmem:[#allocation13 + $0x10] sm:$0xff] }
 0x4a9   :  { %3348 = vmatpush1.bf16.msra.mxu1 %v3347_v50  ;;  %3094 = vmatprep.subr.bf16.mxu0 %v3093_v42  ;;  %v1342_v50 = vld [vmem:[#allocation10 + $0xe20] sm:$0xff]  ;;  %v1340_v42 = vld [vmem:[#allocation10 + $0xe10] sm:$0xff] }
 0x4aa   :  { %3350 = vmatprep.subr.bf16.mxu1 %v3349_v46  ;;  %v1351_v46 = vld [vmem:[#allocation10 + $0xe68] sm:$0xff]  ;;  %v3115_v24 = vpack.c.bf16 %v1342_v50, %v1338_v54  ;;  %v3371_v30 = vpack.c.bf16 %v1344_v34, %v1340_v42  ;;  %v3389_v54 = vpack.c.bf16 %v1385_v51, %v1381_v59  ;;  %v1384_v50 = vld [vmem:[#allocation10 + $0xf70] sm:$0xff]  ;;  %v1389_v34 = vld [vmem:[#allocation10 + $0xf98] sm:$0xff] }
 0x4ab   :  { %v3117_v9 = vpack.c.bf16 %v1351_v46, %v1347_v23  ;;  %v1387_v42 = vld [vmem:[#allocation10 + $0xf88] sm:$0xff]  ;;  %v1393_v23 = vld [vmem:[#allocation10 + $0xfb8] sm:$0xff] }
 0x4ac   :  { %3096 = vmatpush1.bf16.msra.mxu0 %v3095_v32  ;;  %v1346_v32 = vld [vmem:[#allocation10 + $0xe40] sm:$0xff]  ;;  %v2094_v16 = vld [vmem:[#allocation13 + $0x50] sm:$0xff]  ;;  %v2105_v51 = vld [vmem:[#allocation13 + $0xa8] sm:$0xff] }
 0x4ad   :  { %3352 = vmatpush1.bf16.msra.mxu1 %v3351_v62  ;;  %3098 = vmatprep.subr.bf16.mxu0 %v3097_v61  ;;  %v1350_v62 = vld [vmem:[#allocation10 + $0xe60] sm:$0xff]  ;;  %v1348_v61 = vld [vmem:[#allocation10 + $0xe50] sm:$0xff] }
 0x4ae   :  { %3354 = vmatprep.subr.bf16.mxu1 %v3353_v47  ;;  %v1359_v47 = vld [vmem:[#allocation10 + $0xea8] sm:$0xff]  ;;  %v3119_v44 = vpack.c.bf16 %v1350_v62, %v1346_v32  ;;  %v3375_v6 = vpack.c.bf16 %v1352_v29, %v1348_v61  ;;  %v3393_v32 = vpack.c.bf16 %v1393_v23, %v1389_v34  ;;  %v1392_v62 = vld [vmem:[#allocation10 + $0xfb0] sm:$0xff]  ;;  %v1397_v29 = vld [vmem:[#allocation10 + $0xfd8] sm:$0xff] }
 0x4af   :  { %v3121_v43 = vpack.c.bf16 %v1359_v47, %v1355_v39  ;;  %v1395_v61 = vld [vmem:[#allocation10 + $0xfc8] sm:$0xff]  ;;  %v1401_v39 = vld [vmem:[#allocation10 + $0xff8] sm:$0xff] }
 0x4b0   :  { %3100 = vmatpush1.bf16.msra.mxu0 %v3099_v49  ;;  %v1354_v49 = vld [vmem:[#allocation10 + $0xe80] sm:$0xff]  ;;  %v2102_v59 = vld [vmem:[#allocation13 + $0x90] sm:$0xff]  ;;  %v2113_v23 = vld [vmem:[#allocation13 + $0xe8] sm:$0xff] }
 0x4b1   :  { %3356 = vmatpush1.bf16.msra.mxu1 %v3355_v56  ;;  %3102 = vmatprep.subr.bf16.mxu0 %v3101_v18  ;;  %v1358_v56 = vld [vmem:[#allocation10 + $0xea0] sm:$0xff]  ;;  %v1356_v18 = vld [vmem:[#allocation10 + $0xe90] sm:$0xff] }
 0x4b2   :  { %3358 = vmatprep.subr.bf16.mxu1 %v3357_v12  ;;  %v1367_v12 = vld [vmem:[#allocation10 + $0xee8] sm:$0xff]  ;;  %v3123_v13 = vpack.c.bf16 %v1358_v56, %v1354_v49  ;;  %v3379_v63 = vpack.c.bf16 %v1360_v53, %v1356_v18  ;;  %v3397_v49 = vpack.c.bf16 %v1401_v39, %v1397_v29  ;;  %v1400_v56 = vld [vmem:[#allocation10 + $0xff0] sm:$0xff] }
 0x4b3   :  { %v3125_v14 = vpack.c.bf16 %v1367_v12, %v1363_v8  ;;  %v2085_v18 = vld [vmem:[#allocation13 + $0x8] sm:$0xff]  ;;  %v2084_v25 = vld [vmem:[#allocation13] sm:$0xff]  ;;  %v2110_v34 = vld [vmem:[#allocation13 + $0xd0] sm:$0xff] }
 0x4b4   :  { %3104 = vmatpush1.bf16.msra.mxu0 %v3103_v35  ;;  %v1362_v35 = vld [vmem:[#allocation10 + $0xec0] sm:$0xff]  ;;  %v2118_v29 = vld [vmem:[#allocation13 + $0x110] sm:$0xff]  ;;  %v2121_v39 = vld [vmem:[#allocation13 + $0x128] sm:$0xff] }
 0x4b5   :  { %3360 = vmatpush1.bf16.msra.mxu1 %v3359_v0  ;;  %3106 = vmatprep.subr.bf16.mxu0 %v3105_v52  ;;  %v1366_v0 = vld [vmem:[#allocation10 + $0xee0] sm:$0xff]  ;;  %v1364_v52 = vld [vmem:[#allocation10 + $0xed0] sm:$0xff] }
 0x4b6   :  { %3362 = vmatprep.subr.bf16.mxu1 %v3361_v27  ;;  %v1375_v27 = vld [vmem:[#allocation10 + $0xf28] sm:$0xff]  ;;  %v3127_v57 = vpack.c.bf16 %v1366_v0, %v1362_v35  ;;  %v3383_v15 = vpack.c.bf16 %v1368_v26, %v1364_v52  ;;  %v2090_v52 = vld [vmem:[#allocation13 + $0x30] sm:$0xff]  ;;  %v2095_v26 = vld [vmem:[#allocation13 + $0x58] sm:$0xff] }
 0x4b7   :  { %v3129_v5 = vpack.c.bf16 %v1375_v27, %v1371_v10  ;;  %v2088_v0 = vld [vmem:[#allocation13 + $0x20] sm:$0xff] }
 0x4b8   :  { %3108 = vmatpush1.bf16.msra.mxu0 %v3107_v28  ;;  %v1370_v28 = vld [vmem:[#allocation10 + $0xf00] sm:$0xff]  ;;  %v3407_v10 = vpack.c.bf16 %v2090_v52, %v2088_v0 }
 0x4b9   :  { %3364 = vmatpush1.bf16.msra.mxu1 %v3363_v11  ;;  %3110 = vmatprep.subr.bf16.mxu0 %v3109_v22  ;;  %v1374_v11 = vld [vmem:[#allocation10 + $0xf20] sm:$0xff]  ;;  %v1372_v22 = vld [vmem:[#allocation10 + $0xf10] sm:$0xff] }
 0x4ba   :  { %3366 = vmatprep.subr.bf16.mxu1 %v3365_v58  ;;  %v1383_v58 = vld [vmem:[#allocation10 + $0xf68] sm:$0xff]  ;;  %v3131_v31 = vpack.c.bf16 %v1374_v11, %v1370_v28  ;;  %v3387_v4 = vpack.c.bf16 %v1376_v20, %v1372_v22  ;;  %v2098_v22 = vld [vmem:[#allocation13 + $0x70] sm:$0xff]  ;;  %v2103_v20 = vld [vmem:[#allocation13 + $0x98] sm:$0xff] }
 0x4bb   :  { %v3133_v3 = vpack.c.bf16 %v1383_v58, %v1379_v36  ;;  %v2092_v55 = vld [vmem:[#allocation13 + $0x40] sm:$0xff] }
 0x4bc   :  { %3112 = vmatpush1.bf16.msra.mxu0 %v3111_v1  ;;  %v1378_v1 = vld [vmem:[#allocation10 + $0xf40] sm:$0xff] }
 0x4bd   :  { %3368 = vmatpush1.bf16.msra.mxu1 %v3367_v37  ;;  %3114 = vmatprep.subr.bf16.mxu0 %v3113_v48  ;;  %v1382_v37 = vld [vmem:[#allocation10 + $0xf60] sm:$0xff]  ;;  %v1380_v48 = vld [vmem:[#allocation10 + $0xf50] sm:$0xff] }
 0x4be   :  { %3370 = vmatprep.subr.bf16.mxu1 %v3369_v17  ;;  %v1391_v17 = vld [vmem:[#allocation10 + $0xfa8] sm:$0xff]  ;;  %v3135_v46 = vpack.c.bf16 %v1382_v37, %v1378_v1  ;;  %v3391_v38 = vpack.c.bf16 %v1384_v50, %v1380_v48  ;;  %v2106_v37 = vld [vmem:[#allocation13 + $0xb0] sm:$0xff] }
 0x4bf   :  { %v3137_v40 = vpack.c.bf16 %v1391_v17, %v1387_v42  ;;  %v2096_v11 = vld [vmem:[#allocation13 + $0x60] sm:$0xff]  ;;  %v2109_v48 = vld [vmem:[#allocation13 + $0xc8] sm:$0xff] }
 0x4c0   :  { %3116 = vmatpush1.bf16.msra.mxu0 %v3115_v24  ;;  %v1386_v24 = vld [vmem:[#allocation10 + $0xf80] sm:$0xff]  ;;  %v3415_v36 = vpack.c.bf16 %v2098_v22, %v2096_v11 }
 0x4c1   :  { %3372 = vmatpush1.bf16.msra.mxu1 %v3371_v30  ;;  %3118 = vmatprep.subr.bf16.mxu0 %v3117_v9  ;;  %v1390_v30 = vld [vmem:[#allocation10 + $0xfa0] sm:$0xff]  ;;  %v1388_v9 = vld [vmem:[#allocation10 + $0xf90] sm:$0xff] }
 0x4c2   :  { %3374 = vmatprep.subr.bf16.mxu1 %v3373_v33  ;;  %v1399_v33 = vld [vmem:[#allocation10 + $0xfe8] sm:$0xff]  ;;  %v3139_v47 = vpack.c.bf16 %v1390_v30, %v1386_v24  ;;  %v3395_v19 = vpack.c.bf16 %v1392_v62, %v1388_v9  ;;  %v2114_v30 = vld [vmem:[#allocation13 + $0xf0] sm:$0xff] }
 0x4c3   :  { %v3141_v2 = vpack.c.bf16 %v1399_v33, %v1395_v61  ;;  %v2100_v58 = vld [vmem:[#allocation13 + $0x80] sm:$0xff]  ;;  %v2117_v9 = vld [vmem:[#allocation13 + $0x108] sm:$0xff] }
 0x4c4   :  { %3120 = vmatpush1.bf16.msra.mxu0 %v3119_v44  ;;  %v1394_v44 = vld [vmem:[#allocation10 + $0xfc0] sm:$0xff] }
 0x4c5   :  { %3376 = vmatpush1.bf16.msra.mxu1 %v3375_v6  ;;  %3122 = vmatprep.subr.bf16.mxu0 %v3121_v43  ;;  %v1398_v6 = vld [vmem:[#allocation10 + $0xfe0] sm:$0xff]  ;;  %v1396_v43 = vld [vmem:[#allocation10 + $0xfd0] sm:$0xff] }
 0x4c6   :  { %3378 = vmatprep.subr.bf16.mxu1 %v3377_v7  ;;  %v2087_v7 = vld [vmem:[#allocation13 + $0x18] sm:$0xff]  ;;  %v3143_v53 = vpack.c.bf16 %v1398_v6, %v1394_v44  ;;  %v3399_v8 = vpack.c.bf16 %v1400_v56, %v1396_v43  ;;  %v2104_v1 = vld [vmem:[#allocation13 + $0xa0] sm:$0xff]  ;;  %v2122_v6 = vld [vmem:[#allocation13 + $0x130] sm:$0xff] }
 0x4c7   :  { %v3401_v12 = vpack.c.bf16 %v2087_v7, %v2085_v18  ;;  %v3423_v50 = vpack.c.bf16 %v2106_v37, %v2104_v1  ;;  %v2108_v17 = vld [vmem:[#allocation13 + $0xc0] sm:$0xff]  ;;  %v2125_v43 = vld [vmem:[#allocation13 + $0x148] sm:$0xff] }
 0x4c8   :  { %3124 = vmatpush1.bf16.msra.mxu0 %v3123_v13  ;;  %v2089_v13 = vld [vmem:[#allocation13 + $0x28] sm:$0xff]  ;;  %v2112_v24 = vld [vmem:[#allocation13 + $0xe0] sm:$0xff] }
 0x4c9   :  { %3380 = vmatpush1.bf16.msra.mxu1 %v3379_v63  ;;  %3126 = vmatprep.subr.bf16.mxu0 %v3125_v14  ;;  %v2091_v63 = vld [vmem:[#allocation13 + $0x38] sm:$0xff]  ;;  %v3403_v14 = vpack.c.bf16 %v2086_v45, %v2084_v25  ;;  %v3431_v62 = vpack.c.bf16 %v2114_v30, %v2112_v24  ;;  %v2116_v33 = vld [vmem:[#allocation13 + $0x100] sm:$0xff] }
 0x4ca   :  { %3382 = vmatprep.subr.bf16.mxu1 %v3381_v21  ;;  %v3405_v35 = vpack.c.bf16 %v2091_v63, %v2089_v13  ;;  %v2093_v21 = vld [vmem:[#allocation13 + $0x48] sm:$0xff]  ;;  %v2120_v44 = vld [vmem:[#allocation13 + $0x120] sm:$0xff]  ;;  %v2130_v63 = vld [vmem:[#allocation13 + $0x170] sm:$0xff] }
 0x4cb   :  { %v3409_v27 = vpack.c.bf16 %v2095_v26, %v2093_v21  ;;  %v3439_v56 = vpack.c.bf16 %v2122_v6, %v2120_v44  ;;  %v2124_v7 = vld [vmem:[#allocation13 + $0x140] sm:$0xff]  ;;  %v2134_v26 = vld [vmem:[#allocation13 + $0x190] sm:$0xff] }
 0x4cc   :  { %3128 = vmatpush1.bf16.msra.mxu0 %v3127_v57  ;;  %v2097_v57 = vld [vmem:[#allocation13 + $0x68] sm:$0xff]  ;;  %v2128_v13 = vld [vmem:[#allocation13 + $0x160] sm:$0xff] }
 0x4cd   :  { %3384 = vmatpush1.bf16.msra.mxu1 %v3383_v15  ;;  %3130 = vmatprep.subr.bf16.mxu0 %v3129_v5  ;;  %v2099_v15 = vld [vmem:[#allocation13 + $0x78] sm:$0xff]  ;;  %v3411_v5 = vpack.c.bf16 %v2094_v16, %v2092_v55  ;;  %v3447_v0 = vpack.c.bf16 %v2130_v63, %v2128_v13  ;;  %v2132_v21 = vld [vmem:[#allocation13 + $0x180] sm:$0xff] }
 0x4ce   :  { %3386 = vmatprep.subr.bf16.mxu1 %v3385_v60  ;;  %v3413_v28 = vpack.c.bf16 %v2099_v15, %v2097_v57  ;;  %v2101_v60 = vld [vmem:[#allocation13 + $0x88] sm:$0xff]  ;;  %v3451_v55 = vpack.c.bf16 %v2134_v26, %v2132_v21  ;;  %v2136_v57 = vld [vmem:[#allocation13 + $0x1a0] sm:$0xff]  ;;  %v2138_v15 = vld [vmem:[#allocation13 + $0x1b0] sm:$0xff] }
 0x4cf   :  { %v3455_v11 = vpack.c.bf16 %v2138_v15, %v2136_v57  ;;  %v2371_v24 = vld [vmem:[#allocation16 + $0x18] sm:$0xff]  ;;  %v2388_v30 = vld [vmem:[#allocation16 + $0xa0] sm:$0xff] }
 0x4d0   :  { %3132 = vmatpush1.bf16.msra.mxu0 %v3131_v31  ;;  %v2107_v31 = vld [vmem:[#allocation13 + $0xb8] sm:$0xff]  ;;  %v2392_v6 = vld [vmem:[#allocation16 + $0xc0] sm:$0xff] }
 0x4d1   :  { %3388 = vmatpush1.bf16.msra.mxu1 %v3387_v4  ;;  %3134 = vmatprep.subr.bf16.mxu0 %v3133_v3  ;;  %v3419_v4 = vpack.c.bf16 %v2102_v59, %v2100_v58  ;;  %v3421_v3 = vpack.c.bf16 %v2107_v31, %v2105_v51  ;;  %v2147_v58 = vld [vmem:[#allocation13 + $0x1f8] sm:$0xff]  ;;  %v2144_v59 = vld [vmem:[#allocation13 + $0x1e0] sm:$0xff]  ;;  %v2146_v31 = vld [vmem:[#allocation13 + $0x1f0] sm:$0xff] }
 0x4d2   :  { %3390 = vmatprep.subr.bf16.mxu1 %v3389_v54  ;;  %v2111_v54 = vld [vmem:[#allocation13 + $0xd8] sm:$0xff]  ;;  %v3463_v1 = vpack.c.bf16 %v2146_v31, %v2144_v59  ;;  %v2396_v63 = vld [vmem:[#allocation16 + $0xe0] sm:$0xff] }
 0x4d3   :  { %v3425_v42 = vpack.c.bf16 %v2111_v54, %v2109_v48  ;;  %v2384_v48 = vld [vmem:[#allocation16 + $0x80] sm:$0xff]  ;;  %v2385_v54 = vld [vmem:[#allocation16 + $0x88] sm:$0xff]  ;;  %v2375_v44 = vld [vmem:[#allocation16 + $0x38] sm:$0xff] }
 0x4d4   :  { %3136 = vmatpush1.bf16.msra.mxu0 %v3135_v46  ;;  %v2115_v46 = vld [vmem:[#allocation13 + $0xf8] sm:$0xff]  ;;  %v5757_v21 = vld [vmem:[#allocation29_spill] sm:$0xff] }
 0x4d5   :  { %3392 = vmatpush1.bf16.msra.mxu1 %v3391_v38  ;;  %3138 = vmatprep.subr.bf16.mxu0 %v3137_v40  ;;  %v3427_v38 = vpack.c.bf16 %v2110_v34, %v2108_v17  ;;  %v3429_v40 = vpack.c.bf16 %v2115_v46, %v2113_v23  ;;  %v2369_v17 = vld [vmem:[#allocation16 + $0x8] sm:$0xff]  ;;  %v2386_v34 = vld [vmem:[#allocation16 + $0x90] sm:$0xff]  ;;  %v2387_v23 = vld [vmem:[#allocation16 + $0x98] sm:$0xff] }
 0x4d6   :  { %3394 = vmatprep.subr.bf16.mxu1 %v3393_v32  ;;  %v2119_v32 = vld [vmem:[#allocation13 + $0x118] sm:$0xff] }
 0x4d7   :  { %v3433_v61 = vpack.c.bf16 %v2119_v32, %v2117_v9  ;;  %v2389_v9 = vld [vmem:[#allocation16 + $0xa8] sm:$0xff]  ;;  %v2379_v13 = vld [vmem:[#allocation16 + $0x58] sm:$0xff] }
 0x4d8   :  { %3140 = vmatpush1.bf16.msra.mxu0 %v3139_v47  ;;  %v2123_v47 = vld [vmem:[#allocation13 + $0x138] sm:$0xff] }
 0x4d9   :  { %3396 = vmatpush1.bf16.msra.mxu1 %v3395_v19  ;;  %3142 = vmatprep.subr.bf16.mxu0 %v3141_v2  ;;  %v3435_v19 = vpack.c.bf16 %v2118_v29, %v2116_v33  ;;  %v3437_v2 = vpack.c.bf16 %v2123_v47, %v2121_v39  ;;  %v2373_v33 = vld [vmem:[#allocation16 + $0x28] sm:$0xff]  ;;  %v2390_v29 = vld [vmem:[#allocation16 + $0xb0] sm:$0xff]  ;;  %v2391_v39 = vld [vmem:[#allocation16 + $0xb8] sm:$0xff] }
 0x4da   :  { %3398 = vmatprep.subr.bf16.mxu1 %v3397_v49  ;;  %v2127_v49 = vld [vmem:[#allocation13 + $0x158] sm:$0xff] }
 0x4db   :  { %v3441_v18 = vpack.c.bf16 %v2127_v49, %v2125_v43  ;;  %v2393_v43 = vld [vmem:[#allocation16 + $0xc8] sm:$0xff] }
 0x4dc   :  { %3144 = vmatpush1.bf16.msra.mxu0 %v3143_v53  ;;  %v2126_v53 = vld [vmem:[#allocation13 + $0x150] sm:$0xff] }
 0x4dd   :  { %3400 = vmatpush1.bf16.msra.mxu1 %v3399_v8  ;;  %3402 = vmatprep.subr.bf16.mxu0 %v3401_v12  ;;  %v2129_v8 = vld [vmem:[#allocation13 + $0x168] sm:$0xff]  ;;  %v2131_v12 = vld [vmem:[#allocation13 + $0x178] sm:$0xff]  ;;  %v3443_v25 = vpack.c.bf16 %v2126_v53, %v2124_v7 }
 0x4de   :  { %v3445_v45 = vpack.c.bf16 %v2131_v12, %v2129_v8  ;;  %v2377_v7 = vld [vmem:[#allocation16 + $0x48] sm:$0xff]  ;;  %v2394_v53 = vld [vmem:[#allocation16 + $0xd0] sm:$0xff]  ;;  %v2395_v8 = vld [vmem:[#allocation16 + $0xd8] sm:$0xff] }
 0x4df   :  { %1790 = vmatmul.mubr.f32.vlgmr.msra.gmra.mrb[0].mxu0 %v5248_v41 }
 0x4e0   :  { %2074 = vmatmul.mubr.f32.vlgmr.msra.gmra.mrb[0].mxu1 %v5248_v41  ;;  %3404 = vmatpush1.bf16.msra.mxu0 %v3403_v14  ;;  %v3417_v41 = vpack.c.bf16 %v2103_v20, %v2101_v60  ;;  %v2133_v14 = vld [vmem:[#allocation13 + $0x188] sm:$0xff]  ;;  %v2140_v60 = vld [vmem:[#allocation13 + $0x1c0] sm:$0xff]  ;;  %v2142_v20 = vld [vmem:[#allocation13 + $0x1d0] sm:$0xff] }
 0x4e1   :  { %3406 = vmatprep.subr.bf16.mxu0 %v3405_v35  ;;  %v2135_v35 = vld [vmem:[#allocation13 + $0x198] sm:$0xff] }
 0x4e2   :  { %v3449_v52 = vpack.c.bf16 %v2135_v35, %v2133_v14  ;;  %v2397_v14 = vld [vmem:[#allocation16 + $0xe8] sm:$0xff] }
 0x4e4   :  { %3408 = vmatpush1.bf16.msra.mxu0 %v3407_v10  ;;  %v2137_v10 = vld [vmem:[#allocation13 + $0x1a8] sm:$0xff] }
 0x4e5   :  { %3410 = vmatprep.subr.bf16.mxu0 %v3409_v27  ;;  %v2139_v27 = vld [vmem:[#allocation13 + $0x1b8] sm:$0xff] }
 0x4e6   :  { %v3453_v16 = vpack.c.bf16 %v2139_v27, %v2137_v10  ;;  %v5758_v10 = vld [vmem:[#allocation30_spill] sm:$0xff] }
 0x4e8   :  { %3412 = vmatpush1.bf16.msra.mxu0 %v3411_v5  ;;  %v2141_v5 = vld [vmem:[#allocation13 + $0x1c8] sm:$0xff] }
 0x4e9   :  { %3414 = vmatprep.subr.bf16.mxu0 %v3413_v28  ;;  %v2143_v28 = vld [vmem:[#allocation13 + $0x1d8] sm:$0xff] }
 0x4ea   :  { %v3457_v22 = vpack.c.bf16 %v2143_v28, %v2141_v5 }
 0x4ec   :  { %3416 = vmatpush1.bf16.msra.mxu0 %v3415_v36  ;;  %v3459_v36 = vpack.c.bf16 %v2142_v20, %v2140_v60 }
 0x4ed   :  { %3418 = vmatprep.subr.bf16.mxu0 %v3417_v41  ;;  %v2145_v41 = vld [vmem:[#allocation13 + $0x1e8] sm:$0xff] }
 0x4ee   :  { %v3461_v51 = vpack.c.bf16 %v2147_v58, %v2145_v41  ;;  %v2155_v41 = vld [vmem:[#allocation13 + $0x238] sm:$0xff] }
 0x4f0   :  { %3420 = vmatpush1.bf16.msra.mxu0 %v3419_v4  ;;  %v2149_v4 = vld [vmem:[#allocation13 + $0x208] sm:$0xff] }
 0x4f1   :  { %3422 = vmatprep.subr.bf16.mxu0 %v3421_v3  ;;  %v2151_v3 = vld [vmem:[#allocation13 + $0x218] sm:$0xff] }
 0x4f2   :  { %v3465_v37 = vpack.c.bf16 %v2151_v3, %v2149_v4  ;;  %v2152_v3 = vld [vmem:[#allocation13 + $0x220] sm:$0xff] }
 0x4f4   :  { %3424 = vmatpush1.bf16.msra.mxu0 %v3423_v50  ;;  %v2368_v50 = vld [vmem:[#allocation16] sm:$0xff] }
 0x4f5   :  { %3426 = vmatprep.subr.bf16.mxu0 %v3425_v42  ;;  %v3529_v42 = vpack.c.bf16 %v2385_v54, %v2384_v48  ;;  %v3531_v46 = vpack.c.bf16 %v2369_v17, %v2368_v50  ;;  %v2157_v48 = vld [vmem:[#allocation13 + $0x248] sm:$0xff]  ;;  %v2159_v54 = vld [vmem:[#allocation13 + $0x258] sm:$0xff]  ;;  %v2156_v17 = vld [vmem:[#allocation13 + $0x240] sm:$0xff] }
 0x4f7   :  { %3530 = vmatprep.subr.bf16.mxu1 %v3529_v42  ;;  %v3473_v42 = vpack.c.bf16 %v2159_v54, %v2157_v48  ;;  %v2197_v48 = vld [vmem:[#allocation13 + $0x388] sm:$0xff]  ;;  %v2199_v54 = vld [vmem:[#allocation13 + $0x398] sm:$0xff] }
 0x4f8   :  { %3428 = vmatpush1.bf16.msra.mxu0 %v3427_v38  ;;  %v3533_v38 = vpack.c.bf16 %v2387_v23, %v2386_v34  ;;  %3532 = vmatpush3.bf16.msra.mxu1 %v3531_v46  ;;  %v2158_v34 = vld [vmem:[#allocation13 + $0x250] sm:$0xff]  ;;  %v2161_v23 = vld [vmem:[#allocation13 + $0x268] sm:$0xff]  ;;  %v2163_v46 = vld [vmem:[#allocation13 + $0x278] sm:$0xff] }
 0x4f9   :  { %3430 = vmatprep.subr.bf16.mxu0 %v3429_v40  ;;  %v2370_v40 = vld [vmem:[#allocation16 + $0x10] sm:$0xff] }
 0x4fa   :  { %v3535_v32 = vpack.c.bf16 %v2371_v24, %v2370_v40  ;;  %3534 = vmatprep.subr.bf16.mxu1 %v3533_v38  ;;  %v3475_v38 = vpack.c.bf16 %v2158_v34, %v2156_v17  ;;  %v3477_v40 = vpack.c.bf16 %v2163_v46, %v2161_v23  ;;  %v2160_v24 = vld [vmem:[#allocation13 + $0x260] sm:$0xff]  ;;  %v2198_v34 = vld [vmem:[#allocation13 + $0x390] sm:$0xff]  ;;  %v2201_v23 = vld [vmem:[#allocation13 + $0x3a8] sm:$0xff] }
 0x4fb   :  { %v2196_v17 = vld [vmem:[#allocation13 + $0x380] sm:$0xff]  ;;  %v2203_v46 = vld [vmem:[#allocation13 + $0x3b8] sm:$0xff] }
 0x4fc   :  { %3432 = vmatpush1.bf16.msra.mxu0 %v3431_v62  ;;  %v3537_v62 = vpack.c.bf16 %v2389_v9, %v2388_v30  ;;  %3536 = vmatpush3.bf16.msra.mxu1 %v3535_v32  ;;  %v2162_v30 = vld [vmem:[#allocation13 + $0x270] sm:$0xff]  ;;  %v2165_v9 = vld [vmem:[#allocation13 + $0x288] sm:$0xff]  ;;  %v2167_v32 = vld [vmem:[#allocation13 + $0x298] sm:$0xff] }
 0x4fd   :  { %3434 = vmatprep.subr.bf16.mxu0 %v3433_v61  ;;  %v2372_v61 = vld [vmem:[#allocation16 + $0x20] sm:$0xff] }
 0x4fe   :  { %v3539_v47 = vpack.c.bf16 %v2373_v33, %v2372_v61  ;;  %3538 = vmatprep.subr.bf16.mxu1 %v3537_v62  ;;  %v3479_v62 = vpack.c.bf16 %v2162_v30, %v2160_v24  ;;  %v3481_v61 = vpack.c.bf16 %v2167_v32, %v2165_v9  ;;  %v2164_v33 = vld [vmem:[#allocation13 + $0x280] sm:$0xff]  ;;  %v2202_v30 = vld [vmem:[#allocation13 + $0x3b0] sm:$0xff]  ;;  %v2205_v9 = vld [vmem:[#allocation13 + $0x3c8] sm:$0xff] }
 0x4ff   :  { %v2200_v24 = vld [vmem:[#allocation13 + $0x3a0] sm:$0xff]  ;;  %v2207_v32 = vld [vmem:[#allocation13 + $0x3d8] sm:$0xff] }
 0x500   :  { %3436 = vmatpush1.bf16.msra.mxu0 %v3435_v19  ;;  %v3541_v19 = vpack.c.bf16 %v2391_v39, %v2390_v29  ;;  %3540 = vmatpush3.bf16.msra.mxu1 %v3539_v47  ;;  %v2166_v29 = vld [vmem:[#allocation13 + $0x290] sm:$0xff]  ;;  %v2169_v39 = vld [vmem:[#allocation13 + $0x2a8] sm:$0xff]  ;;  %v2171_v47 = vld [vmem:[#allocation13 + $0x2b8] sm:$0xff] }
 0x501   :  { %3438 = vmatprep.subr.bf16.mxu0 %v3437_v2  ;;  %v2374_v2 = vld [vmem:[#allocation16 + $0x30] sm:$0xff] }
 0x502   :  { %v3543_v49 = vpack.c.bf16 %v2375_v44, %v2374_v2  ;;  %3542 = vmatprep.subr.bf16.mxu1 %v3541_v19  ;;  %v3483_v19 = vpack.c.bf16 %v2166_v29, %v2164_v33  ;;  %v3485_v2 = vpack.c.bf16 %v2171_v47, %v2169_v39  ;;  %v2168_v44 = vld [vmem:[#allocation13 + $0x2a0] sm:$0xff]  ;;  %v2206_v29 = vld [vmem:[#allocation13 + $0x3d0] sm:$0xff]  ;;  %v2209_v39 = vld [vmem:[#allocation13 + $0x3e8] sm:$0xff] }
 0x503   :  { %v2204_v33 = vld [vmem:[#allocation13 + $0x3c0] sm:$0xff]  ;;  %v2211_v47 = vld [vmem:[#allocation13 + $0x3f8] sm:$0xff] }
 0x504   :  { %3440 = vmatpush1.bf16.msra.mxu0 %v3439_v56  ;;  %v3545_v56 = vpack.c.bf16 %v2393_v43, %v2392_v6  ;;  %3544 = vmatpush3.bf16.msra.mxu1 %v3543_v49  ;;  %v2170_v6 = vld [vmem:[#allocation13 + $0x2b0] sm:$0xff]  ;;  %v2173_v43 = vld [vmem:[#allocation13 + $0x2c8] sm:$0xff]  ;;  %v2175_v49 = vld [vmem:[#allocation13 + $0x2d8] sm:$0xff] }
 0x505   :  { %3442 = vmatprep.subr.bf16.mxu0 %v3441_v18  ;;  %v2376_v18 = vld [vmem:[#allocation16 + $0x40] sm:$0xff] }
 0x506   :  { %v3547_v12 = vpack.c.bf16 %v2377_v7, %v2376_v18  ;;  %3546 = vmatprep.subr.bf16.mxu1 %v3545_v56  ;;  %v3487_v56 = vpack.c.bf16 %v2170_v6, %v2168_v44  ;;  %v3489_v18 = vpack.c.bf16 %v2175_v49, %v2173_v43  ;;  %v2172_v7 = vld [vmem:[#allocation13 + $0x2c0] sm:$0xff]  ;;  %v3525_v6 = vpack.c.bf16 %v2211_v47, %v2209_v39  ;;  %v2210_v49 = vld [vmem:[#allocation13 + $0x3f0] sm:$0xff] }
 0x507   :  { %v2208_v43 = vld [vmem:[#allocation13 + $0x3e0] sm:$0xff]  ;;  %v2574_v39 = vld [vmem:[%s5380_s12 + $0x10] sm:$0xff] }
 0x508   :  { %3444 = vmatpush1.bf16.msra.mxu0 %v3443_v25  ;;  %v3549_v25 = vpack.c.bf16 %v2395_v8, %v2394_v53  ;;  %3548 = vmatpush3.bf16.msra.mxu1 %v3547_v12  ;;  %v2174_v53 = vld [vmem:[#allocation13 + $0x2d0] sm:$0xff]  ;;  %v2177_v8 = vld [vmem:[#allocation13 + $0x2e8] sm:$0xff]  ;;  %v2179_v12 = vld [vmem:[#allocation13 + $0x2f8] sm:$0xff] }
 0x509   :  { %3446 = vmatprep.subr.bf16.mxu0 %v3445_v45  ;;  %v2378_v45 = vld [vmem:[#allocation16 + $0x50] sm:$0xff]  ;;  %v2575_v47 = vld [vmem:[%s5380_s12 + $0x18] sm:$0xff] }
 0x50a   :  { %v3551_v35 = vpack.c.bf16 %v2379_v13, %v2378_v45  ;;  %3550 = vmatprep.subr.bf16.mxu1 %v3549_v25  ;;  %v3491_v25 = vpack.c.bf16 %v2174_v53, %v2172_v7  ;;  %v3493_v45 = vpack.c.bf16 %v2179_v12, %v2177_v8  ;;  %v2176_v13 = vld [vmem:[#allocation13 + $0x2e0] sm:$0xff]  ;;  %v2381_v8 = vld [vmem:[#allocation16 + $0x68] sm:$0xff] }
 0x50b   :  { %v2380_v53 = vld [vmem:[#allocation16 + $0x60] sm:$0xff] }
 0x50c   :  { %3448 = vmatpush1.bf16.msra.mxu0 %v3447_v0  ;;  %v3553_v0 = vpack.c.bf16 %v2397_v14, %v2396_v63  ;;  %3552 = vmatpush3.bf16.msra.mxu1 %v3551_v35  ;;  %v2178_v63 = vld [vmem:[#allocation13 + $0x2f0] sm:$0xff]  ;;  %v2181_v14 = vld [vmem:[#allocation13 + $0x308] sm:$0xff]  ;;  %v2183_v35 = vld [vmem:[#allocation13 + $0x318] sm:$0xff]  ;;  %v3555_v12 = vpack.c.bf16 %v2381_v8, %v2380_v53 }
 0x50d   :  { %3450 = vmatprep.subr.bf16.mxu0 %v3449_v52  ;;  %v5256_v52 = vld [vmem:[#allocation11] sm:$0xf] }
 0x50e   :  { %3554 = vmatprep.subr.bf16.mxu1 %v3553_v0  ;;  %v1407_v26 = vrot.slane %v5256_v52, %v5757_v21  ;;  %v1411_v27 = vrot.slane %v5256_v52, %v5758_v10  ;;  %v3495_v0 = vpack.c.bf16 %v2178_v63, %v2176_v13  ;;  %v2382_v13 = vld [vmem:[#allocation16 + $0x70] sm:$0xff] }
 0x510   :  { %3452 = vmatpush1.bf16.msra.mxu0 %v3451_v55  ;;  %v5759_v55 = vld [vmem:[#allocation32_spill] sm:$0xff]  ;;  %3556 = vmatpush3.bf16.msra.mxu1 %v3555_v12 }
 0x511   :  { %3454 = vmatprep.subr.bf16.mxu0 %v3453_v16  ;;  %v1419_v16 = vrot.slane %v5256_v52, %v5759_v55  ;;  %v2182_v55 = vld [vmem:[#allocation13 + $0x310] sm:$0xff] }
 0x514   :  { %3456 = vmatpush1.bf16.msra.mxu0 %v3455_v11  ;;  %v2148_v11 = vld [vmem:[#allocation13 + $0x200] sm:$0xff] }
 0x515   :  { %3458 = vmatprep.subr.bf16.mxu0 %v3457_v22  ;;  %v2150_v22 = vld [vmem:[#allocation13 + $0x210] sm:$0xff] }
 0x518   :  { %3460 = vmatpush1.bf16.msra.mxu0 %v3459_v36  ;;  %v2153_v36 = vld [vmem:[#allocation13 + $0x228] sm:$0xff] }
 0x519   :  { %3462 = vmatprep.subr.bf16.mxu0 %v3461_v51  ;;  %v3467_v51 = vpack.c.bf16 %v2150_v22, %v2148_v11  ;;  %v3469_v4 = vpack.c.bf16 %v2155_v41, %v2153_v36  ;;  %v2184_v11 = vld [vmem:[#allocation13 + $0x320] sm:$0xff]  ;;  %v2186_v22 = vld [vmem:[#allocation13 + $0x330] sm:$0xff] }
 0x51a   :  { %v3503_v36 = vpack.c.bf16 %v2186_v22, %v2184_v11 }
 0x51c   :  { %3464 = vmatpush1.bf16.msra.mxu0 %v3463_v1  ;;  %v2154_v1 = vld [vmem:[#allocation13 + $0x230] sm:$0xff] }
 0x51d   :  { %3466 = vmatprep.subr.bf16.mxu0 %v3465_v37  ;;  %v3471_v50 = vpack.c.bf16 %v2154_v1, %v2152_v3  ;;  %v2192_v1 = vld [vmem:[#allocation13 + $0x360] sm:$0xff] }
 0x5b2   :  { %v1791_v57 = vpop.f32.mrb[0].mxu0 }
 0x5b3   :  { %v3600_v15 = vadd.f32 %v1791_v57, %v1407_v26  ;;  %v5264_v5 = vpop.f32.mrb[0].mxu1  ;;  %v1793_v28 = vpop.f32.mrb[1].mxu0  ;;  %v3497_v26 = vpack.c.bf16 %v2183_v35, %v2181_v14  ;;  %v2187_v57 = vld [vmem:[#allocation13 + $0x338] sm:$0xff]  ;;  %v3967_v35 = vmov 0.0|0.0  }
 0x5b4   :  { %v3601_v60 = vadd.f32 %v1793_v28, %v1411_v27  ;;  %v2077_v20 = vpop.f32.mrb[1].mxu1  ;;  %v2180_v27 = vld [vmem:[#allocation13 + $0x300] sm:$0xff] }
 0x5b5   :  { %v3603_v58 = vadd.f32 %v2077_v20, %v1419_v16  ;;  %v2080_v31 = vmax.f32 %v3600_v15, 0.0  ;;  %v2185_v16 = vld [vmem:[#allocation13 + $0x328] sm:$0xff]  ;;  %v3499_v15 = vpack.c.bf16 %v2182_v55, %v2180_v27  ;;  %v2191_v20 = vld [vmem:[#allocation13 + $0x358] sm:$0xff] }
 0x5b6   :  { %v2081_v59 = vmax.f32 %v3601_v60, 0.0  ;;  %v3501_v28 = vpack.c.bf16 %v2187_v57, %v2185_v16  ;;  %v2189_v60 = vld [vmem:[#allocation13 + $0x348] sm:$0xff] }
 0x5b7   :  { %v2083_v37 = vmax.f32 %v3603_v58, 0.0  ;;  %v3505_v41 = vpack.c.bf16 %v2191_v20, %v2189_v60  ;;  %v2188_v58 = vld [vmem:[#allocation13 + $0x340] sm:$0xff] }
 0x5b8   :  { %2288 = vmatprep.mubr.f32.mxu0 %v2081_v59  ;;  %v2190_v59 = vld [vmem:[#allocation13 + $0x350] sm:$0xff]  ;;  %v2478_v57 = vld [vmem:[%s5378_s10] sm:$0xff] }
 0x5b9   :  { %2289 = vmatmul.mubr.f32.vlgmr.msra.gmra.mrb[2].mxu0 %v2080_v31  ;;  %v2195_v31 = vld [vmem:[#allocation13 + $0x378] sm:$0xff] }
 0x5ba   :  { %3468 = vmatpush1.bf16.msra.mxu0 %v3467_v51  ;;  %2359 = vmatprep.mubr.f32.mxu0 %v2083_v37  ;;  %v2193_v51 = vld [vmem:[#allocation13 + $0x368] sm:$0xff]  ;;  %v2194_v37 = vld [vmem:[#allocation13 + $0x370] sm:$0xff] }
 0x5bb   :  { %3470 = vmatprep.subr.bf16.mxu0 %v3469_v4  ;;  %v3507_v4 = vpack.c.bf16 %v2190_v59, %v2188_v58  ;;  %v3509_v3 = vpack.c.bf16 %v2195_v31, %v2193_v51  ;;  %v2484_v59 = vld [vmem:[%s5378_s10 + $0x30] sm:$0xff]  ;;  %v2485_v51 = vld [vmem:[%s5378_s10 + $0x38] sm:$0xff] }
 0x5bc   :  { %v3571_v31 = vpack.c.bf16 %v2485_v51, %v2484_v59 }
 0x5be   :  { %3472 = vmatpush1.bf16.msra.mxu0 %v3471_v50  ;;  %v3511_v50 = vpack.c.bf16 %v2194_v37, %v2192_v1  ;;  %v2488_v37 = vld [vmem:[%s5378_s10 + $0x50] sm:$0xff] }
 0x5bf   :  { %3474 = vmatprep.subr.bf16.mxu0 %v3473_v42  ;;  %v3513_v42 = vpack.c.bf16 %v2199_v54, %v2197_v48  ;;  %v2489_v48 = vld [vmem:[%s5378_s10 + $0x58] sm:$0xff] }
 0x5c0   :  { %v3577_v54 = vpack.c.bf16 %v2489_v48, %v2488_v37 }
 0x5c2   :  { %3476 = vmatpush1.bf16.msra.mxu0 %v3475_v38  ;;  %v3515_v38 = vpack.c.bf16 %v2198_v34, %v2196_v17  ;;  %v2492_v17 = vld [vmem:[%s5378_s10 + $0x70] sm:$0xff] }
 0x5c3   :  { %3478 = vmatprep.subr.bf16.mxu0 %v3477_v40  ;;  %v3517_v40 = vpack.c.bf16 %v2203_v46, %v2201_v23  ;;  %v2493_v23 = vld [vmem:[%s5378_s10 + $0x78] sm:$0xff]  ;;  %v3969_v46 = vmov 0.0  }
 0x5c6   :  { %3480 = vmatpush1.bf16.msra.mxu0 %v3479_v62  ;;  %v3519_v62 = vpack.c.bf16 %v2202_v30, %v2200_v24  ;;  %v2758_v24 = vld [vmem:[#allocation17] ss:$0 sm:$0xff] }
 0x5c7   :  { %3482 = vmatprep.subr.bf16.mxu0 %v3481_v61  ;;  %v3521_v61 = vpack.c.bf16 %v2207_v32, %v2205_v9  ;;  %v2572_v32 = vld [vmem:[%s5380_s12] sm:$0xff] }
 0x5ca   :  { %3484 = vmatpush1.bf16.msra.mxu0 %v3483_v19  ;;  %v3523_v19 = vpack.c.bf16 %v2206_v29, %v2204_v33 }
 0x5cb   :  { %3486 = vmatprep.subr.bf16.mxu0 %v3485_v2  ;;  %v5760_v2 = vld [vmem:[#allocation31_spill] sm:$0xff] }
 0x5cc   :  { %v1415_v44 = vrot.slane %v5256_v52, %v5760_v2  ;;  %v2383_v52 = vld [vmem:[#allocation16 + $0x78] sm:$0xff]  ;;  %v2576_v2 = vld [vmem:[%s5380_s12 + $0x20] sm:$0xff] }
 0x5cd   :  { %v3559_v14 = vpack.c.bf16 %v2383_v52, %v2382_v13 }
 0x5ce   :  { %3488 = vmatpush1.bf16.msra.mxu0 %v3487_v56  ;;  %v3527_v56 = vpack.c.bf16 %v2210_v49, %v2208_v43  ;;  %v2578_v43 = vld [vmem:[%s5380_s12 + $0x30] sm:$0xff]  ;;  %v2579_v49 = vld [vmem:[%s5380_s12 + $0x38] sm:$0xff] }
 0x5cf   :  { %3490 = vmatprep.subr.bf16.mxu0 %v3489_v18  ;;  %v3602_v18 = vadd.f32 %v5264_v5, %v1415_v44  ;;  %v2212_v5 = vld [vmem:[#allocation14] sm:$0x3]  ;;  %v2577_v44 = vld [vmem:[%s5380_s12 + $0x28] sm:$0xff] }
 0x5d1   :  { %v2082_v7 = vmax.f32 %v3602_v18, 0.0  ;;  %v2759_v18 = vld [vmem:[#allocation19] ss:$0 sm:$0xff] }
 0x5d2   :  { %3492 = vmatpush1.bf16.msra.mxu0 %v3491_v25  ;;  %v2398_v25 = vld [vmem:[#allocation16 + $0xf0] sm:$0xff] }
 0x5d3   :  { %3494 = vmatprep.subr.bf16.mxu0 %v3493_v45  ;;  %v2399_v45 = vld [vmem:[#allocation16 + $0xf8] sm:$0xff] }
 0x5d4   :  { %v3557_v63 = vpack.c.bf16 %v2399_v45, %v2398_v25  ;;  %v2662_v25 = vld [vmem:[%s5382_s14] sm:$0xff]  ;;  %v2663_v45 = vld [vmem:[%s5382_s14 + $0x8] sm:$0xff] }
 0x5d5   :  { %v3598_v13 = vpack.c.bf16 %v2663_v45, %v2662_v25 }
 0x5d6   :  { %3496 = vmatpush1.bf16.msra.mxu0 %v3495_v0  ;;  %3558 = vmatprep.subr.bf16.mxu1 %v3557_v63  ;;  %v2217_v0 = vrot.slane %v2212_v5, %v5757_v21  ;;  %v2480_v21 = vld [vmem:[%s5378_s10 + $0x10] sm:$0xff]  ;;  %v2760_v63 = vld [vmem:[#allocation20] ss:$0 sm:$0xff] }
 0x5d7   :  { %3498 = vmatprep.subr.bf16.mxu0 %v3497_v26  ;;  %3560 = vmatpush3.bf16.msra.mxu1 %v3559_v14  ;;  %v2221_v26 = vrot.slane %v2212_v5, %v5758_v10  ;;  %v2481_v10 = vld [vmem:[%s5378_s10 + $0x18] sm:$0xff] }
 0x5d8   :  { %3561 = vmatprep.subr.bf16.mxu1 %v3967_v35  ;;  %v3565_v20 = vpack.c.bf16 %v2481_v10, %v2480_v21 }
 0x5da   :  { %3500 = vmatpush1.bf16.msra.mxu0 %v3499_v15  ;;  %v2479_v15 = vld [vmem:[%s5378_s10 + $0x8] sm:$0xff] }
 0x5db   :  { %3502 = vmatprep.subr.bf16.mxu0 %v3501_v28  ;;  %v3562_v22 = vpack.c.bf16 %v2479_v15, %v2478_v57 }
 0x5de   :  { %3504 = vmatpush1.bf16.msra.mxu0 %v3503_v36  ;;  %v2482_v36 = vld [vmem:[%s5378_s10 + $0x20] sm:$0xff] }
 0x5df   :  { %3506 = vmatprep.subr.bf16.mxu0 %v3505_v41  ;;  %v2483_v41 = vld [vmem:[%s5378_s10 + $0x28] sm:$0xff] }
 0x5e0   :  { %v3568_v58 = vpack.c.bf16 %v2483_v41, %v2482_v36 }
 0x5e2   :  { %3508 = vmatpush1.bf16.msra.mxu0 %v3507_v4  ;;  %v2486_v4 = vld [vmem:[%s5378_s10 + $0x40] sm:$0xff] }
 0x5e3   :  { %3510 = vmatprep.subr.bf16.mxu0 %v3509_v3  ;;  %v2487_v3 = vld [vmem:[%s5378_s10 + $0x48] sm:$0xff] }
 0x5e4   :  { %v3574_v1 = vpack.c.bf16 %v2487_v3, %v2486_v4 }
 0x5e6   :  { %3512 = vmatpush1.bf16.msra.mxu0 %v3511_v50  ;;  %v2490_v50 = vld [vmem:[%s5378_s10 + $0x60] sm:$0xff] }
 0x5e7   :  { %3514 = vmatprep.subr.bf16.mxu0 %v3513_v42  ;;  %v2491_v42 = vld [vmem:[%s5378_s10 + $0x68] sm:$0xff] }
 0x5e8   :  { %v3580_v34 = vpack.c.bf16 %v2491_v42, %v2490_v50 }
 0x5ea   :  { %3516 = vmatpush1.bf16.msra.mxu0 %v3515_v38  ;;  %v3583_v38 = vpack.c.bf16 %v2493_v23, %v2492_v17 }
 0x5eb   :  { %3518 = vmatprep.subr.bf16.mxu0 %v3517_v40 }
 0x5ee   :  { %3520 = vmatpush1.bf16.msra.mxu0 %v3519_v62  ;;  %v2573_v62 = vld [vmem:[%s5380_s12 + $0x8] sm:$0xff] }
 0x5ef   :  { %3522 = vmatprep.subr.bf16.mxu0 %v3521_v61  ;;  %v3586_v33 = vpack.c.bf16 %v2573_v62, %v2572_v32 }
 0x5f2   :  { %3524 = vmatpush1.bf16.msra.mxu0 %v3523_v19  ;;  %v3589_v19 = vpack.c.bf16 %v2575_v47, %v2574_v39 }
 0x5f3   :  { %3526 = vmatprep.subr.bf16.mxu0 %v3525_v6  ;;  %v3592_v6 = vpack.c.bf16 %v2577_v44, %v2576_v2 }
 0x5f6   :  { %3528 = vmatpush1.bf16.msra.mxu0 %v3527_v56  ;;  %v3595_v56 = vpack.c.bf16 %v2579_v49, %v2578_v43 }
 0x5f9   :  { %2360 = vmatmul.mubr.f32.vlgmr.msra.gmra.mrb[2].mxu0 %v2082_v7 }
 0x6cc   :  { %v2361_v27 = vpop.f32.mrb[2].mxu0 }
 0x6cd   :  { %v3604_v55 = vadd.f32 %v2361_v27, %v2217_v0  ;;  %v2363_v16 = vpop.f32.mrb[3].mxu0  ;;  %v2762_v0 = vld [vmem:[#allocation2] ss:$0 sm:$0xff] }
 0x6ce   :  { %v3605_v28 = vadd.f32 %v2363_v16, %v2221_v26 }
 0x6cf   :  { %v2366_v60 = vmax.f32 %v3604_v55, 0.0 }
 0x6d0   :  { %v2367_v11 = vmax.f32 %v3605_v28, 0.0 }
 0x6d2   :  { %2471 = vmatprep.mubr.f32.mxu1 %v2367_v11 }
 0x6d3   :  { %2472 = vmatmul.mubr.f32.vlgmr.msra.gmra.mrb[2].mxu1 %v2366_v60 }
 0x6d4   :  { %3563 = vmatpush3.bf16.msra.mxu1 %v3562_v22  ;;  %2860 = vmatprep.mubr.msk.f32.mxu1 %vm3968_vm4, %v3969_v46 }
 0x6d5   :  { %3564 = vmatprep.subr.bf16.mxu1 %v3967_v35 }
 0x6d8   :  { %3566 = vmatpush3.bf16.msra.mxu1 %v3565_v20 }
 0x6d9   :  { %3567 = vmatprep.subr.bf16.mxu1 %v3967_v35 }
 0x6dc   :  { %3569 = vmatpush3.bf16.msra.mxu1 %v3568_v58 }
 0x6dd   :  { %3570 = vmatprep.subr.bf16.mxu1 %v3967_v35 }
 0x6e0   :  { %3572 = vmatpush3.bf16.msra.mxu1 %v3571_v31 }
 0x6e1   :  { %3573 = vmatprep.subr.bf16.mxu1 %v3967_v35 }
 0x6e4   :  { %3575 = vmatpush3.bf16.msra.mxu1 %v3574_v1 }
 0x6e5   :  { %3576 = vmatprep.subr.bf16.mxu1 %v3967_v35 }
 0x6e8   :  { %3578 = vmatpush3.bf16.msra.mxu1 %v3577_v54 }
 0x6e9   :  { %3579 = vmatprep.subr.bf16.mxu1 %v3967_v35 }
 0x6ec   :  { %3581 = vmatpush3.bf16.msra.mxu1 %v3580_v34 }
 0x6ed   :  { %3582 = vmatprep.subr.bf16.mxu1 %v3967_v35 }
 0x6f0   :  { %3584 = vmatpush3.bf16.msra.mxu1 %v3583_v38 }
 0x6f1   :  { %3585 = vmatprep.subr.bf16.mxu1 %v3967_v35 }
 0x7a6   :  { %v2796_v40 = vpop.f32.mrb[2].mxu1 }
 0x7a7   :  { %v2797_v30 = vpop.f32.mrb[3].mxu1 }
 0x7a8   :  { %v2798_v9 = vadd.f32 %v2797_v30, %v2796_v40 }
 0x7aa   :  { %v2474_v61 = vadd.f32 %v2798_v9, %v2758_v24 }
 0x7ac   :  { %v2477_v29 = vmax.f32 %v2474_v61, 0.0 }
 0x7ae   :  { %2861 = vmatmul.mubr.f32.vlgmr.msra.gmra.mrb[4].mxu1 %v2477_v29 }
 0x7af   :  { %3587 = vmatpush3.bf16.msra.mxu1 %v3586_v33  ;;  %2879 = vmatprep.mubr.msk.f32.mxu1 %vm3968_vm4, %v3969_v46 }
 0x7b0   :  { %3588 = vmatprep.subr.bf16.mxu1 %v3967_v35 }
 0x7b3   :  { %3590 = vmatpush3.bf16.msra.mxu1 %v3589_v19 }
 0x7b4   :  { %3591 = vmatprep.subr.bf16.mxu1 %v3967_v35 }
 0x7b7   :  { %3593 = vmatpush3.bf16.msra.mxu1 %v3592_v6 }
 0x7b8   :  { %3594 = vmatprep.subr.bf16.mxu1 %v3967_v35 }
 0x7bb   :  { %3596 = vmatpush3.bf16.msra.mxu1 %v3595_v56 }
 0x7bc   :  { %3597 = vmatprep.subr.bf16.mxu1 %v3967_v35 }
 0x881   :  { %v2567_v7 = vpop.f32.mrb[4].mxu1 }
 0x882   :  { %v2568_v53 = vadd.f32 %v2759_v18, %v2567_v7  ;;  %v2862_v8 = vpop.f32.mrb[5].mxu1 }
 0x884   :  { %v2571_v12 = vmax.f32 %v2568_v53, 0.0 }
 0x886   :  { %2880 = vmatmul.mubr.msk.f32.vlgmr.msra.gmra.mrb[6].mxu1 %vm2587_vm5, %v2571_v12 }
 0x887   :  { %2886 = vmatprep.mubr.msk.f32.mxu1 %vm3968_vm4, %v3969_v46  ;;  %3599 = vmatpush3.bf16.msra.mxu1 %v3598_v13 }
 0x959   :  { %v2657_v52 = vpop.f32.mrb[6].mxu1 }
 0x95a   :  { %v2658_v14 = vadd.f32 %v2760_v63, %v2657_v52  ;;  %v2881_v35 = vpop.f32.mrb[7].mxu1 }
 0x95c   :  { %v2661_v5 = vmax.f32 %v2658_v14, 0.0 }
 0x95e   :  { %2887 = vmatmul.mubr.msk.f32.vlgmr.msra.gmra.mrb[8].mxu1 %vm2671_vm6, %v2661_v5 }
 0xa31   :  { %v2741_v26 = vpop.f32.mrb[8].mxu1 }
 0xa32   :  { %v2742_v27 = vadd.f32 %v2762_v0, %v2741_v26  ;;  %v2888_v55 = vpop.f32.mrb[9].mxu1 }
 0xa34   :  { %2746 = vst.msk [vmem:[%s5384_s16] sm:$0xf] %vm2745_vm7, %v2742_v27 }
 0xa35   :  { %2751 = vsyncpa [#allocation4], 1 }
 0xa36   :  { %2752 = vsyncpa [#allocation6], 1 }
 0xa37   :  { %2753 = vsyncpa [#allocation9], 1 }
 0xa38   :  { %2754 = vsyncpa [#allocation12], 1 }
 0xa39   :  { %2755 = vsyncpa [#allocation15], 1 }
 0xa3a   :  { %2756 = vsyncpa [#allocation18], 1 }
 0xa3b   :  { %2757 = vsyncpa [#allocation21], 1 }

</bundles_post_ra>
